<compile_context>
chip_gen: v7x
topology: tpu7x:2x2x1
jax: 0.10.0
libtpu: 0.0.40
codegen_flags: <defaults>
</compile_context>

<pallas_src>
import functools

import jax
import jax.numpy as jnp
from jax import lax
from jax.experimental import pallas as pl
from jax.experimental.pallas import tpu as pltpu


def _ser_kernel(idx_ref,   # VMEM (TB, F) int32            raw per-field ids
                tbl_ref,   # VMEM (F*vocab, De + Dh) f32   column-fused tables
                out_ref,   # VMEM (TB, F*De + F*Dh)        [easy_all | hard_all]
                *, num_fields, vocab_size, d_easy, d_hard):
    tb = idx_ref.shape[0]
    vtot = tbl_ref.shape[0]

    tbl = tbl_ref[...]                                        # hoisted VMEM load
    idx = idx_ref[...]                                        # (TB, F)
    col_ids = lax.broadcasted_iota(jnp.int32, (tb, vtot), 1)  # (TB, Vtot), hoisted

    easy_parts = []
    hard_parts = []
    # Small static unroll over fields (F is tiny and static).
    for f in range(num_fields):
        # Global row id into the stacked per-field table.
        rows = idx[:, f:f + 1] + f * vocab_size               # (TB, 1)
        onehot = (col_ids == rows).astype(tbl.dtype)          # (TB, Vtot)
        # One-hot gather on the MXU; exactly one 1.0 per row, HIGHEST keeps
        # the f32 table values un-truncated (exact).
        emb = jnp.dot(onehot, tbl,
                      preferred_element_type=jnp.float32,
                      precision=lax.Precision.HIGHEST)        # (TB, De + Dh)
        easy_parts.append(emb[:, :d_easy])
        hard_parts.append(emb[:, d_easy:])

    # Single lane-dense store: [easy_f0..easy_f{F-1} | hard_f0..hard_f{F-1}].
    fused = jnp.concatenate(easy_parts + hard_parts, axis=1)  # (TB, F*De + F*Dh)
    out_ref[...] = fused.astype(out_ref.dtype)


def ser_forward(indices, easy_table, hard_table, *, vocab_size, block_b=128):
    """indices: (B, F) int32; easy_table: (F*vocab, D//2); hard_table: (F*vocab, D)."""
    B, F = indices.shape
    vtot, d_easy = easy_table.shape
    vtot2, d_hard = hard_table.shape
    assert vtot == vtot2 == F * vocab_size

    # Column-fuse the two tables: one lookup per (b, f) feeds both outputs.
    table = jnp.concatenate([easy_table, hard_table], axis=1)  # (Vtot, De+Dh)

    # Batch blocking (pad B up to a multiple of the block if needed; pad rows
    # use id 0, a valid row, and are sliced off below).
    tb = min(block_b, B)
    b_pad = pl.cdiv(B, tb) * tb
    if b_pad != B:
        indices = jnp.pad(indices, ((0, b_pad - B), (0, 0)))
    grid = (b_pad // tb,)

    out_cols = F * (d_easy + d_hard)

    kernel = functools.partial(_ser_kernel, num_fields=F, vocab_size=vocab_size,
                               d_easy=d_easy, d_hard=d_hard)

    grid_spec = pltpu.PrefetchScalarGridSpec(
        num_scalar_prefetch=0,
        grid=grid,
        in_specs=[
            pl.BlockSpec((tb, F), lambda b: (b, 0)),                    # ids
            pl.BlockSpec((vtot, d_easy + d_hard), lambda b: (0, 0)),    # table (resident)
        ],
        out_specs=pl.BlockSpec((tb, out_cols), lambda b: (b, 0)),       # fused output
    )

    fused = pl.pallas_call(
        kernel,
        grid_spec=grid_spec,
        out_shape=jax.ShapeDtypeStruct((b_pad, out_cols), hard_table.dtype),
        compiler_params=pltpu.CompilerParams(
            dimension_semantics=("parallel",)),   # shards blocks over 2 TCs on v7x
    )(indices, table)

    easy_out = fused[:B, :F * d_easy].reshape(B, F, d_easy)
    hard_out = fused[:B, F * d_easy:].reshape(B, F, d_hard)
    return easy_out, hard_out


def _reference(indices, easy_table, hard_table, *, vocab_size):
    B, F = indices.shape
    offsets = jnp.arange(F, dtype=jnp.int32) * vocab_size
    rows = indices + offsets[None, :]              # (B, F) global rows
    return easy_table[rows], hard_table[rows]      # (B, F, De), (B, F, Dh)


if __name__ == "__main__":
    # Deterministic synthetic config (no checkpoint load).
    B = 256               # batch (blocked into 2 grid steps of 128)
    F = 4                 # number of feature fields
    VOCAB = 10            # per-field vocabulary size
    EMB_DIM = 32          # hard embedding dim; easy uses EMB_DIM // 2

    key = jax.random.PRNGKey(0)
    k_idx, k_easy, k_hard = jax.random.split(key, 3)

    indices = jax.random.randint(k_idx, (B, F), 0, VOCAB, dtype=jnp.int32)
    easy_table = (jax.random.normal(k_easy, (F * VOCAB, EMB_DIM // 2),
                                    dtype=jnp.float32) * 0.1)
    hard_table = (jax.random.normal(k_hard, (F * VOCAB, EMB_DIM),
                                    dtype=jnp.float32) * 0.1)

    easy_out, hard_out = ser_forward(indices, easy_table, hard_table,
                                     vocab_size=VOCAB)
    jax.block_until_ready(easy_out)
    jax.block_until_ready(hard_out)

    easy_ref, hard_ref = _reference(indices, easy_table, hard_table,
                                    vocab_size=VOCAB)
    assert easy_out.shape == (B, F, EMB_DIM // 2)
    assert hard_out.shape == (B, F, EMB_DIM)
    # With Precision.HIGHEST the one-hot matmul is exact; the tolerance also
    # covers a bf16-pass fallback on older compiler versions.
    assert jnp.allclose(easy_out, easy_ref, atol=2e-3, rtol=0)
    assert jnp.allclose(hard_out, hard_ref, atol=2e-3, rtol=0)

    # TODO(synk): FeatureEmbedding's dynamic_emb_dim flattening/padding variants
    # (if the upstream repo flattens to (B, F*D)) are left to the JAX wrapper.
    print("KERNEL_OK")
</pallas_src>

<mosaic_0001>
module attributes {stable_mosaic.version = 11 : i64} {
  func.func @_ser_kernel(%arg0: i32, %arg1: memref<128x4xi32, #tpu.memory_space<vmem>>, %arg2: memref<40x48xf32, #tpu.memory_space<vmem>>, %arg3: memref<128x192xf32, #tpu.memory_space<vmem>>) attributes {dimension_semantics = [#tpu.dimension_semantics<parallel>], iteration_bounds = array<i64: 2>, scalar_prefetch = 0 : i64, scratch_operands = 0 : i64, tpu.core_type = #tpu.core_type<tc>, window_params = [{transform_indices = @transform_0, window_bounds = array<i64: 128, 4>}, {pipeline_mode = #tpu.pipeline_mode<synchronous>, transform_indices = @transform_1, window_bounds = array<i64: 40, 48>}, {transform_indices = @transform_2, window_bounds = array<i64: 128, 192>}]} {
    %c0 = arith.constant 0 : index
    %c0_0 = arith.constant 0 : index
    %0 = vector.load %arg2[%c0, %c0_0] : memref<40x48xf32, #tpu.memory_space<vmem>>, vector<40x48xf32>
    %c0_1 = arith.constant 0 : index
    %c0_2 = arith.constant 0 : index
    %1 = vector.load %arg1[%c0_1, %c0_2] : memref<128x4xi32, #tpu.memory_space<vmem>>, vector<128x4xi32>
    %2 = tpu.iota {dimensions = array<i32: 1>} : vector<128x40xi32>
    %3 = vector.extract_strided_slice %1 {offsets = [0, 0], sizes = [128, 1], strides = [1, 1]} : vector<128x4xi32> to vector<128x1xi32>
    %c0_i32 = arith.constant 0 : i32
    %4 = vector.broadcast %c0_i32 : i32 to vector<128x1xi32>
    %5 = arith.addi %3, %4 : vector<128x1xi32>
    %6 = vector.broadcast %5 : vector<128x1xi32> to vector<128x40xi32>
    %7 = arith.cmpi eq, %2, %6 : vector<128x40xi32>
    %8 = arith.extui %7 : vector<128x40xi1> to vector<128x40xi32>
    %9 = arith.sitofp %8 : vector<128x40xi32> to vector<128x40xf32>
    %cst = arith.constant dense<0.000000e+00> : vector<128x48xf32>
    %10 = tpu.matmul %9, %0, %cst {dimension_numbers = #tpu.dot_dimension_numbers<[1], [0], [0], [1], [0, 0, 1, 1], [], []>, precision = #tpu.contract_precision<fp32>} : vector<128x40xf32>, vector<40x48xf32>, vector<128x48xf32> -> vector<128x48xf32>
    %11 = vector.extract_strided_slice %10 {offsets = [0, 0], sizes = [128, 16], strides = [1, 1]} : vector<128x48xf32> to vector<128x16xf32>
    %12 = vector.extract_strided_slice %10 {offsets = [0, 16], sizes = [128, 32], strides = [1, 1]} : vector<128x48xf32> to vector<128x32xf32>
    %13 = vector.extract_strided_slice %1 {offsets = [0, 1], sizes = [128, 1], strides = [1, 1]} : vector<128x4xi32> to vector<128x1xi32>
    %c10_i32 = arith.constant 10 : i32
    %14 = vector.broadcast %c10_i32 : i32 to vector<128x1xi32>
    %15 = arith.addi %13, %14 : vector<128x1xi32>
    %16 = vector.broadcast %15 : vector<128x1xi32> to vector<128x40xi32>
    %17 = arith.cmpi eq, %2, %16 : vector<128x40xi32>
    %18 = arith.extui %17 : vector<128x40xi1> to vector<128x40xi32>
    %19 = arith.sitofp %18 : vector<128x40xi32> to vector<128x40xf32>
    %cst_3 = arith.constant dense<0.000000e+00> : vector<128x48xf32>
    %20 = tpu.matmul %19, %0, %cst_3 {dimension_numbers = #tpu.dot_dimension_numbers<[1], [0], [0], [1], [0, 0, 1, 1], [], []>, precision = #tpu.contract_precision<fp32>} : vector<128x40xf32>, vector<40x48xf32>, vector<128x48xf32> -> vector<128x48xf32>
    %21 = vector.extract_strided_slice %20 {offsets = [0, 0], sizes = [128, 16], strides = [1, 1]} : vector<128x48xf32> to vector<128x16xf32>
    %22 = vector.extract_strided_slice %20 {offsets = [0, 16], sizes = [128, 32], strides = [1, 1]} : vector<128x48xf32> to vector<128x32xf32>
    %23 = vector.extract_strided_slice %1 {offsets = [0, 2], sizes = [128, 1], strides = [1, 1]} : vector<128x4xi32> to vector<128x1xi32>
    %c20_i32 = arith.constant 20 : i32
    %24 = vector.broadcast %c20_i32 : i32 to vector<128x1xi32>
    %25 = arith.addi %23, %24 : vector<128x1xi32>
    %26 = vector.broadcast %25 : vector<128x1xi32> to vector<128x40xi32>
    %27 = arith.cmpi eq, %2, %26 : vector<128x40xi32>
    %28 = arith.extui %27 : vector<128x40xi1> to vector<128x40xi32>
    %29 = arith.sitofp %28 : vector<128x40xi32> to vector<128x40xf32>
    %cst_4 = arith.constant dense<0.000000e+00> : vector<128x48xf32>
    %30 = tpu.matmul %29, %0, %cst_4 {dimension_numbers = #tpu.dot_dimension_numbers<[1], [0], [0], [1], [0, 0, 1, 1], [], []>, precision = #tpu.contract_precision<fp32>} : vector<128x40xf32>, vector<40x48xf32>, vector<128x48xf32> -> vector<128x48xf32>
    %31 = vector.extract_strided_slice %30 {offsets = [0, 0], sizes = [128, 16], strides = [1, 1]} : vector<128x48xf32> to vector<128x16xf32>
    %32 = vector.extract_strided_slice %30 {offsets = [0, 16], sizes = [128, 32], strides = [1, 1]} : vector<128x48xf32> to vector<128x32xf32>
    %33 = vector.extract_strided_slice %1 {offsets = [0, 3], sizes = [128, 1], strides = [1, 1]} : vector<128x4xi32> to vector<128x1xi32>
    %c30_i32 = arith.constant 30 : i32
    %34 = vector.broadcast %c30_i32 : i32 to vector<128x1xi32>
    %35 = arith.addi %33, %34 : vector<128x1xi32>
    %36 = vector.broadcast %35 : vector<128x1xi32> to vector<128x40xi32>
    %37 = arith.cmpi eq, %2, %36 : vector<128x40xi32>
    %38 = arith.extui %37 : vector<128x40xi1> to vector<128x40xi32>
    %39 = arith.sitofp %38 : vector<128x40xi32> to vector<128x40xf32>
    %cst_5 = arith.constant dense<0.000000e+00> : vector<128x48xf32>
    %40 = tpu.matmul %39, %0, %cst_5 {dimension_numbers = #tpu.dot_dimension_numbers<[1], [0], [0], [1], [0, 0, 1, 1], [], []>, precision = #tpu.contract_precision<fp32>} : vector<128x40xf32>, vector<40x48xf32>, vector<128x48xf32> -> vector<128x48xf32>
    %41 = vector.extract_strided_slice %40 {offsets = [0, 0], sizes = [128, 16], strides = [1, 1]} : vector<128x48xf32> to vector<128x16xf32>
    %42 = vector.extract_strided_slice %40 {offsets = [0, 16], sizes = [128, 32], strides = [1, 1]} : vector<128x48xf32> to vector<128x32xf32>
    %43 = tpu.concatenate %11, %21, %31, %41, %12, %22, %32, %42 in 1 : vector<128x16xf32>, vector<128x16xf32>, vector<128x16xf32>, vector<128x16xf32>, vector<128x32xf32>, vector<128x32xf32>, vector<128x32xf32>, vector<128x32xf32> -> vector<128x192xf32>
    %c0_6 = arith.constant 0 : index
    %c0_7 = arith.constant 0 : index
    %44 = vector.load %arg3[%c0_6, %c0_7] : memref<128x192xf32, #tpu.memory_space<vmem>>, vector<128x192xf32>
    tpu.vector_store %arg3[%c0_6, %c0_7], %43 {strides = array<i32>} : memref<128x192xf32, #tpu.memory_space<vmem>>, vector<128x192xf32>,
    return
  }
  func.func @transform_0(%arg0: i32) -> (i32, i32) {
    %c0_i32 = arith.constant 0 : i32
    %c0_i32_0 = arith.constant 0 : i32
    return %arg0, %c0_i32 : i32, i32
  }
  func.func @transform_1(%arg0: i32) -> (i32, i32) {
    %c0_i32 = arith.constant 0 : i32
    %c0_i32_0 = arith.constant 0 : i32
    %c0_i32_1 = arith.constant 0 : i32
    return %c0_i32, %c0_i32_0 : i32, i32
  }
  func.func @transform_2(%arg0: i32) -> (i32, i32) {
    %c0_i32 = arith.constant 0 : i32
    %c0_i32_0 = arith.constant 0 : i32
    return %arg0, %c0_i32 : i32, i32
  }
}

</mosaic_0001>

<bundles_post_ra>
// kernel: tpu_custom_call.1
= control target key start
LH: loop header
LB: loop body
LE: loop exit
PB: predicated region body
PF: predicated region fallthrough
CT: control target
= control target key end

     0   :  { %s8148_s9 = smov 0   ;;  %s10564_s0 = inlined_call_operand.vmem [shape: s32[256,4], index: 0, kind: input, shape index: {}]   ;;  %s10565_s1 = inlined_call_operand.vmem [shape: f32[40,48], index: 1, kind: input, shape index: {}]   ;;  %s10566_s2 = inlined_call_operand.vmem [shape: f32[256,192], index: 2, kind: output, shape index: {}]  }
   0x1 LB: > { %s5960_s10 = sadd.s32 4294967295, %s8121_s9   ;;  %p5964_p0 = scmp.ge.s32.totalorder %s8121_s9, 1  ;;  %s8121_s9 = sphi %s8148_s9, %s12_s9  }
   0x2   : > { %p113_p1 = scmp.lt.s32.totalorder %s8121_s9, 3 }
   0x4   : > { %p114_p2 = pnand %p5964_p0, %p113_p1 }
   0x6   : > { %117 = sbr.rel (%p114_p2) target bundleno = 1017 (0x3f9), region = 28 }
   0xd   : > { %s5965_s11 = sshll.u32 %s5960_s10, 4  ;;  %v8123_v0 = vmov 0   ;;  %v8124_v1 = vmov 1   ;;  %v8193_v12 = vld [vmem:[%s10565_s1] sm:$0xff]  ;;  %v8198_v13 = vld [vmem:[%s10565_s1 + $0x8] sm:$0xff]  ;;  %v8213_v19 = vld [vmem:[%s10565_s1 + $0x10] sm:$0xff] }
   0xe   : > { %8079 = vset.pattern.permute.xlu1 %v8123_v0  ;;  %p137_p3 = scmp.lt.s32.totalorder %s5965_s11, 31  ;;  %8081 = vset.pattern.permute.xlu0 %v8124_v1  ;;  %v318_v15 = vand.u32 4294901760, %v8193_v12  ;;  %v321_v16 = vand.u32 4294901760, %v8198_v13  ;;  %v8218_v20 = vld [vmem:[%s10565_s1 + $0x18] sm:$0xff]  ;;  %v324_v21 = vand.u32 4294901760, %v8213_v19  ;;  %v8242_v25 = vld [vmem:[%s10565_s1 + $0x20] sm:$0xff] }
   0xf   : > { %v327_v22 = vand.u32 4294901760, %v8218_v20  ;;  %v8245_v26 = vand.u32 4294901760, %v8242_v25  ;;  %v10582_v41 = vmov 3   ;;  %vm268_vm1 = vcmask 326656   ;;  %s8128_s26 = smov 48   ;;  %s8129_s27 = smov 16  }
  0x10   : > { %s11026_s11 = smov (!%p137_p3, %s5965_s11), 31  ;;  %v8207_v17 = vpack.c.bf16 %v321_v16, %v318_v15  ;;  %v8309_v43 = vsub.f32 %v8193_v12, %v318_v15  ;;  %v8314_v44 = vsub.f32 %v8198_v13, %v321_v16  ;;  %v8337_v55 = vsub.f32 %v8213_v19, %v324_v21  ;;  %s8130_s28 = smov 80  }
  0x11   : > { %s5966_s12 = sshll.u32 %s11026_s11, 3  ;;  %v8229_v23 = vpack.c.bf16 %v327_v22, %v324_v21  ;;  %10755 = vst [vmem:[#allocation4_spill] sm:$0xff] %v8245_v26  ;;  %v8342_v56 = vsub.f32 %v8218_v20, %v327_v22  ;;  %v10586_v13 = vmov 2   ;;  %s8131_s29 = smov 32  }
  0x12   : > { %s8164_s15 = scalar_lea.vmem %s10564_s0, %s5966_s12  ;;  %10753 = vst [vmem:[#allocation2_spill] sm:$0xff] %v8207_v17  ;;  %7598 = vmatprep.subr.bf16.mxu1 %v8207_v17  ;;  %7550 = vmatprep.subr.bf16.mxu0 %v8207_v17  ;;  %v10581_v45 = vand.u32 4294901760, %v8309_v43  ;;  %v10580_v46 = vand.u32 4294901760, %v8314_v44  ;;  %10757 = vst [vmem:[#allocation6_spill] sm:$0xff] %v8337_v55  ;;  %v10574_v58 = vand.u32 4294901760, %v8337_v55  ;;  %s8132_s30 = smov 112  }
  0x13   : > { %v8167_v2 = vld [vmem:[%s8164_s15 + $0x18] sm:$0xff]  ;;  %v8170_v3 = vld [vmem:[%s8164_s15 + $0x10] sm:$0xff]  ;;  %v8173_v4 = vld [vmem:[%s8164_s15] sm:$0xff]  ;;  %7600 = vmatpush3.bf16.msra.mxu1 %v8207_v17  ;;  %10754 = vst [vmem:[#allocation3_spill] sm:$0xff] %v8229_v23  ;;  %7552 = vmatpush3.bf16.msra.mxu0 %v8207_v17  ;;  %v10573_v59 = vand.u32 4294901760, %v8342_v56  ;;  %v8384_v22 = vpack.c.bf16 %v8342_v56, %v8337_v55  ;;  %s6228_s3 = sshll.u32 %s11026_s11, 4 }
  0x14   : > { %182 = vperm.xlu1 %8079, %v8167_v2   ;;  %v1462_v5 = vadd.s32 10, %v8170_v3  ;;  %v8178_v6 = vld [vmem:[%s8164_s15 + $0x30] sm:$0xff]  ;;  %v1460_v7 = vadd.s32 10, %v8173_v4  ;;  %v8183_v9 = vld [vmem:[%s8164_s15 + $0x8] sm:$0xff]  ;;  %v1463_v18 = vadd.s32 10, %v8167_v2  ;;  %7602 = vmatprep.subr.bf16.mxu1 %v8229_v23  ;;  %v8236_v24 = vld [vmem:[%s8164_s15 + $0x20] sm:$0xff]  ;;  %v551_v48 = vsub.f32 %v8309_v43, %v10581_v45  ;;  %s10378_s6 = scalar_lea.vmem %s10566_s2, %s6228_s3 }
  0x15   : > { %v1466_v8 = vadd.s32 10, %v8178_v6  ;;  %v8186_v10 = vld [vmem:[%s8164_s15 + $0x50] sm:$0xff]  ;;  %v1461_v11 = vadd.s32 10, %v8183_v9  ;;  %7554 = vmatprep.subr.bf16.mxu0 %v8229_v23  ;;  %v1464_v27 = vadd.s32 10, %v8236_v24  ;;  %v8256_v28 = vld [vmem:[%s8164_s15 + $0x28] sm:$0xff]  ;;  %v8265_v30 = vld [vmem:[%s8164_s15 + $0x38] sm:$0xff]  ;;  %v558_v49 = vsub.f32 %v8314_v44, %v10580_v46 }
  0x16   : > { %1483 = vperm.xlu0 %8081, %v1462_v5   ;;  %v1470_v14 = vadd.s32 10, %v8186_v10  ;;  %v1465_v29 = vadd.s32 10, %v8256_v28  ;;  %v8271_v31 = vld [vmem:[%s8164_s15 + $0x48] sm:$0xff]  ;;  %v1467_v32 = vadd.s32 10, %v8265_v30  ;;  %v8278_v33 = vld [vmem:[%s8164_s15 + $0x40] sm:$0xff]  ;;  %v8288_v36 = vld [vmem:[%s8164_s15 + $0x70] sm:$0xff]  ;;  %v565_v61 = vsub.f32 %v8337_v55, %v10574_v58 }
  0x17   : > { %7604 = vmatpush3.bf16.msra.mxu1 %v8229_v23  ;;  %7556 = vmatpush3.bf16.msra.mxu0 %v8229_v23  ;;  %v8281_v34 = vld [vmem:[%s8164_s15 + $0x68] sm:$0xff]  ;;  %v1468_v35 = vadd.s32 10, %v8278_v33  ;;  %v1469_v37 = vadd.s32 10, %v8271_v31  ;;  %v1474_v38 = vadd.s32 10, %v8288_v36  ;;  %v8296_v39 = vld [vmem:[%s8164_s15 + $0x58] sm:$0xff]  ;;  %v8304_v42 = vld [vmem:[%s8164_s15 + $0x60] sm:$0xff]  ;;  %v572_v62 = vsub.f32 %v8342_v56, %v10573_v59 }
  0x18   : > { %8080 = vset.pattern.permute.xlu1 %v8124_v1  ;;  %6945 = vmatprep.subr.mxu1 %v8245_v26  ;;  %v1471_v40 = vadd.s32 10, %v8296_v39  ;;  %v1472_v47 = vadd.s32 10, %v8304_v42  ;;  %v552_v50 = vand.u32 4294901760, %v551_v48  ;;  %v559_v51 = vand.u32 4294901760, %v558_v49  ;;  %10758 = vst [vmem:[#allocation7_spill] sm:$0xff] %v8342_v56  ;;  %v8348_v60 = vld [vmem:[%s8164_s15 + $0x78] sm:$0xff] }
  0x19   : > { %1477 = vperm.xlu1 %8080, %v1460_v7   ;;  %6741 = vmatprep.subr.mxu0 %v8245_v26  ;;  %v1473_v52 = vadd.s32 10, %v8281_v34  ;;  %v4068_v53 = vadd.s32 30, %v8170_v3  ;;  %v4072_v57 = vadd.s32 30, %v8178_v6  ;;  %v4076_v63 = vadd.s32 30, %v8186_v10  ;;  %10761 = vst [vmem:[#allocation10_spill] sm:$0xff] %v8384_v22 }
  0x1a   : > { %1495 = vperm.xlu0 %8081, %v1466_v8   ;;  %v8330_v54 = vpack.c.bf16 %v559_v51, %v552_v50  ;;  %v566_v5 = vand.u32 4294901760, %v565_v61  ;;  %v573_v7 = vand.u32 4294901760, %v572_v62  ;;  %v1475_v8 = vadd.s32 10, %v8348_v60 }
  0x1b   : > { %6946 = vmatpush3.msra.mxu1 %v8245_v26  ;;  %6742 = vmatpush3.msra.mxu0 %v8245_v26  ;;  %v2764_v12 = vadd.s32 20, %v8183_v9  ;;  %v4066_v15 = vadd.s32 30, %v8173_v4  ;;  %v2768_v16 = vadd.s32 20, %v8256_v28  ;;  %v2766_v19 = vadd.s32 20, %v8167_v2 }
  0x1c   : > { %10756 = vst [vmem:[#allocation5_spill] sm:$0xff] %v8330_v54  ;;  %7558 = vmatprep.subr.bf16.mxu0 %v8330_v54  ;;  %7606 = vmatprep.subr.bf16.mxu1 %v8330_v54  ;;  %v2773_v20 = vadd.s32 20, %v8186_v10  ;;  %v4069_v21 = vadd.s32 30, %v8167_v2  ;;  %v4070_v2 = vadd.s32 30, %v8236_v24  ;;  %v2771_v51 = vadd.s32 20, %v8278_v33 }
  0x1d   : > { %1480 = vperm.xlu1 %8080, %v1461_v11   ;;  %v8360_v11 = vpack.c.bf16 %v573_v7, %v566_v5  ;;  %v2775_v58 = vadd.s32 20, %v8304_v42  ;;  %v10780_v55 = vmov 2  }
  0x1e   : > { %1507 = vperm.xlu0 %8081, %v1470_v14   ;;  %v2765_v14 = vadd.s32 20, %v8170_v3 }
  0x1f   : > { %10759 = vst [vmem:[#allocation8_spill] sm:$0xff] %v8360_v11 }
  0x21   : > { %1486 = vperm.xlu1 %8080, %v1463_v18   ;;  %v4067_v18 = vadd.s32 30, %v8183_v9 }
  0x22   : > { %8089 = vset.pattern.permute.xlu0 %v8123_v0 }
  0x23   : > { %173 = vperm.xlu0 %8089, %v8173_v4  }
  0x25   : > { %8082 = vset.pattern.permute.xlu1 %v8123_v0 }
  0x26   : > { %185 = vperm.xlu1 %8082, %v8236_v24  }
  0x27   : > { %176 = vperm.xlu0 %8089, %v8183_v9   ;;  %v2767_v9 = vadd.s32 20, %v8236_v24  ;;  %v4073_v24 = vadd.s32 30, %v8265_v30 }
  0x2a   : > { %8083 = vset.pattern.permute.xlu1 %v8124_v1 }
  0x2b   : > { %179 = vperm.xlu0 %8089, %v8170_v3   ;;  %1489 = vperm.xlu1 %8083, %v1464_v27   ;;  %v2769_v3 = vadd.s32 20, %v8178_v6  ;;  %v2777_v27 = vadd.s32 20, %v8288_v36 }
  0x2f   : > { %188 = vperm.xlu0 %8089, %v8256_v28   ;;  %1492 = vperm.xlu1 %8083, %v1465_v29   ;;  %v170_v29 = vlaneseq }
  0x33   : > { %191 = vperm.xlu0 %8089, %v8178_v6   ;;  %8084 = vset.pattern.permute.xlu1 %v8123_v0  ;;  %v2776_v6 = vadd.s32 20, %v8281_v34 }
  0x34   : > { %194 = vperm.xlu1 %8084, %v8265_v30  }
  0x37   : > { %200 = vperm.xlu0 %8089, %v8271_v31  }
  0x38   : > { %8085 = vset.pattern.permute.xlu1 %v8124_v1 }
  0x39   : > { %1498 = vperm.xlu1 %8085, %v1467_v32   ;;  %v2770_v32 = vadd.s32 20, %v8265_v30 }
  0x3b   : > { %203 = vperm.xlu0 %8089, %v8186_v10   ;;  %v4071_v10 = vadd.s32 30, %v8256_v28 }
  0x3d   : > { %8086 = vset.pattern.permute.xlu1 %v8123_v0 }
  0x3e   : > { %197 = vperm.xlu1 %8086, %v8278_v33  }
  0x3f   : > { %212 = vperm.xlu0 %8089, %v8281_v34  }
  0x42   : > { %8087 = vset.pattern.permute.xlu1 %v8124_v1 }
  0x43   : > { %215 = vperm.xlu0 %8089, %v8288_v36   ;;  %1501 = vperm.xlu1 %8087, %v1468_v35  }
  0x47   : > { %1504 = vperm.xlu1 %8087, %v1469_v37   ;;  %8094 = vset.pattern.permute.xlu0 %v8124_v1  ;;  %v8397_v37 = vand.u32 127, %v170_v29 }
  0x48   : > { %1519 = vperm.xlu0 %8094, %v1474_v38  }
  0x49   : > { %10762 = vst [vmem:[#allocation11_spill] sm:$0xff] %v8397_v37 }
  0x4b   : > { %8088 = vset.pattern.permute.xlu1 %v8123_v0 }
  0x4c   : > { %206 = vperm.xlu1 %8088, %v8296_v39   ;;  %8099 = vset.pattern.permute.xlu0 %v10582_v41 }
  0x4d   : > { %4089 = vperm.xlu0 %8099, %v4068_v53   ;;  %v8418_v53 = vsub.f32 %v8242_v25, %v8245_v26 }
  0x4f   : > { %10763 = vst [vmem:[#allocation12_spill] sm:$0xff] %v8418_v53 }
  0x50   : > { %8090 = vset.pattern.permute.xlu1 %v8124_v1 }
  0x51   : > { %1510 = vperm.xlu1 %8090, %v1471_v40   ;;  %4101 = vperm.xlu0 %8099, %v4072_v57   ;;  %v10584_v40 = vmov 0.0  }
  0x55   : > { %8091 = vset.pattern.permute.xlu1 %v8123_v0  ;;  %4113 = vperm.xlu0 %8099, %v4076_v63  }
  0x56   : > { %209 = vperm.xlu1 %8091, %v8304_v42  }
  0x59   : > { %8108 = vset.pattern.permute.xlu0 %v10586_v13 }
  0x5a   : > { %8092 = vset.pattern.permute.xlu1 %v8124_v1  ;;  %2783 = vperm.xlu0 %8108, %v2764_v12   ;;  %v8438_v12 = vand.u32 4294901760, %v8418_v53 }
  0x5b   : > { %1513 = vperm.xlu1 %8092, %v1472_v47  }
  0x5c   : > { %10764 = vst [vmem:[#allocation13_spill] sm:$0xff] %v8438_v12 }
  0x5e   : > { %2786 = vperm.xlu0 %8108, %v2765_v14  }
  0x5f   : > { %1516 = vperm.xlu1 %8092, %v1473_v52  }
  0x62   : > { %2795 = vperm.xlu0 %8108, %v2768_v16  }
  0x63   : > { %8093 = vset.pattern.permute.xlu1 %v8123_v0  ;;  %v2763_v0 = vadd.s32 20, %v8173_v4  ;;  %v2772_v4 = vadd.s32 20, %v8271_v31 }
  0x64   : > { %218 = vperm.xlu1 %8093, %v8348_v60  }
  0x66   : > { %2798 = vperm.xlu0 %8108, %v2769_v3  }
  0x68   : > { %8095 = vset.pattern.permute.xlu1 %v8124_v1  ;;  %v8372_v1 = vpack.c.bf16 %v8314_v44, %v8309_v43 }
  0x69   : > { %1522 = vperm.xlu1 %8095, %v1475_v8  }
  0x6a   : > { %10760 = vst [vmem:[#allocation9_spill] sm:$0xff] %v8372_v1  ;;  %2807 = vperm.xlu0 %8108, %v2772_v4  }
  0x6d   : > { %8096 = vset.pattern.permute.xlu1 %v10586_v13 }
  0x6e   : > { %2780 = vperm.xlu1 %8096, %v2763_v0   ;;  %2810 = vperm.xlu0 %8108, %v2773_v20   ;;  %v4074_v0 = vadd.s32 30, %v8278_v33 }
  0x72   : > { %8097 = vset.pattern.permute.xlu1 %v10582_v41  ;;  %2819 = vperm.xlu0 %8108, %v2776_v6   ;;  %v579_v6 = vsub.f32 %v8418_v53, %v8438_v12 }
  0x73   : > { %4083 = vperm.xlu1 %8097, %v4066_v15  }
  0x76   : > { %2822 = vperm.xlu0 %8108, %v2777_v27  }
  0x77   : > { %4086 = vperm.xlu1 %8097, %v4067_v18  }
  0x7a   : > { %8113 = vset.pattern.permute.xlu0 %v10582_v41 }
  0x7b   : > { %8098 = vset.pattern.permute.xlu1 %v10586_v13 }
  0x7c   : > { %2789 = vperm.xlu1 %8098, %v2766_v19  }
  0x80   : > { %8100 = vset.pattern.permute.xlu1 %v10582_v41 }
  0x81   : > { %4092 = vperm.xlu1 %8100, %v4069_v21  }
  0x85   : > { %8101 = vset.pattern.permute.xlu1 %v10586_v13 }
  0x86   : > { %2792 = vperm.xlu1 %8101, %v2767_v9   ;;  %v4075_v9 = vadd.s32 30, %v8271_v31 }
  0x8a   : > { %8102 = vset.pattern.permute.xlu1 %v10582_v41 }
  0x8b   : > { %4095 = vperm.xlu1 %8102, %v4070_v2  }
  0x8f   : > { %4098 = vperm.xlu1 %8102, %v4071_v10  }
  0x93   : > { %v183_v35 = vpop.permute.xlu1 %182  ;;  %8103 = vset.pattern.permute.xlu1 %v10586_v13 }
  0x94   : > { %2801 = vperm.xlu1 %8103, %v2770_v32   ;;  %vm223_vm3 = vcmp.eq.s32.totalorder %v8397_v37, %v183_v35 }
  0x95   : > { %v1484_v38 = vpop.permute.xlu0 %1483  ;;  %v8433_v25 = vsel %vm223_vm3, 1.0, %v10584_v40 }
  0x96   : > { %vm1526_vm0 = vcmp.eq.s32.totalorder %v8397_v37, %v1484_v38  ;;  %v279_v3 = vsel %vm268_vm1, %v8433_v25, 0 }
  0x97   : > { %v8402_v47 = vsel %vm1526_vm0, 1.0, %v10584_v40  ;;  %v8475_v32 = vsub.f32 %v279_v3, %v279_v3 }
  0x98   : > { %v1579_v28 = vsel %vm268_vm1, %v8402_v47, 0  ;;  %v1478_v48 = vpop.permute.xlu1 %1477  ;;  %8104 = vset.pattern.permute.xlu1 %v10582_v41 }
  0x99   : > { %v8407_v49 = vsub.f32 %v1579_v28, %v1579_v28  ;;  %vm1524_vm2 = vcmp.eq.s32.totalorder %v8397_v37, %v1478_v48  ;;  %v1496_v50 = vpop.permute.xlu0 %1495  ;;  %4104 = vperm.xlu1 %8104, %v4073_v24   ;;  %v2774_v24 = vadd.s32 20, %v8296_v39 }
  0x9a   : > { %v8411_v30 = vsel %vm1524_vm2, 1.0, %v10584_v40  ;;  %vm1530_vm5 = vcmp.eq.s32.totalorder %v8397_v37, %v1496_v50 }
  0x9b   : > { %v1573_v52 = vsel %vm268_vm1, %v8411_v30, 0  ;;  %v10568_v63 = vand.u32 4294901760, %v8407_v49  ;;  %v8465_v27 = vsel %vm1530_vm5, 1.0, %v10584_v40 }
  0x9c   : > { %v1481_v57 = vpop.permute.xlu1 %1480  ;;  %v8421_v61 = vsub.f32 %v1573_v52, %v1573_v52  ;;  %v1591_v52 = vsel %vm268_vm1, %v8465_v27, 0 }
  0x9d   : > { %vm1525_vm4 = vcmp.eq.s32.totalorder %v8397_v37, %v1481_v57  ;;  %v8424_v62 = vpop.permute.xlu0 %1507  ;;  %8105 = vset.pattern.permute.xlu1 %v10586_v13  ;;  %v1713_v18 = vsub.f32 %v8407_v49, %v10568_v63 }
  0x9e   : > { %v8429_v5 = vsel %vm1525_vm4, 1.0, %v10584_v40  ;;  %v10571_v7 = vand.u32 4294901760, %v8421_v61  ;;  %2804 = vperm.xlu1 %8105, %v2771_v51   ;;  %vm1534_vm4 = vcmp.eq.s32.totalorder %v8397_v37, %v8424_v62 }
  0x9f   : > { %v1576_v8 = vsel %vm268_vm1, %v8429_v5, 0  ;;  %v1714_v38 = vand.u32 4294901760, %v1713_v18 }
  0xa0   : > { %v8441_v14 = vsub.f32 %v1576_v8, %v1576_v8  ;;  %v1487_v15 = vpop.permute.xlu1 %1486  ;;  %v1693_v16 = vsub.f32 %v8421_v61, %v10571_v7  ;;  %v4080_v8 = vadd.s32 30, %v8288_v36 }
  0xa1   : > { %vm1527_vm6 = vcmp.eq.s32.totalorder %v8397_v37, %v1487_v15 }
  0xa2   : > { %v8454_v33 = vsel %vm1527_vm6, 1.0, %v10584_v40  ;;  %v174_v19 = vpop.permute.xlu0 %173  ;;  %v1694_v4 = vand.u32 4294901760, %v1693_v16  ;;  %v10569_v20 = vand.u32 4294901760, %v8441_v14  ;;  %8106 = vset.pattern.permute.xlu1 %v10582_v41  ;;  %4125 = vperm.xlu0 %8113, %v4080_v8  }
  0xa3   : > { %v1582_v21 = vsel %vm268_vm1, %v8454_v33, 0  ;;  %vm220_vm7 = vcmp.eq.s32.totalorder %v8397_v37, %v174_v19  ;;  %4107 = vperm.xlu1 %8106, %v4074_v0  }
  0xa4   : > { %v8467_v2 = vsub.f32 %v1582_v21, %v1582_v21  ;;  %v8470_v10 = vsel %vm220_vm7, 1.0, %v10584_v40  ;;  %6947 = vmatprep.mubr.f32.mxu1 %v1694_v4  ;;  %v1703_v29 = vsub.f32 %v8441_v14, %v10569_v20 }
  0xa5   : > { %v186_v35 = vpop.permute.xlu1 %185  ;;  %v270_v31 = vsel %vm268_vm1, %v8470_v10, 0 }
  0xa6   : > { %10765 = vst [vmem:[#allocation14_spill] sm:$0xff] %v8467_v2  ;;  %vm224_vm8 = vcmp.eq.s32.totalorder %v8397_v37, %v186_v35  ;;  %v177_v28 = vpop.permute.xlu0 %176  ;;  %v1704_v48 = vand.u32 4294901760, %v1703_v29  ;;  %v10567_v50 = vand.u32 4294901760, %v8467_v2  ;;  %v8482_v51 = vsub.f32 %v270_v31, %v270_v31 }
  0xa7   : > { %v8487_v57 = vsel %vm224_vm8, 1.0, %v10584_v40  ;;  %vm221_vm9 = vcmp.eq.s32.totalorder %v8397_v37, %v177_v28  ;;  %4110 = vperm.xlu1 %8106, %v4075_v9   ;;  %v8511_v35 = vand.u32 4294901760, %v579_v6  ;;  %v8513_v31 = vsub.f32 %v1591_v52, %v1591_v52 }
  0xa8   : > { %v282_v0 = vsel %vm268_vm1, %v8487_v57, 0  ;;  %v8494_v15 = vsel %vm221_vm9, 1.0, %v10584_v40  ;;  %6948 = vmatmul.mubr.f32.vlgmr.msra.gmra.mrb[0].mxu1 %v1704_v48  ;;  %v1723_v16 = vsub.f32 %v8467_v2, %v10567_v50  ;;  %v10578_v18 = vand.u32 4294901760, %v8482_v51 }
  0xa9   : > { %v8500_v3 = vsub.f32 %v282_v0, %v282_v0  ;;  %v273_v19 = vsel %vm268_vm1, %v8494_v15, 0  ;;  %6950 = vmatprep.mubr.f32.mxu1 %v1714_v38  ;;  %7608 = vmatpush3.bf16.msra.mxu1 %v8330_v54  ;;  %10766 = vst [vmem:[#allocation15_spill] sm:$0xff] %v8511_v35  ;;  %10767 = vst [vmem:[#allocation16_spill] sm:$0xff] %v8513_v31  ;;  %v10570_v38 = vand.u32 4294901760, %v8475_v32 }
  0xaa   : > { %v8505_v36 = vsub.f32 %v273_v19, %v273_v19  ;;  %v180_v4 = vpop.permute.xlu0 %179  ;;  %v1490_v21 = vpop.permute.xlu1 %1489  ;;  %v1724_v9 = vand.u32 4294901760, %v1723_v16  ;;  %v390_v29 = vsub.f32 %v8482_v51, %v10578_v18  ;;  %7610 = vmatprep.subr.bf16.mxu1 %v8360_v11  ;;  %v4077_v19 = vadd.s32 30, %v8296_v39 }
  0xab   : > { %vm222_vm10 = vcmp.eq.s32.totalorder %v8397_v37, %v180_v4  ;;  %vm1528_vm11 = vcmp.eq.s32.totalorder %v8397_v37, %v1490_v21  ;;  %8107 = vset.pattern.permute.xlu1 %v10586_v13  ;;  %v10575_v16 = vand.u32 4294901760, %v8500_v3  ;;  %v420_v39 = vsub.f32 %v8475_v32, %v10570_v38 }
  0xac   : > { %v8520_v28 = vsel %vm222_vm10, 1.0, %v10584_v40  ;;  %v8523_v48 = vsel %vm1528_vm11, 1.0, %v10584_v40  ;;  %6951 = vmatmul.mubr.f32.gmra.mrb[2].mxu1 %v1724_v9  ;;  %v391_v6 = vand.u32 4294901760, %v390_v29  ;;  %v10572_v8 = vand.u32 4294901760, %v8505_v36  ;;  %2813 = vperm.xlu1 %8107, %v2774_v24  }
  0xad   : > { %v276_v52 = vsel %vm268_vm1, %v8520_v28, 0  ;;  %v1585_v0 = vsel %vm268_vm1, %v8523_v48, 0  ;;  %7612 = vmatpush3.bf16.msra.mxu1 %v8360_v11  ;;  %v430_v38 = vsub.f32 %v8500_v3, %v10575_v16 }
  0xae   : > { %v8533_v4 = vsub.f32 %v276_v52, %v276_v52  ;;  %v8535_v21 = vsub.f32 %v1585_v0, %v1585_v0  ;;  %v189_v9 = vpop.permute.xlu0 %188  ;;  %v1493_v29 = vpop.permute.xlu1 %1492  ;;  %6743 = vmatprep.mubr.f32.mxu0 %v391_v6  ;;  %v400_v24 = vsub.f32 %v8505_v36, %v10572_v8  ;;  %6979 = vmatprep.subr.mxu1 %v8511_v35  ;;  %v10579_v52 = vand.u32 4294901760, %v8513_v31 }
  0xaf   : > { %vm225_vm12 = vcmp.eq.s32.totalorder %v8397_v37, %v189_v9  ;;  %vm1529_vm13 = vcmp.eq.s32.totalorder %v8397_v37, %v1493_v29  ;;  %v431_v45 = vand.u32 4294901760, %v430_v38 }
  0xb0   : > { %10768 = vst [vmem:[#allocation17_spill] sm:$0xff] %v8535_v21  ;;  %v8548_v0 = vsel %vm225_vm12, 1.0, %v10584_v40  ;;  %v8551_v6 = vsel %vm1529_vm13, 1.0, %v10584_v40  ;;  %v401_v50 = vand.u32 4294901760, %v400_v24  ;;  %v10576_v63 = vand.u32 4294901760, %v8533_v4  ;;  %8109 = vset.pattern.permute.xlu1 %v10582_v41 }
  0xb1   : > { %v285_v9 = vsel %vm268_vm1, %v8548_v0, 0  ;;  %v1588_v29 = vsel %vm268_vm1, %v8551_v6, 0  ;;  %v10577_v20 = vand.u32 4294901760, %v8535_v21  ;;  %6980 = vmatpush3.msra.mxu1 %v8511_v35  ;;  %4116 = vperm.xlu1 %8109, %v4077_v19  }
  0xb2   : > { %v8564_v24 = vsub.f32 %v285_v9, %v285_v9  ;;  %v8566_v7 = vsub.f32 %v1588_v29, %v1588_v29  ;;  %v192_v8 = vpop.permute.xlu0 %191  ;;  %6744 = vmatmul.mubr.f32.vlgmr.msra.gmra.mrb[0].mxu0 %v401_v50  ;;  %v410_v59 = vsub.f32 %v8533_v4, %v10576_v63  ;;  %7614 = vmatprep.subr.bf16.mxu1 %v8372_v1  ;;  %v421_v9 = vand.u32 4294901760, %v420_v39 }
  0xb3   : > { %vm226_vm14 = vcmp.eq.s32.totalorder %v8397_v37, %v192_v8  ;;  %v195_v16 = vpop.permute.xlu1 %194  ;;  %v1733_v19 = vsub.f32 %v8535_v21, %v10577_v20  ;;  %v1753_v50 = vsub.f32 %v8513_v31, %v10579_v52  ;;  %7560 = vmatpush3.bf16.msra.mxu0 %v8330_v54 }
  0xb4   : > { %10769 = vst [vmem:[#allocation18_spill] sm:$0xff] %v8566_v7  ;;  %v8582_v29 = vsel %vm226_vm14, 1.0, %v10584_v40  ;;  %vm227_vm15 = vcmp.eq.s32.totalorder %v8397_v37, %v195_v16  ;;  %v411_v63 = vand.u32 4294901760, %v410_v59  ;;  %v10589_v8 = vand.u32 4294901760, %v8566_v7  ;;  %7562 = vmatprep.subr.bf16.mxu0 %v8360_v11 }
  0xb5   : > { %v288_v20 = vsel %vm268_vm1, %v8582_v29, 0  ;;  %v8590_v39 = vsel %vm227_vm15, 1.0, %v10584_v40  ;;  %v1734_v18 = vand.u32 4294901760, %v1733_v19  ;;  %v10591_v52 = vand.u32 4294901760, %v8564_v24  ;;  %8110 = vset.pattern.permute.xlu1 %v10586_v13 }
  0xb6   : > { %v8594_v46 = vsub.f32 %v288_v20, %v288_v20  ;;  %v291_v59 = vsel %vm268_vm1, %v8590_v39, 0  ;;  %6746 = vmatprep.mubr.f32.mxu0 %v411_v63  ;;  %v201_v16 = vpop.permute.xlu0 %200  ;;  %v1743_v41 = vsub.f32 %v8566_v7, %v10589_v8  ;;  %2816 = vperm.xlu1 %8110, %v2775_v58   ;;  %v1754_v19 = vand.u32 4294901760, %v1753_v50 }
  0xb7   : > { %v8601_v40 = vsub.f32 %v291_v59, %v291_v59  ;;  %vm229_vm0 = vcmp.eq.s32.totalorder %v8397_v37, %v201_v16  ;;  %6953 = vmatprep.mubr.f32.mxu1 %v1734_v18  ;;  %6747 = vmatmul.mubr.f32.gmra.mrb[2].mxu0 %v421_v9  ;;  %v440_v20 = vsub.f32 %v8564_v24, %v10591_v52  ;;  %v10772_v13 = vmov 0.0  }
  0xb8   : > { %10770 = vst [vmem:[#allocation19_spill] sm:$0xff] %v8594_v46  ;;  %v8608_v63 = vsel %vm229_vm0, 1.0, %v10772_v13  ;;  %6749 = vmatprep.mubr.f32.mxu0 %v431_v45  ;;  %v1499_v38 = vpop.permute.xlu1 %1498  ;;  %v1744_v54 = vand.u32 4294901760, %v1743_v41  ;;  %v10590_v8 = vand.u32 4294901760, %v8594_v46  ;;  %7564 = vmatpush3.bf16.msra.mxu0 %v8360_v11  ;;  %v4078_v58 = vadd.s32 30, %v8304_v42 }
  0xb9   : > { %10771 = vst [vmem:[#allocation20_spill] sm:$0xff] %v8601_v40  ;;  %v297_v18 = vsel %vm268_vm1, %v8608_v63, 0  ;;  %vm1531_vm2 = vcmp.eq.s32.totalorder %v8397_v37, %v1499_v38  ;;  %v441_v9 = vand.u32 4294901760, %v440_v20  ;;  %v10592_v50 = vand.u32 4294901760, %v8601_v40  ;;  %6775 = vmatprep.subr.mxu0 %v8511_v35 }
  0xba   : > { %v8618_v59 = vsub.f32 %v297_v18, %v297_v18  ;;  %v8621_v41 = vsel %vm1531_vm2, 1.0, %v10772_v13  ;;  %v204_v45 = vpop.permute.xlu0 %203  ;;  %6954 = vmatmul.mubr.f32.gmra.mrb[4].mxu1 %v1744_v54  ;;  %v450_v42 = vsub.f32 %v8594_v46, %v10590_v8  ;;  %v10774_v16 = vmov 3  }
  0xbb   : > { %8111 = vset.pattern.permute.xlu1 %v10774_v16  ;;  %v1594_v20 = vsel %vm268_vm1, %v8621_v41, 0  ;;  %vm230_vm3 = vcmp.eq.s32.totalorder %v8397_v37, %v204_v45  ;;  %6750 = vmatmul.mubr.f32.gmra.mrb[4].mxu0 %v441_v9  ;;  %v460_v38 = vsub.f32 %v8601_v40, %v10592_v50  ;;  %v4079_v18 = vadd.s32 30, %v8281_v34 }
  0xbc   : > { %10773 = vst [vmem:[#allocation21_spill] sm:$0xff] %v8618_v59  ;;  %6956 = vmatprep.mubr.f32.mxu1 %v1754_v19  ;;  %v8636_v54 = vsub.f32 %v1594_v20, %v1594_v20  ;;  %v8639_v8 = vsel %vm230_vm3, 1.0, %v10772_v13  ;;  %v451_v52 = vand.u32 4294901760, %v450_v42  ;;  %6776 = vmatpush3.msra.mxu0 %v8511_v35  ;;  %v8651_v42 = vsel %vm1534_vm4, 1.0, %v10772_v13 }
  0xbd   : > { %4119 = vperm.xlu1 %8111, %v4078_v58   ;;  %v300_v9 = vsel %vm268_vm1, %v8639_v8, 0  ;;  %v198_v45 = vpop.permute.xlu1 %197  ;;  %v461_v50 = vand.u32 4294901760, %v460_v38  ;;  %7566 = vmatprep.subr.bf16.mxu0 %v8372_v1  ;;  %10777 = vst [vmem:[#allocation24_spill] sm:$0xff] %v8651_v42  ;;  %v1603_v19 = vsel %vm268_vm1, %v8651_v42, 0 }
  0xbe   : > { %10775 = vst [vmem:[#allocation22_spill] sm:$0xff] %v8636_v54  ;;  %v8645_v34 = vsub.f32 %v300_v9, %v300_v9  ;;  %vm228_vm5 = vcmp.eq.s32.totalorder %v8397_v37, %v198_v45  ;;  %6752 = vmatprep.mubr.f32.mxu0 %v451_v52  ;;  %v10600_v62 = vand.u32 4294901760, %v8636_v54  ;;  %v2778_v45 = vadd.s32 20, %v8348_v60  ;;  %v213_v56 = vpop.permute.xlu0 %212 }
  0xbf   : > { %v8654_v58 = vsel %vm228_vm5, 1.0, %v10772_v13  ;;  %6753 = vmatmul.mubr.f32.gmra.mrb[6].mxu0 %v461_v50  ;;  %v10779_v50 = vand.u32 4294901760, %v8618_v59  ;;  %vm233_vm8 = vcmp.eq.s32.totalorder %v8397_v37, %v213_v56 }
  0xc0   : > { %10776 = vst [vmem:[#allocation23_spill] sm:$0xff] %v8645_v34  ;;  %v294_v20 = vsel %vm268_vm1, %v8654_v58, 0  ;;  %v1763_v38 = vsub.f32 %v8636_v54, %v10600_v62  ;;  %v10606_v9 = vand.u32 4294901760, %v8645_v34 }
  0xc1   : > { %4122 = vperm.xlu1 %8111, %v4079_v18   ;;  %v8661_v52 = vsub.f32 %v294_v20, %v294_v20  ;;  %v480_v12 = vsub.f32 %v8618_v59, %v10779_v50 }
  0xc2   : > { %v1502_v35 = vpop.permute.xlu1 %1501  ;;  %v1764_v11 = vand.u32 4294901760, %v1763_v38  ;;  %v490_v20 = vsub.f32 %v8645_v34, %v10606_v9  ;;  %v8679_v38 = vsub.f32 %v1603_v19, %v1603_v19  ;;  %v4081_v34 = vadd.s32 30, %v8348_v60  ;;  %v216_v7 = vpop.permute.xlu0 %215 }
  0xc3   : > { %10778 = vst [vmem:[#allocation25_spill] sm:$0xff] %v8661_v52  ;;  %vm1532_vm6 = vcmp.eq.s32.totalorder %v8397_v37, %v1502_v35  ;;  %v10613_v18 = vand.u32 4294901760, %v8661_v52  ;;  %v481_v9 = vand.u32 4294901760, %v480_v12  ;;  %vm234_vm9 = vcmp.eq.s32.totalorder %v8397_v37, %v216_v7 }
  0xc4   : > { %v8676_v62 = vsel %vm1532_vm6, 1.0, %v10772_v13  ;;  %6957 = vmatmul.mubr.f32.gmra.mrb[6].mxu1 %v1764_v11  ;;  %10781 = vst [vmem:[#allocation26_spill] sm:$0xff] %v8679_v38 }
  0xc5   : > { %8112 = vset.pattern.permute.xlu1 %v10780_v55  ;;  %v1597_v50 = vsel %vm268_vm1, %v8676_v62, 0  ;;  %v470_v35 = vsub.f32 %v8661_v52, %v10613_v18  ;;  %v491_v55 = vand.u32 4294901760, %v490_v20 }
  0xc6   : > { %2825 = vperm.xlu1 %8112, %v2778_v45   ;;  %v8686_v54 = vsub.f32 %v1597_v50, %v1597_v50  ;;  %v1505_v59 = vpop.permute.xlu1 %1504  ;;  %v10614_v45 = vand.u32 4294901760, %v8679_v38 }
  0xc7   : > { %vm1533_vm7 = vcmp.eq.s32.totalorder %v8397_v37, %v1505_v59  ;;  %v471_v11 = vand.u32 4294901760, %v470_v35 }
  0xc8   : > { %10782 = vst [vmem:[#allocation27_spill] sm:$0xff] %v8686_v54  ;;  %v8691_v19 = vsel %vm1533_vm7, 1.0, %v10772_v13  ;;  %v10615_v31 = vand.u32 4294901760, %v8686_v54 }
  0xc9   : > { %10783 = vst [vmem:[#allocation28_spill] sm:$0xff] %v8691_v19  ;;  %v1600_v18 = vsel %vm268_vm1, %v8691_v19, 0  ;;  %6755 = vmatprep.mubr.f32.mxu0 %v471_v11  ;;  %v1520_v11 = vpop.permute.xlu0 %1519 }
  0xca   : > { %8114 = vset.pattern.permute.xlu1 %v10774_v16  ;;  %v8698_v12 = vsub.f32 %v1600_v18, %v1600_v18  ;;  %6756 = vmatmul.mubr.f32.gmra.mrb[8].mxu0 %v481_v9  ;;  %v1773_v60 = vsub.f32 %v8686_v54, %v10615_v31  ;;  %v1793_v9 = vsub.f32 %v8679_v38, %v10614_v45  ;;  %v8722_v18 = vsel %vm234_vm9, 1.0, %v10772_v13 }
  0xcb   : > { %4128 = vperm.xlu1 %8114, %v4081_v34   ;;  %v207_v59 = vpop.permute.xlu1 %206  ;;  %6758 = vmatprep.mubr.f32.mxu0 %v491_v55  ;;  %v8714_v34 = vsel %vm233_vm8, 1.0, %v10772_v13  ;;  %10787 = vst [vmem:[#allocation32_spill] sm:$0xff] %v8722_v18  ;;  %v312_v31 = vsel %vm268_vm1, %v8722_v18, 0  ;;  %vm1538_vm12 = vcmp.eq.s32.totalorder %v8397_v37, %v1520_v11 }
  0xcc   : > { %10784 = vst [vmem:[#allocation29_spill] sm:$0xff] %v8698_v12  ;;  %vm231_vm10 = vcmp.eq.s32.totalorder %v8397_v37, %v207_v59  ;;  %v1774_v20 = vand.u32 4294901760, %v1773_v60  ;;  %v10616_v50 = vand.u32 4294901760, %v8698_v12  ;;  %10786 = vst [vmem:[#allocation31_spill] sm:$0xff] %v8714_v34  ;;  %v309_v59 = vsel %vm268_vm1, %v8714_v34, 0 }
  0xcd   : > { %v8708_v16 = vsel %vm231_vm10, 1.0, %v10772_v13  ;;  %v1794_v45 = vand.u32 4294901760, %v1793_v9  ;;  %v8741_v9 = vsub.f32 %v309_v59, %v309_v59  ;;  %v8745_v38 = vsub.f32 %v312_v31, %v312_v31 }
  0xce   : > { %10785 = vst [vmem:[#allocation30_spill] sm:$0xff] %v8708_v16  ;;  %v303_v56 = vsel %vm268_vm1, %v8708_v16, 0  ;;  %6959 = vmatprep.mubr.f32.mxu1 %v1774_v20  ;;  %v1783_v7 = vsub.f32 %v8698_v12, %v10616_v50 }
  0xcf   : > { %v8724_v35 = vsub.f32 %v303_v56, %v303_v56  ;;  %10790 = vst [vmem:[#allocation35_spill] sm:$0xff] %v8741_v9  ;;  %10792 = vst [vmem:[#allocation37_spill] sm:$0xff] %v8745_v38 }
  0xd0   : > { %v1511_v55 = vpop.permute.xlu1 %1510  ;;  %v1784_v60 = vand.u32 4294901760, %v1783_v7 }
  0xd1   : > { %10788 = vst [vmem:[#allocation33_spill] sm:$0xff] %v8724_v35  ;;  %vm1535_vm11 = vcmp.eq.s32.totalorder %v8397_v37, %v1511_v55  ;;  %v10623_v20 = vand.u32 4294901760, %v8724_v35 }
  0xd2   : > { %v8733_v50 = vsel %vm1535_vm11, 1.0, %v10772_v13  ;;  %6960 = vmatmul.mubr.f32.gmra.mrb[8].mxu1 %v1784_v60  ;;  %v8748_v60 = vsel %vm1538_vm12, 1.0, %v10772_v13 }
  0xd3   : > { %10789 = vst [vmem:[#allocation34_spill] sm:$0xff] %v8733_v50  ;;  %v1606_v56 = vsel %vm268_vm1, %v8733_v50, 0  ;;  %6962 = vmatprep.mubr.f32.mxu1 %v1794_v45  ;;  %v500_v7 = vsub.f32 %v8724_v35, %v10623_v20  ;;  %10793 = vst [vmem:[#allocation38_spill] sm:$0xff] %v8748_v60 }
  0xd4   : > { %v8743_v55 = vsub.f32 %v1606_v56, %v1606_v56  ;;  %v10637_v56 = vand.u32 4294901760, %v8741_v9 }
  0xd5   : > { %v210_v12 = vpop.permute.xlu1 %209  ;;  %v501_v54 = vand.u32 4294901760, %v500_v7  ;;  %v1615_v7 = vsel %vm268_vm1, %v8748_v60, 0 }
  0xd6   : > { %10791 = vst [vmem:[#allocation36_spill] sm:$0xff] %v8743_v55  ;;  %vm232_vm13 = vcmp.eq.s32.totalorder %v8397_v37, %v210_v12  ;;  %v10632_v11 = vand.u32 4294901760, %v8743_v55  ;;  %v10645_v12 = vand.u32 4294901760, %v8745_v38  ;;  %v8768_v40 = vsub.f32 %v1615_v7, %v1615_v7 }
  0xd7   : > { %v8753_v45 = vsel %vm232_vm13, 1.0, %v10772_v13  ;;  %6759 = vmatmul.mubr.f32.gmra.mrb[10].mxu0 %v501_v54 }
  0xd8   : > { %10794 = vst [vmem:[#allocation39_spill] sm:$0xff] %v8753_v45  ;;  %v306_v59 = vsel %vm268_vm1, %v8753_v45, 0  ;;  %v1803_v31 = vsub.f32 %v8743_v55, %v10632_v11  ;;  %v520_v11 = vsub.f32 %v8741_v9, %v10637_v56  ;;  %v10648_v2 = vand.u32 4294901760, %v8768_v40 }
  0xd9   : > { %v8763_v20 = vsub.f32 %v306_v59, %v306_v59 }
  0xda   : > { %v1514_v35 = vpop.permute.xlu1 %1513  ;;  %v1804_v52 = vand.u32 4294901760, %v1803_v31  ;;  %v521_v9 = vand.u32 4294901760, %v520_v11  ;;  %v1833_v11 = vsub.f32 %v8768_v40, %v10648_v2 }
  0xdb   : > { %10795 = vst [vmem:[#allocation40_spill] sm:$0xff] %v8763_v20  ;;  %vm1536_vm14 = vcmp.eq.s32.totalorder %v8397_v37, %v1514_v35  ;;  %v10642_v54 = vand.u32 4294901760, %v8763_v20  ;;  %v530_v35 = vsub.f32 %v8745_v38, %v10645_v12 }
  0xdc   : > { %v8771_v21 = vsel %vm1536_vm14, 1.0, %v10772_v13  ;;  %6963 = vmatmul.mubr.f32.gmra.mrb[10].mxu1 %v1804_v52 }
  0xdd   : > { %10796 = vst [vmem:[#allocation41_spill] sm:$0xff] %v8771_v21  ;;  %v1609_v59 = vsel %vm268_vm1, %v8771_v21, 0  ;;  %v510_v31 = vsub.f32 %v8763_v20, %v10642_v54  ;;  %v531_v20 = vand.u32 4294901760, %v530_v35 }
  0xde   : > { %v8784_v7 = vsub.f32 %v1609_v59, %v1609_v59  ;;  %v1517_v55 = vpop.permute.xlu1 %1516 }
  0xdf   : > { %vm1537_vm15 = vcmp.eq.s32.totalorder %v8397_v37, %v1517_v55  ;;  %v511_v52 = vand.u32 4294901760, %v510_v31 }
  0xe0   : > { %v8789_v56 = vsel %vm1537_vm15, 1.0, %v10772_v13  ;;  %v10649_v46 = vand.u32 4294901760, %v8784_v7 }
  0xe1   : > { %10797 = vst [vmem:[#allocation42_spill] sm:$0xff] %v8789_v56  ;;  %v1612_v54 = vsel %vm268_vm1, %v8789_v56, 0  ;;  %6761 = vmatprep.mubr.f32.mxu0 %v511_v52  ;;  %v1834_v52 = vand.u32 4294901760, %v1833_v11 }
  0xe2   : > { %v8794_v12 = vsub.f32 %v1612_v54, %v1612_v54  ;;  %6762 = vmatmul.mubr.f32.gmra.mrb[12].mxu0 %v521_v9  ;;  %v1813_v55 = vsub.f32 %v8784_v7, %v10649_v46 }
  0xe3   : > { %6764 = vmatprep.mubr.f32.mxu0 %v531_v20  ;;  %v219_v59 = vpop.permute.xlu1 %218 }
  0xe4   : > { %vm235_vm0 = vcmp.eq.s32.totalorder %v8397_v37, %v219_v59  ;;  %v1814_v31 = vand.u32 4294901760, %v1813_v55  ;;  %v10650_v38 = vand.u32 4294901760, %v8794_v12 }
  0xe5   : > { %v8805_v35 = vsel %vm235_vm0, 1.0, %v10772_v13 }
  0xe6   : > { %10798 = vst [vmem:[#allocation43_spill] sm:$0xff] %v8805_v35  ;;  %v315_v9 = vsel %vm268_vm1, %v8805_v35, 0  ;;  %6965 = vmatprep.mubr.f32.mxu1 %v1814_v31  ;;  %v1823_v20 = vsub.f32 %v8794_v12, %v10650_v38 }
  0xe7   : > { %v8812_v54 = vsub.f32 %v315_v9, %v315_v9 }
  0xe8   : > { %v1523_v2 = vpop.permute.xlu1 %1522  ;;  %v1824_v46 = vand.u32 4294901760, %v1823_v20 }
  0xe9   : > { %vm1539_vm2 = vcmp.eq.s32.totalorder %v8397_v37, %v1523_v2  ;;  %v10652_v55 = vand.u32 4294901760, %v8812_v54  ;;  %v10822_v37 = vld [vmem:[#allocation6_spill] sm:$0xff] }
  0xea   : > { %v8817_v59 = vsel %vm1539_vm2, 1.0, %v10772_v13  ;;  %6966 = vmatmul.mubr.f32.gmra.mrb[12].mxu1 %v1824_v46  ;;  %v10818_v13 = vld [vmem:[#allocation35_spill] sm:$0xff] }
  0xeb   : > { %10799 = vst [vmem:[#allocation44_spill] sm:$0xff] %v8817_v59  ;;  %v1618_v31 = vsel %vm268_vm1, %v8817_v59, 0  ;;  %v540_v38 = vsub.f32 %v8812_v54, %v10652_v55  ;;  %6968 = vmatprep.mubr.f32.mxu1 %v1834_v52  ;;  %v10801_v52 = vand.u32 4294901760, %v8314_v44  ;;  %v10806_v44 = vld [vmem:[#allocation20_spill] sm:$0xff]  ;;  %v10811_v55 = vld [vmem:[#allocation23_spill] sm:$0xff] }
  0xec   : > { %v8824_v9 = vsub.f32 %v1618_v31, %v1618_v31 }
  0xed   : > { %v541_v11 = vand.u32 4294901760, %v540_v38  ;;  %v10800_v38 = vand.u32 4294901760, %v8309_v43  ;;  %v10805_v43 = vld [vmem:[#allocation17_spill] sm:$0xff] }
  0xee   : > { %v10651_v20 = vand.u32 4294901760, %v8824_v9 }
  0xef   : > { %6765 = vmatmul.mubr.f32.gmra.mrb[14].mxu0 %v541_v11  ;;  %v8921_v31 = vpack.c.bf16 %v10801_v52, %v10800_v38  ;;  %v10803_v11 = vld [vmem:[#allocation19_spill] sm:$0xff]  ;;  %v10808_v38 = vld [vmem:[#allocation18_spill] sm:$0xff]  ;;  %v10809_v52 = vld [vmem:[#allocation16_spill] sm:$0xff] }
  0xf0   : > { %6777 = vmatprep.mubr.msk.f32.mxu0 %vm268_vm1, %v8470_v10  ;;  %v1843_v46 = vsub.f32 %v8824_v9, %v10651_v20  ;;  %v10810_v20 = vld [vmem:[#allocation21_spill] sm:$0xff] }
  0xf1   : > { %10802 = vst [vmem:[#allocation45_spill] sm:$0xff] %v8921_v31 }
  0xf2   : > { %v1844_v2 = vand.u32 4294901760, %v1843_v46  ;;  %v10804_v46 = vld [vmem:[#allocation14_spill] sm:$0xff] }
  0xf3   : > { %6778 = vmatmul.mubr.msk.f32.vlgmr.msra.gmra.mrb[0].mxu0 %vm268_vm1, %v8494_v15 }
  0xf4   : > { %7568 = vmatpush3.bf16.msra.mxu0 %v8372_v1  ;;  %6780 = vmatprep.mubr.msk.f32.mxu0 %vm268_vm1, %v8520_v28 }
  0xf5   : > { %6969 = vmatmul.mubr.f32.gmra.mrb[14].mxu1 %v1844_v2  ;;  %7570 = vmatprep.subr.bf16.mxu0 %v8384_v22  ;;  %v10807_v2 = vld [vmem:[#allocation25_spill] sm:$0xff] }
  0xf6   : > { %6981 = vmatprep.mubr.msk.f32.mxu1 %vm268_vm1, %v8411_v30 }
  0xf7   : > { %6781 = vmatmul.mubr.msk.f32.gmra.mrb[2].mxu0 %vm268_vm1, %v8433_v25 }
  0xf8   : > { %6783 = vmatprep.mubr.msk.f32.mxu0 %vm268_vm1, %v8487_v57  ;;  %7572 = vmatpush3.bf16.msra.mxu0 %v8384_v22 }
  0xf9   : > { %6982 = vmatmul.mubr.msk.f32.vlgmr.msra.gmra.mrb[0].mxu1 %vm268_vm1, %v8429_v5  ;;  %6809 = vmatprep.subr.mxu0 %v8418_v53 }
  0xfa   : > { %6984 = vmatprep.mubr.msk.f32.mxu1 %vm268_vm1, %v8402_v47  ;;  %7616 = vmatpush3.bf16.msra.mxu1 %v8372_v1  ;;  %v10814_v1 = vld [vmem:[#allocation33_spill] sm:$0xff] }
  0xfb   : > { %6784 = vmatmul.mubr.msk.f32.gmra.mrb[4].mxu0 %vm268_vm1, %v8548_v0  ;;  %7618 = vmatprep.subr.bf16.mxu1 %v8384_v22 }
  0xfc   : > { %6786 = vmatprep.mubr.msk.f32.mxu0 %vm268_vm1, %v8582_v29  ;;  %6810 = vmatpush3.msra.mxu0 %v8418_v53 }
  0xfd   : > { %6985 = vmatmul.mubr.msk.f32.gmra.mrb[2].mxu1 %vm268_vm1, %v8454_v33  ;;  %7574 = vmatprep.subr.bf16.mxu0 %v8207_v17 }
  0xfe   : > { %6987 = vmatprep.mubr.msk.f32.mxu1 %vm268_vm1, %v8523_v48  ;;  %7620 = vmatpush3.bf16.msra.mxu1 %v8384_v22  ;;  %v10813_v22 = vld [vmem:[#allocation27_spill] sm:$0xff] }
  0xff   : > { %6787 = vmatmul.mubr.msk.f32.gmra.mrb[6].mxu0 %vm268_vm1, %v8590_v39  ;;  %7013 = vmatprep.subr.mxu1 %v8418_v53 }
 0x100   : > { %6789 = vmatprep.mubr.msk.f32.mxu0 %vm268_vm1, %v8654_v58 }
 0x101   : > { %6988 = vmatmul.mubr.msk.f32.gmra.mrb[4].mxu1 %vm268_vm1, %v8551_v6 }
 0x102   : > { %6990 = vmatprep.mubr.msk.f32.mxu1 %vm268_vm1, %v8465_v27  ;;  %7014 = vmatpush3.msra.mxu1 %v8418_v53  ;;  %v10812_v53 = vld [vmem:[#allocation22_spill] sm:$0xff] }
 0x103   : > { %6790 = vmatmul.mubr.msk.f32.gmra.mrb[8].mxu0 %vm268_vm1, %v8608_v63  ;;  %7622 = vmatprep.subr.bf16.mxu1 %v8207_v17 }
 0x104   : > { %6792 = vmatprep.mubr.msk.f32.mxu0 %vm268_vm1, %v8639_v8 }
 0x105   : > { %6991 = vmatmul.mubr.msk.f32.gmra.mrb[6].mxu1 %vm268_vm1, %v8621_v41 }
 0x106   : > { %6993 = vmatprep.mubr.msk.f32.mxu1 %vm268_vm1, %v8676_v62 }
 0x107   : > { %6793 = vmatmul.mubr.msk.f32.gmra.mrb[10].mxu0 %vm268_vm1, %v8708_v16  ;;  %v10827_v16 = vand.u32 4294901760, %v8505_v36 }
 0x108   : > { %6795 = vmatprep.mubr.msk.f32.mxu0 %vm268_vm1, %v8753_v45  ;;  %v8962_v45 = vpop.permute.xlu1 %2780 }
 0x109   : > { %6994 = vmatmul.mubr.msk.f32.gmra.mrb[8].mxu1 %vm268_vm1, %v8691_v19 }
 0x10a   : > { %6996 = vmatprep.mubr.msk.f32.mxu1 %vm268_vm1, %v8651_v42 }
 0x10b   : > { %6796 = vmatmul.mubr.msk.f32.gmra.mrb[12].mxu0 %vm268_vm1, %v8714_v34  ;;  %v10824_v34 = vld [vmem:[#allocation7_spill] sm:$0xff] }
 0x10c   : > { %6798 = vmatprep.mubr.msk.f32.mxu0 %vm268_vm1, %v8722_v18  ;;  %v10823_v18 = vand.u32 4294901760, %v10822_v37  ;;  %v10825_v42 = vand.u32 4294901760, %v10824_v34  ;;  %v10829_v37 = vand.u32 4294901760, %v8421_v61  ;;  %v10834_v34 = vand.u32 4294901760, %v8407_v49 }
 0x10d   : > { %6997 = vmatmul.mubr.msk.f32.gmra.mrb[10].mxu1 %vm268_vm1, %v8733_v50  ;;  %v10821_v50 = vand.u32 4294901760, %v8482_v51 }
 0x10e   : > { %6999 = vmatprep.mubr.msk.f32.mxu1 %vm268_vm1, %v8771_v21  ;;  %v10820_v21 = vld [vmem:[#allocation36_spill] sm:$0xff]  ;;  %v8960_v19 = vpack.c.bf16 %v10825_v42, %v10823_v18  ;;  %v10830_v42 = vand.u32 4294901760, %v8475_v32  ;;  %v10840_v18 = vand.u32 4294901760, %v10807_v2 }
 0x10f   : > { %6799 = vmatmul.mubr.msk.f32.gmra.mrb[14].mxu0 %vm268_vm1, %v8805_v35  ;;  %v10819_v35 = vld [vmem:[#allocation37_spill] sm:$0xff] }
 0x110   : > { %6811 = vmatprep.mubr.f32.mxu0 %v8482_v51  ;;  %10826 = vst [vmem:[#allocation19_spill] sm:$0xff] %v8960_v19  ;;  %v10828_v51 = vand.u32 4294901760, %v8533_v4 }
 0x111   : > { %7000 = vmatmul.mubr.msk.f32.gmra.mrb[12].mxu1 %vm268_vm1, %v8789_v56  ;;  %v10817_v56 = vld [vmem:[#allocation26_spill] sm:$0xff] }
 0x112   : > { %7002 = vmatprep.mubr.msk.f32.mxu1 %vm268_vm1, %v8748_v60  ;;  %v10816_v60 = vld [vmem:[#allocation29_spill] sm:$0xff] }
 0x113   : > { %6812 = vmatmul.mubr.f32.vlgmr.msra.gmra.mrb[0].mxu0 %v8505_v36  ;;  %v10831_v36 = vand.u32 4294901760, %v8500_v3 }
 0x114   : > { %7576 = vmatpush3.bf16.msra.mxu0 %v8207_v17  ;;  %6814 = vmatprep.mubr.f32.mxu0 %v8533_v4  ;;  %v10832_v4 = vand.u32 4294901760, %v8441_v14 }
 0x115   : > { %7003 = vmatmul.mubr.msk.f32.gmra.mrb[14].mxu1 %vm268_vm1, %v8817_v59  ;;  %7578 = vmatprep.subr.bf16.mxu0 %v8229_v23  ;;  %v10815_v59 = vld [vmem:[#allocation40_spill] sm:$0xff] }
 0x116   : > { %7015 = vmatprep.mubr.f32.mxu1 %v8421_v61  ;;  %v10835_v61 = vand.u32 4294901760, %v8564_v24 }
 0x117   : > { %6815 = vmatmul.mubr.f32.gmra.mrb[2].mxu0 %v8475_v32  ;;  %v10836_v32 = vand.u32 4294901760, %v10803_v11 }
 0x118   : > { %6817 = vmatprep.mubr.f32.mxu0 %v8500_v3  ;;  %7580 = vmatpush3.bf16.msra.mxu0 %v8229_v23 }
 0x119   : > { %7016 = vmatmul.mubr.f32.vlgmr.msra.gmra.mrb[0].mxu1 %v8441_v14  ;;  %6843 = vmatprep.subr.mxu0 %v8245_v26  ;;  %v10837_v14 = vand.u32 4294901760, %v10804_v46 }
 0x11a   : > { %7018 = vmatprep.mubr.f32.mxu1 %v8407_v49  ;;  %7624 = vmatpush3.bf16.msra.mxu1 %v8207_v17  ;;  %v10838_v49 = vand.u32 4294901760, %v10805_v43 }
 0x11b   : > { %6818 = vmatmul.mubr.f32.gmra.mrb[4].mxu0 %v8564_v24  ;;  %7626 = vmatprep.subr.bf16.mxu1 %v8229_v23  ;;  %v10839_v24 = vand.u32 4294901760, %v10806_v44 }
 0x11c   : > { %6820 = vmatprep.mubr.f32.mxu0 %v10803_v11  ;;  %6844 = vmatpush3.msra.mxu0 %v8245_v26  ;;  %v10841_v11 = vand.u32 4294901760, %v10808_v38 }
 0x11d   : > { %7019 = vmatmul.mubr.f32.gmra.mrb[2].mxu1 %v10804_v46  ;;  %7582 = vmatprep.subr.bf16.mxu0 %v8921_v31 }
 0x11e   : > { %7021 = vmatprep.mubr.f32.mxu1 %v10805_v43  ;;  %7628 = vmatpush3.bf16.msra.mxu1 %v8229_v23  ;;  %v10843_v43 = vand.u32 4294901760, %v10810_v20 }
 0x11f   : > { %6821 = vmatmul.mubr.f32.gmra.mrb[6].mxu0 %v10806_v44  ;;  %7047 = vmatprep.subr.mxu1 %v8245_v26  ;;  %v10844_v44 = vand.u32 4294901760, %v10811_v55 }
 0x120   : > { %6823 = vmatprep.mubr.f32.mxu0 %v10807_v2  ;;  %v10845_v2 = vand.u32 4294901760, %v10812_v53 }
 0x121   : > { %7022 = vmatmul.mubr.f32.gmra.mrb[4].mxu1 %v10808_v38  ;;  %v9020_v38 = vpop.permute.xlu0 %4089 }
 0x122   : > { %7024 = vmatprep.mubr.f32.mxu1 %v10809_v52  ;;  %7048 = vmatpush3.msra.mxu1 %v8245_v26 }
 0x123   : > { %6824 = vmatmul.mubr.f32.gmra.mrb[8].mxu0 %v10810_v20  ;;  %7630 = vmatprep.subr.bf16.mxu1 %v8921_v31  ;;  %v10848_v20 = vand.u32 4294901760, %v10815_v59 }
 0x124   : > { %6826 = vmatprep.mubr.f32.mxu0 %v10811_v55  ;;  %v10850_v55 = vand.u32 4294901760, %v10817_v56 }
 0x125   : > { %7025 = vmatmul.mubr.f32.gmra.mrb[6].mxu1 %v10812_v53  ;;  %v10851_v53 = vand.u32 4294901760, %v10818_v13 }
 0x126   : > { %7027 = vmatprep.mubr.f32.mxu1 %v10813_v22 }
 0x127   : > { %6827 = vmatmul.mubr.f32.gmra.mrb[10].mxu0 %v10814_v1 }
 0x128   : > { %6829 = vmatprep.mubr.f32.mxu0 %v10815_v59  ;;  %v10854_v59 = vand.u32 4294901760, %v8784_v7 }
 0x129   : > { %7028 = vmatmul.mubr.f32.gmra.mrb[8].mxu1 %v10816_v60 }
 0x12a   : > { %7030 = vmatprep.mubr.f32.mxu1 %v10817_v56 }
 0x12b   : > { %6830 = vmatmul.mubr.f32.gmra.mrb[12].mxu0 %v10818_v13  ;;  %v10856_v13 = vand.u32 4294901760, %v8794_v12 }
 0x12c   : > { %6832 = vmatprep.mubr.f32.mxu0 %v10819_v35 }
 0x12d   : > { %7031 = vmatmul.mubr.f32.gmra.mrb[10].mxu1 %v10820_v21 }
 0x12e   : > { %7033 = vmatprep.mubr.f32.mxu1 %v8784_v7  ;;  %v10858_v7 = vand.u32 4294901760, %v8824_v9 }
 0x12f   : > { %6833 = vmatmul.mubr.f32.gmra.mrb[14].mxu0 %v8812_v54 }
 0x130   : > { %6845 = vmatprep.mubr.f32.mxu0 %v10821_v50  ;;  %v8976_v50 = vpop.permute.xlu1 %4083 }
 0x131   : > { %7034 = vmatmul.mubr.f32.gmra.mrb[12].mxu1 %v8794_v12 }
 0x132   : > { %7036 = vmatprep.mubr.f32.mxu1 %v8768_v40 }
 0x133   : > { %6846 = vmatmul.mubr.f32.vlgmr.msra.gmra.mrb[0].mxu0 %v10827_v16  ;;  %v10833_v16 = vld [vmem:[#allocation13_spill] sm:$0xff] }
 0x134   : > { %7584 = vmatpush3.bf16.msra.mxu0 %v8921_v31  ;;  %6848 = vmatprep.mubr.f32.mxu0 %v10828_v51  ;;  %v8995_v3 = vpop.permute.xlu1 %4086  ;;  %v10842_v51 = vand.u32 4294901760, %v10809_v52  ;;  %v10847_v52 = vand.u32 4294901760, %v10814_v1  ;;  %v10853_v1 = vand.u32 4294901760, %v10820_v21 }
 0x135   : > { %7037 = vmatmul.mubr.f32.gmra.mrb[14].mxu1 %v8824_v9  ;;  %7586 = vmatprep.subr.bf16.mxu0 %v8960_v19 }
 0x136   : > { %7049 = vmatprep.mubr.f32.mxu1 %v10829_v37  ;;  %v10846_v37 = vand.u32 4294901760, %v10813_v22  ;;  %v10852_v22 = vand.u32 4294901760, %v10819_v35  ;;  %v10857_v35 = vand.u32 4294901760, %v8768_v40 }
 0x137   : > { %6849 = vmatmul.mubr.f32.gmra.mrb[2].mxu0 %v10830_v42 }
 0x138   : > { %6851 = vmatprep.mubr.f32.mxu0 %v10831_v36  ;;  %7588 = vmatpush3.bf16.msra.mxu0 %v8960_v19  ;;  %v9008_v46 = vpop.permute.xlu1 %2789  ;;  %v10849_v36 = vand.u32 4294901760, %v10816_v60  ;;  %v10855_v60 = vand.u32 4294901760, %v8812_v54 }
 0x139   : > { %7050 = vmatmul.mubr.f32.vlgmr.msra.gmra.mrb[0].mxu1 %v10832_v4  ;;  %6877 = vmatprep.subr.mxu0 %v10833_v16  ;;  %v9036_v4 = vpop.permute.xlu0 %4101 }
 0x13a   : > { %7052 = vmatprep.mubr.f32.mxu1 %v10834_v34  ;;  %7632 = vmatpush3.bf16.msra.mxu1 %v8921_v31 }
 0x13b   : > { %6852 = vmatmul.mubr.f32.gmra.mrb[4].mxu0 %v10835_v61  ;;  %7634 = vmatprep.subr.bf16.mxu1 %v8960_v19 }
 0x13c   : > { %6854 = vmatprep.mubr.f32.mxu0 %v10836_v32  ;;  %6878 = vmatpush3.msra.mxu0 %v10833_v16  ;;  %v9026_v42 = vpop.permute.xlu1 %4092 }
 0x13d   : > { %7053 = vmatmul.mubr.f32.gmra.mrb[2].mxu1 %v10837_v14  ;;  %7590 = vmatprep.subr.bf16.mxu0 %v8207_v17  ;;  %v9052_v56 = vpop.permute.xlu0 %4113  ;;  %v10859_v14 = vld [vmem:[#allocation30_spill] sm:$0xff] }
 0x13e   : > { %7055 = vmatprep.mubr.f32.mxu1 %v10838_v49  ;;  %7636 = vmatpush3.bf16.msra.mxu1 %v8960_v19  ;;  %v10860_v49 = vld [vmem:[#allocation39_spill] sm:$0xff] }
 0x13f   : > { %6855 = vmatmul.mubr.f32.gmra.mrb[6].mxu0 %v10839_v24  ;;  %7081 = vmatprep.subr.mxu1 %v10833_v16  ;;  %v10861_v24 = vld [vmem:[#allocation28_spill] sm:$0xff] }
 0x140   : > { %6857 = vmatprep.mubr.f32.mxu0 %v10840_v18  ;;  %v9042_v34 = vpop.permute.xlu1 %2792 }
 0x141   : > { %7056 = vmatmul.mubr.f32.gmra.mrb[4].mxu1 %v10841_v11  ;;  %v2784_v40 = vpop.permute.xlu0 %2783 }
 0x142   : > { %7058 = vmatprep.mubr.f32.mxu1 %v10842_v51  ;;  %7082 = vmatpush3.msra.mxu1 %v10833_v16  ;;  %v10862_v51 = vld [vmem:[#allocation24_spill] sm:$0xff] }
 0x143   : > { %6858 = vmatmul.mubr.f32.gmra.mrb[8].mxu0 %v10843_v43  ;;  %7638 = vmatprep.subr.bf16.mxu1 %v8207_v17  ;;  %v10863_v43 = vld [vmem:[#allocation31_spill] sm:$0xff] }
 0x144   : > { %6860 = vmatprep.mubr.f32.mxu0 %v10844_v44  ;;  %v9058_v21 = vpop.permute.xlu1 %4095  ;;  %v10864_v44 = vld [vmem:[#allocation32_spill] sm:$0xff] }
 0x145   : > { %7059 = vmatmul.mubr.f32.gmra.mrb[6].mxu1 %v10845_v2  ;;  %v9089_v54 = vpop.permute.xlu0 %2786  ;;  %v10865_v2 = vld [vmem:[#allocation11_spill] sm:$0xff] }
 0x146   : > { %7061 = vmatprep.mubr.f32.mxu1 %v10846_v37  ;;  %vm2827_vm3 = vcmp.eq.s32.totalorder %v10865_v2, %v8962_v45  ;;  %v10866_v37 = vld [vmem:[#allocation34_spill] sm:$0xff]  ;;  %vm4130_vm4 = vcmp.eq.s32.totalorder %v10865_v2, %v8976_v50  ;;  %vm2828_vm5 = vcmp.eq.s32.totalorder %v10865_v2, %v2784_v40  ;;  %vm4132_vm6 = vcmp.eq.s32.totalorder %v10865_v2, %v9020_v38 }
 0x147   : > { %6861 = vmatmul.mubr.f32.gmra.mrb[10].mxu0 %v10847_v52  ;;  %v10867_v52 = vld [vmem:[#allocation41_spill] sm:$0xff]  ;;  %vm4131_vm7 = vcmp.eq.s32.totalorder %v10865_v2, %v8995_v3  ;;  %vm4136_vm8 = vcmp.eq.s32.totalorder %v10865_v2, %v9036_v4  ;;  %vm4140_vm9 = vcmp.eq.s32.totalorder %v10865_v2, %v9052_v56  ;;  %v10872_v4 = vld [vmem:[#allocation44_spill] sm:$0xff]  ;;  %vm2830_vm10 = vcmp.eq.s32.totalorder %v10865_v2, %v9008_v46 }
 0x148   : > { %6863 = vmatprep.mubr.f32.mxu0 %v10848_v20  ;;  %v9076_v12 = vpop.permute.xlu1 %4098  ;;  %v10868_v20 = vld [vmem:[#allocation43_spill] sm:$0xff]  ;;  %vm2829_vm11 = vcmp.eq.s32.totalorder %v10865_v2, %v9089_v54  ;;  %vm4133_vm13 = vcmp.eq.s32.totalorder %v10865_v2, %v9026_v42  ;;  %vm2831_vm0 = vcmp.eq.s32.totalorder %v10865_v2, %v9042_v34 }
 0x149   : > { %7062 = vmatmul.mubr.f32.gmra.mrb[8].mxu1 %v10849_v36  ;;  %v9109_v61 = vpop.permute.xlu0 %2795 }
 0x14a   : > { %7064 = vmatprep.mubr.f32.mxu1 %v10850_v55  ;;  %vm2832_vm12 = vcmp.eq.s32.totalorder %v10865_v2, %v9109_v61 }
 0x14b   : > { %6864 = vmatmul.mubr.f32.gmra.mrb[12].mxu0 %v10851_v53  ;;  %v10869_v53 = vmov 0.0  }
 0x14c   : > { %6866 = vmatprep.mubr.f32.mxu0 %v10852_v22  ;;  %v9091_v9 = vpop.permute.xlu1 %2801  ;;  %v9152_v45 = vsel %vm2827_vm3, 1.0, %v10869_v53  ;;  %v9157_v50 = vsel %vm4130_vm4, 1.0, %v10869_v53  ;;  %v10870_v22 = vld [vmem:[#allocation42_spill] sm:$0xff]  ;;  %v9184_v38 = vsel %vm4132_vm6, 1.0, %v10869_v53  ;;  %v9210_v40 = vsel %vm4140_vm9, 1.0, %v10869_v53 }
 0x14d   : > { %7065 = vmatmul.mubr.f32.gmra.mrb[10].mxu1 %v10853_v1  ;;  %v9126_v18 = vpop.permute.xlu0 %2798  ;;  %v9164_v1 = vsel %vm2828_vm5, 1.0, %v10869_v53  ;;  %10876 = vst [vmem:[#allocation25_spill] sm:$0xff] %v9210_v40  ;;  %v4185_v46 = vsel %vm268_vm1, %v9184_v38, 0  ;;  %v9228_v54 = vsel %vm2830_vm10, 1.0, %v10869_v53  ;;  %v9256_v19 = vsel %vm2832_vm12, 1.0, %v10869_v53 }
 0x14e   : > { %7067 = vmatprep.mubr.f32.mxu1 %v10854_v59  ;;  %v10871_v59 = vld [vmem:[#allocation38_spill] sm:$0xff]  ;;  %v2879_v3 = vsel %vm268_vm1, %v9164_v1, 0  ;;  %vm2833_vm14 = vcmp.eq.s32.totalorder %v10865_v2, %v9126_v18  ;;  %v9250_v16 = vsub.f32 %v4185_v46, %v4185_v46  ;;  %v2885_v46 = vsel %vm268_vm1, %v9228_v54, 0 }
 0x14f   : > { %6867 = vmatmul.mubr.f32.gmra.mrb[14].mxu0 %v10855_v60  ;;  %v2876_v60 = vsel %vm268_vm1, %v9152_v45, 0  ;;  %v9272_v61 = vsel %vm4133_vm13, 1.0, %v10869_v53  ;;  %v9288_v42 = vsel %vm2833_vm14, 1.0, %v10869_v53  ;;  %vm4134_vm5 = vcmp.eq.s32.totalorder %v10865_v2, %v9058_v21 }
 0x150   : > { %6879 = vmatprep.mubr.msk.f32.mxu0 %vm268_vm1, %v8470_v10  ;;  %v9111_v32 = vpop.permute.xlu1 %4104  ;;  %v9195_v56 = vsub.f32 %v2876_v60, %v2876_v60  ;;  %v9218_v60 = vsub.f32 %v2879_v3, %v2879_v3  ;;  %v9242_v3 = vsel %vm2829_vm11, 1.0, %v10869_v53  ;;  %10878 = vst [vmem:[#allocation16_spill] sm:$0xff] %v9250_v16  ;;  %vm4135_vm6 = vcmp.eq.s32.totalorder %v10865_v2, %v9076_v12 }
 0x151   : > { %7068 = vmatmul.mubr.f32.gmra.mrb[12].mxu1 %v10856_v13  ;;  %v9147_v36 = vpop.permute.xlu0 %2807  ;;  %vm4137_vm9 = vcmp.eq.s32.totalorder %v10865_v2, %v9111_v32 }
 0x152   : > { %7070 = vmatprep.mubr.f32.mxu1 %v10857_v35  ;;  %10873 = vst [vmem:[#allocation14_spill] sm:$0xff] %v9195_v56  ;;  %v9198_v35 = vsel %vm4131_vm7, 1.0, %v10869_v53  ;;  %10877 = vst [vmem:[#allocation18_spill] sm:$0xff] %v9218_v60  ;;  %vm2836_vm15 = vcmp.eq.s32.totalorder %v10865_v2, %v9147_v36  ;;  %vm2834_vm7 = vcmp.eq.s32.totalorder %v10865_v2, %v9091_v9 }
 0x153   : > { %6880 = vmatmul.mubr.msk.f32.vlgmr.msra.gmra.mrb[0].mxu0 %vm268_vm1, %v8494_v15 }
 0x154   : > { %7592 = vmatpush3.bf16.msra.mxu0 %v8207_v17  ;;  %6882 = vmatprep.mubr.msk.f32.mxu0 %vm268_vm1, %v8520_v28  ;;  %v9128_v11 = vpop.permute.xlu1 %2804 }
 0x155   : > { %7071 = vmatmul.mubr.f32.gmra.mrb[14].mxu1 %v10858_v7  ;;  %7594 = vmatprep.subr.bf16.mxu0 %v8229_v23 }
 0x156   : > { %7083 = vmatprep.mubr.msk.f32.mxu1 %vm268_vm1, %v8411_v30 }
 0x157   : > { %6883 = vmatmul.mubr.msk.f32.gmra.mrb[2].mxu0 %vm268_vm1, %v8433_v25 }
 0x158   : > { %6885 = vmatprep.mubr.msk.f32.mxu0 %vm268_vm1, %v8487_v57  ;;  %7596 = vmatpush3.bf16.msra.mxu0 %v8229_v23  ;;  %v9149_v55 = vpop.permute.xlu1 %4107 }
 0x159   : > { %7084 = vmatmul.mubr.msk.f32.vlgmr.msra.gmra.mrb[0].mxu1 %vm268_vm1, %v8429_v5  ;;  %6911 = vmatprep.subr.mxu0 %v8245_v26  ;;  %vm4138_vm10 = vcmp.eq.s32.totalorder %v10865_v2, %v9149_v55 }
 0x15a   : > { %7086 = vmatprep.mubr.msk.f32.mxu1 %vm268_vm1, %v8402_v47  ;;  %7640 = vmatpush3.bf16.msra.mxu1 %v8207_v17 }
 0x15b   : > { %6886 = vmatmul.mubr.msk.f32.gmra.mrb[4].mxu0 %vm268_vm1, %v8548_v0  ;;  %7642 = vmatprep.subr.bf16.mxu1 %v8229_v23 }
 0x15c   : > { %6888 = vmatprep.mubr.msk.f32.mxu0 %vm268_vm1, %v8582_v29  ;;  %6912 = vmatpush3.msra.mxu0 %v8245_v26  ;;  %v9193_v13 = vpop.permute.xlu1 %4110 }
 0x15d   : > { %7087 = vmatmul.mubr.msk.f32.gmra.mrb[2].mxu1 %vm268_vm1, %v8454_v33  ;;  %7646 = vmatprep.subr.bf16.mxu0 %v8207_v17  ;;  %vm4139_vm13 = vcmp.eq.s32.totalorder %v10865_v2, %v9193_v13 }
 0x15e   : > { %7089 = vmatprep.mubr.msk.f32.mxu1 %vm268_vm1, %v8523_v48  ;;  %7644 = vmatpush3.bf16.msra.mxu1 %v8229_v23 }
 0x15f   : > { %6889 = vmatmul.mubr.msk.f32.gmra.mrb[6].mxu0 %vm268_vm1, %v8590_v39  ;;  %7115 = vmatprep.subr.mxu1 %v8245_v26 }
 0x160   : > { %6891 = vmatprep.mubr.msk.f32.mxu0 %vm268_vm1, %v8654_v58 }
 0x161   : > { %7090 = vmatmul.mubr.msk.f32.gmra.mrb[4].mxu1 %vm268_vm1, %v8551_v6 }
 0x162   : > { %7092 = vmatprep.mubr.msk.f32.mxu1 %vm268_vm1, %v8465_v27  ;;  %7116 = vmatpush3.msra.mxu1 %v8245_v26 }
 0x163   : > { %6892 = vmatmul.mubr.msk.f32.gmra.mrb[8].mxu0 %vm268_vm1, %v8608_v63  ;;  %7694 = vmatprep.subr.bf16.mxu1 %v8207_v17 }
 0x164   : > { %6894 = vmatprep.mubr.msk.f32.mxu0 %vm268_vm1, %v8639_v8 }
 0x165   : > { %7093 = vmatmul.mubr.msk.f32.gmra.mrb[6].mxu1 %vm268_vm1, %v8621_v41 }
 0x166   : > { %7095 = vmatprep.mubr.msk.f32.mxu1 %vm268_vm1, %v8676_v62 }
 0x167   : > { %6895 = vmatmul.mubr.msk.f32.gmra.mrb[10].mxu0 %vm268_vm1, %v10859_v14 }
 0x168   : > { %6897 = vmatprep.mubr.msk.f32.mxu0 %vm268_vm1, %v10860_v49 }
 0x169   : > { %7096 = vmatmul.mubr.msk.f32.gmra.mrb[8].mxu1 %vm268_vm1, %v10861_v24 }
 0x16a   : > { %7098 = vmatprep.mubr.msk.f32.mxu1 %vm268_vm1, %v10862_v51 }
 0x16b   : > { %6898 = vmatmul.mubr.msk.f32.gmra.mrb[12].mxu0 %vm268_vm1, %v10863_v43 }
 0x16c   : > { %6900 = vmatprep.mubr.msk.f32.mxu0 %vm268_vm1, %v10864_v44 }
 0x16d   : > { %7099 = vmatmul.mubr.msk.f32.gmra.mrb[10].mxu1 %vm268_vm1, %v10866_v37 }
 0x16e   : > { %7101 = vmatprep.mubr.msk.f32.mxu1 %vm268_vm1, %v10867_v52 }
 0x16f   : > { %6901 = vmatmul.mubr.msk.f32.gmra.mrb[14].mxu0 %vm268_vm1, %v10868_v20 }
 0x170   : > { %6913 = vmatprep.mubr.msk.f32.mxu0 %vm268_vm1, %v8470_v10  ;;  %v4179_v10 = vsel %vm268_vm1, %v9157_v50, 0 }
 0x171   : > { %7102 = vmatmul.mubr.msk.f32.gmra.mrb[12].mxu1 %vm268_vm1, %v10870_v22  ;;  %v9207_v7 = vsub.f32 %v4179_v10, %v4179_v10  ;;  %v4209_v10 = vsel %vm268_vm1, %v9210_v40, 0  ;;  %v10881_v40 = vld [vmem:[#allocation5_spill] sm:$0xff] }
 0x172   : > { %7104 = vmatprep.mubr.msk.f32.mxu1 %vm268_vm1, %v10871_v59 }
 0x173   : > { %6914 = vmatmul.mubr.msk.f32.vlgmr.msra.gmra.mrb[0].mxu0 %vm268_vm1, %v8494_v15  ;;  %v9190_v15 = vpop.permute.xlu0 %2810  ;;  %10875 = vst [vmem:[#allocation20_spill] sm:$0xff] %v9207_v7 }
 0x174   : > { %7648 = vmatpush3.bf16.msra.mxu0 %v8207_v17  ;;  %6916 = vmatprep.mubr.msk.f32.mxu0 %vm268_vm1, %v8520_v28  ;;  %v9203_v28 = vsel %vm4136_vm8, 1.0, %v10869_v53  ;;  %vm2837_vm2 = vcmp.eq.s32.totalorder %v10865_v2, %v9190_v15  ;;  %vm2835_vm8 = vcmp.eq.s32.totalorder %v10865_v2, %v9128_v11 }
 0x175   : > { %7105 = vmatmul.mubr.msk.f32.gmra.mrb[14].mxu1 %vm268_vm1, %v10872_v4  ;;  %7650 = vmatprep.subr.bf16.mxu0 %v8229_v23  ;;  %10874 = vst [vmem:[#allocation17_spill] sm:$0xff] %v9203_v28 }
 0x176   : > { %7117 = vmatprep.mubr.msk.f32.mxu1 %vm268_vm1, %v8411_v30  ;;  %v4182_v30 = vsel %vm268_vm1, %v9198_v35, 0 }
 0x177   : > { %6917 = vmatmul.mubr.msk.f32.gmra.mrb[2].mxu0 %vm268_vm1, %v8433_v25  ;;  %v4197_v25 = vsel %vm268_vm1, %v9203_v28, 0  ;;  %v2820_v31 = vpop.permute.xlu0 %2819  ;;  %v4188_v28 = vsel %vm268_vm1, %v9272_v61, 0 }
 0x178   : > { %6919 = vmatprep.mubr.msk.f32.mxu0 %vm268_vm1, %v8487_v57  ;;  %7652 = vmatpush3.bf16.msra.mxu0 %v8229_v23  ;;  %v9237_v57 = vpop.permute.xlu1 %2813  ;;  %vm2840_vm3 = vcmp.eq.s32.totalorder %v10865_v2, %v2820_v31 }
 0x179   : > { %7118 = vmatmul.mubr.msk.f32.vlgmr.msra.gmra.mrb[0].mxu1 %vm268_vm1, %v8429_v5  ;;  %7149 = vmatprep.subr.mxu0 %v8245_v26  ;;  %v9264_v5 = vsub.f32 %v4182_v30, %v4182_v30  ;;  %v9280_v30 = vsub.f32 %v4209_v10, %v4209_v10  ;;  %v9311_v10 = vsub.f32 %v2885_v46, %v2885_v46 }
 0x17a   : > { %7120 = vmatprep.mubr.msk.f32.mxu1 %vm268_vm1, %v8402_v47  ;;  %7696 = vmatpush3.bf16.msra.mxu1 %v8207_v17  ;;  %v2882_v47 = vsel %vm268_vm1, %v9242_v3, 0  ;;  %vm2838_vm11 = vcmp.eq.s32.totalorder %v10865_v2, %v9237_v57 }
 0x17b   : > { %6920 = vmatmul.mubr.msk.f32.gmra.mrb[4].mxu0 %vm268_vm1, %v8548_v0  ;;  %7698 = vmatprep.subr.bf16.mxu1 %v8229_v23  ;;  %10879 = vst [vmem:[#allocation21_spill] sm:$0xff] %v9264_v5  ;;  %v9278_v0 = vsub.f32 %v4197_v25, %v4197_v25  ;;  %v9301_v25 = vsel %vm2836_vm15, 1.0, %v10869_v53  ;;  %v9333_v17 = vsub.f32 %v2882_v47, %v2882_v47  ;;  %v2823_v47 = vpop.permute.xlu0 %2822 }
 0x17c   : > { %6922 = vmatprep.mubr.msk.f32.mxu0 %vm268_vm1, %v8582_v29  ;;  %7150 = vmatpush3.msra.mxu0 %v8245_v26  ;;  %v2891_v29 = vsel %vm268_vm1, %v9256_v19, 0  ;;  %v9319_v36 = vpop.permute.xlu1 %4116  ;;  %vm2841_vm4 = vcmp.eq.s32.totalorder %v10865_v2, %v2823_v47  ;;  %v10891_v47 = vand.u32 4294901760, %v9250_v16 }
 0x17d   : > { %10880 = vst [vmem:[#allocation23_spill] sm:$0xff] %v9278_v0  ;;  %7121 = vmatmul.mubr.msk.f32.gmra.mrb[2].mxu1 %vm268_vm1, %v8454_v33  ;;  %7654 = vmatprep.subr.bf16.mxu0 %v10881_v40  ;;  %v10882_v33 = vand.u32 4294901760, %v9195_v56  ;;  %v9345_v46 = vsub.f32 %v2891_v29, %v2891_v29  ;;  %v10892_v15 = vand.u32 4294901760, %v9278_v0  ;;  %v10897_v32 = vand.u32 4294901760, %v9333_v17 }
 0x17e   : > { %7123 = vmatprep.mubr.msk.f32.mxu1 %vm268_vm1, %v8523_v48  ;;  %7700 = vmatpush3.bf16.msra.mxu1 %v8229_v23  ;;  %v10883_v48 = vand.u32 4294901760, %v9207_v7  ;;  %v10884_v23 = vand.u32 4294901760, %v9218_v60  ;;  %vm4141_vm14 = vcmp.eq.s32.totalorder %v10865_v2, %v9319_v36 }
 0x17f   : > { %v9309_v18 = vsub.f32 %v9195_v56, %v10882_v33  ;;  %6923 = vmatmul.mubr.msk.f32.gmra.mrb[6].mxu0 %vm268_vm1, %v8590_v39  ;;  %7353 = vmatprep.subr.mxu1 %v8245_v26  ;;  %v2894_v39 = vsel %vm268_vm1, %v9288_v42, 0  ;;  %10885 = vst [vmem:[#allocation22_spill] sm:$0xff] %v9345_v46 }
 0x180   : > { %v9325_v33 = vsub.f32 %v9207_v7, %v10883_v48  ;;  %v9331_v56 = vsub.f32 %v9218_v60, %v10884_v23  ;;  %6925 = vmatprep.mubr.msk.f32.mxu0 %vm268_vm1, %v8654_v58  ;;  %v9343_v48 = vsel %vm2831_vm0, 1.0, %v10869_v53  ;;  %v2903_v23 = vsel %vm268_vm1, %v9301_v25, 0 }
 0x181   : > { %7124 = vmatmul.mubr.msk.f32.gmra.mrb[4].mxu1 %vm268_vm1, %v8551_v6  ;;  %v9352_v60 = vsub.f32 %v4188_v28, %v4188_v28  ;;  %v9358_v58 = vsel %vm2837_vm2, 1.0, %v10869_v53  ;;  %v9365_v34 = vsub.f32 %v2894_v39, %v2894_v39  ;;  %v10888_v7 = vand.u32 4294901760, %v9264_v5 }
 0x182   : > { %7126 = vmatprep.mubr.msk.f32.mxu1 %vm268_vm1, %v8465_v27  ;;  %7354 = vmatpush3.msra.mxu1 %v8245_v26  ;;  %v2888_v39 = vsel %vm268_vm1, %v9343_v48, 0  ;;  %v9380_v6 = vsub.f32 %v2903_v23, %v2903_v23  ;;  %v9396_v23 = vpop.permute.xlu1 %2816  ;;  %v9411_v28 = vsub.f32 %v9278_v0, %v10892_v15  ;;  %v9432_v15 = vsel %vm4134_vm5, 1.0, %v10869_v53 }
 0x183   : > { %10886 = vst [vmem:[#allocation27_spill] sm:$0xff] %v9352_v60  ;;  %10887 = vst [vmem:[#allocation33_spill] sm:$0xff] %v9365_v34  ;;  %6926 = vmatmul.mubr.msk.f32.gmra.mrb[8].mxu0 %vm268_vm1, %v8608_v63  ;;  %7702 = vmatprep.subr.bf16.mxu1 %v10881_v40  ;;  %v9376_v27 = vsub.f32 %v9264_v5, %v10888_v7  ;;  %v2906_v63 = vsel %vm268_vm1, %v9358_v58, 0  ;;  %v9392_v7 = vsel %vm2840_vm3, 1.0, %v10869_v53  ;;  %v10709_v31 = vand.u32 4294901760, %v9352_v60 }
 0x184   : > { %10889 = vst [vmem:[#allocation40_spill] sm:$0xff] %v9380_v6  ;;  %6928 = vmatprep.mubr.msk.f32.mxu0 %vm268_vm1, %v8639_v8  ;;  %10890 = vst [vmem:[#allocation29_spill] sm:$0xff] %v9392_v7  ;;  %v9401_v8 = vsub.f32 %v9250_v16, %v10891_v47  ;;  %v9414_v29 = vsub.f32 %v2888_v39, %v2888_v39  ;;  %v9419_v47 = vsel %vm2841_vm4, 1.0, %v10869_v53  ;;  %v2915_v9 = vsel %vm268_vm1, %v9392_v7, 0 }
 0x185   : > { %7127 = vmatmul.mubr.msk.f32.gmra.mrb[6].mxu1 %vm268_vm1, %v8621_v41  ;;  %10894 = vst [vmem:[#allocation35_spill] sm:$0xff] %v9419_v47  ;;  %v9434_v39 = vsub.f32 %v2906_v63, %v2906_v63  ;;  %v9442_v41 = vsel %vm4135_vm6, 1.0, %v10869_v53  ;;  %v4191_v21 = vsel %vm268_vm1, %v9432_v15, 0  ;;  %v9465_v63 = vsub.f32 %v2915_v9, %v2915_v9 }
 0x186   : > { %7129 = vmatprep.mubr.msk.f32.mxu1 %vm268_vm1, %v8676_v62  ;;  %10893 = vst [vmem:[#allocation26_spill] sm:$0xff] %v9414_v29  ;;  %v10895_v62 = vand.u32 4294901760, %v9311_v10  ;;  %v9469_v0 = vpop.permute.xlu1 %4119  ;;  %v9481_v9 = vsel %vm2835_vm8, 1.0, %v10869_v53  ;;  %v10714_v11 = vand.u32 4294901760, %v9365_v34  ;;  %vm2839_vm12 = vcmp.eq.s32.totalorder %v10865_v2, %v9396_v23 }
 0x187   : > { %6929 = vmatmul.mubr.msk.f32.gmra.mrb[10].mxu0 %vm268_vm1, %v10859_v14  ;;  %10896 = vst [vmem:[#allocation37_spill] sm:$0xff] %v9434_v39  ;;  %v9460_v14 = vsub.f32 %v9352_v60, %v10709_v31  ;;  %v4194_v31 = vsel %vm268_vm1, %v9442_v41, 0  ;;  %v9496_v60 = vsub.f32 %v4191_v21, %v4191_v21  ;;  %v10901_v21 = vand.u32 4294901760, %v9414_v29 }
 0x188   : > { %v9426_v12 = vsub.f32 %v9311_v10, %v10895_v62  ;;  %6931 = vmatprep.mubr.msk.f32.mxu0 %vm268_vm1, %v10860_v49  ;;  %v9451_v62 = vsel %vm2834_vm7, 1.0, %v10869_v53  ;;  %v2918_v49 = vsel %vm268_vm1, %v9419_v47, 0  ;;  %v9503_v26 = vsub.f32 %v4194_v31, %v4194_v31 }
 0x189   : > { %7130 = vmatmul.mubr.msk.f32.gmra.mrb[8].mxu1 %vm268_vm1, %v10861_v24  ;;  %v2897_v24 = vsel %vm268_vm1, %v9451_v62, 0  ;;  %v9488_v16 = vsub.f32 %v2918_v49, %v2918_v49  ;;  %v10900_v31 = vand.u32 4294901760, %v9309_v18  ;;  %v10902_v49 = vand.u32 4294901760, %v9345_v46 }
 0x18a   : > { %7132 = vmatprep.mubr.msk.f32.mxu1 %vm268_vm1, %v10862_v51  ;;  %v3016_v51 = vsub.f32 %v9333_v17, %v10897_v32  ;;  %10898 = vst [vmem:[#allocation36_spill] sm:$0xff] %v9503_v26  ;;  %v2900_v32 = vsel %vm268_vm1, %v9481_v9, 0  ;;  %v9531_v57 = vpop.permute.xlu1 %4122  ;;  %v3056_v18 = vsub.f32 %v9365_v34, %v10714_v11  ;;  %v4126_v34 = vpop.permute.xlu0 %4125  ;;  %vm4142_vm15 = vcmp.eq.s32.totalorder %v10865_v2, %v9469_v0 }
 0x18b   : > { %6932 = vmatmul.mubr.msk.f32.gmra.mrb[12].mxu0 %vm268_vm1, %v10863_v43  ;;  %v3046_v43 = vsub.f32 %v9345_v46, %v10902_v49  ;;  %v9541_v49 = vsel %vm4138_vm10, 1.0, %v10869_v53  ;;  %v10909_v46 = vand.u32 4294901760, %v9496_v60  ;;  %vm4144_vm2 = vcmp.eq.s32.totalorder %v10865_v2, %v4126_v34 }
 0x18c   : > { %6934 = vmatprep.mubr.msk.f32.mxu0 %vm268_vm1, %v10864_v44  ;;  %v3036_v44 = vsub.f32 %v9414_v29, %v10901_v21  ;;  %v3017_v55 = vand.u32 4294901760, %v3016_v51  ;;  %v10904_v51 = vand.u32 4294901760, %v9380_v6  ;;  %v9558_v21 = vsel %vm2839_vm12, 1.0, %v10869_v53 }
 0x18d   : > { %7133 = vmatmul.mubr.msk.f32.gmra.mrb[10].mxu1 %vm268_vm1, %v10866_v37  ;;  %v9506_v37 = vsel %vm4137_vm9, 1.0, %v10869_v53  ;;  %v4339_v5 = vsub.f32 %v9496_v60, %v10909_v46  ;;  %v9611_v46 = vsel %vm4141_vm14, 1.0, %v10869_v53  ;;  %vm4143_vm3 = vcmp.eq.s32.totalorder %v10865_v2, %v9531_v57 }
 0x18e   : > { %7135 = vmatprep.mubr.msk.f32.mxu1 %vm268_vm1, %v10867_v52  ;;  %v9514_v52 = vsub.f32 %v2897_v24, %v2897_v24  ;;  %v4200_v24 = vsel %vm268_vm1, %v9506_v37, 0  ;;  %v2826_v13 = vpop.permute.xlu1 %2825  ;;  %10912 = vst [vmem:[#allocation30_spill] sm:$0xff] %v9611_v46  ;;  %v10916_v36 = vand.u32 4294901760, %v9401_v8  ;;  %v4212_v8 = vsel %vm268_vm1, %v9611_v46, 0 }
 0x18f   : > { %6935 = vmatmul.mubr.msk.f32.gmra.mrb[14].mxu0 %vm268_vm1, %v10868_v20  ;;  %v3007_v20 = vand.u32 4294901760, %v9331_v56  ;;  %v9567_v23 = vsub.f32 %v4200_v24, %v4200_v24  ;;  %v9572_v56 = vsel %vm4139_vm13, 1.0, %v10869_v53  ;;  %v10907_v24 = vand.u32 4294901760, %v9325_v33 }
 0x190   : > { %10899 = vst [vmem:[#allocation6_spill] sm:$0xff] %v9514_v52  ;;  %7151 = vmatprep.mubr.f32.mxu0 %v10900_v31  ;;  %v9538_v31 = vsub.f32 %v2900_v32, %v2900_v32  ;;  %v9555_v32 = vsub.f32 %v9380_v6, %v10904_v51  ;;  %v4203_v51 = vsel %vm268_vm1, %v9541_v49, 0  ;;  %v10910_v33 = vand.u32 4294901760, %v9503_v26 }
 0x191   : > { %7136 = vmatmul.mubr.msk.f32.gmra.mrb[12].mxu1 %vm268_vm1, %v10870_v22  ;;  %v9548_v22 = vsel %vm2838_vm11, 1.0, %v10869_v53  ;;  %v10911_v29 = vand.u32 4294901760, %v9514_v52  ;;  %vm2842_vm0 = vcmp.eq.s32.totalorder %v10865_v2, %v2826_v13  ;;  %v9658_v13 = vsel %vm4143_vm3, 1.0, %v10869_v53 }
 0x192   : > { %10903 = vst [vmem:[#allocation7_spill] sm:$0xff] %v9538_v31  ;;  %7138 = vmatprep.mubr.msk.f32.mxu1 %vm268_vm1, %v10871_v59  ;;  %v3037_v59 = vand.u32 4294901760, %v3036_v44  ;;  %v10906_v44 = vld [vmem:[#allocation8_spill] sm:$0xff]  ;;  %v2909_v6 = vsel %vm268_vm1, %v9548_v22, 0  ;;  %v9639_v0 = vsel %vm2842_vm0, 1.0, %v10869_v53  ;;  %10920 = vst [vmem:[#allocation31_spill] sm:$0xff] %v9658_v13 }
 0x193   : > { %7152 = vmatmul.mubr.f32.vlgmr.msra.gmra.mrb[16].mxu0 %v3007_v20  ;;  %v10905_v20 = vand.u32 4294901760, %v9434_v39  ;;  %10918 = vst [vmem:[#allocation28_spill] sm:$0xff] %v9639_v0  ;;  %vm5786_vm5 = vcmask 261120   ;;  %vm5803_vm6 = vcmask 392192   ;;  %vm5820_vm7 = vcmask 523264  }
 0x194   : > { %7656 = vmatpush3.bf16.msra.mxu0 %v10881_v40  ;;  %7154 = vmatprep.mubr.f32.mxu0 %v3017_v55  ;;  %v3047_v55 = vand.u32 4294901760, %v3046_v43  ;;  %v10908_v43 = vand.u32 4294901760, %v9426_v12  ;;  %v3066_v12 = vsub.f32 %v9514_v52, %v10911_v29  ;;  %v4129_v29 = vpop.permute.xlu1 %4128  ;;  %vm5837_vm8 = vcmask 785408  }
 0x195   : > { %v9565_v11 = vsub.f32 %v9434_v39, %v10905_v20  ;;  %7139 = vmatmul.mubr.msk.f32.gmra.mrb[14].mxu1 %vm268_vm1, %v10872_v4  ;;  %7658 = vmatprep.subr.bf16.mxu0 %v10906_v44  ;;  %v3057_v20 = vand.u32 4294901760, %v3056_v18  ;;  %v2912_v4 = vsel %vm268_vm1, %v9558_v21, 0  ;;  %v4349_v18 = vsub.f32 %v9503_v26, %v10910_v33  ;;  %v10914_v33 = vld [vmem:[#allocation15_spill] sm:$0xff] }
 0x196   : > { %7355 = vmatprep.mubr.f32.mxu1 %v10907_v24  ;;  %v9596_v24 = vsub.f32 %v4203_v51, %v4203_v51  ;;  %v4206_v39 = vsel %vm268_vm1, %v9572_v56, 0  ;;  %v10913_v51 = vand.u32 4294901760, %v9376_v27  ;;  %v9618_v26 = vsub.f32 %v2912_v4, %v2912_v4 }
 0x197   : > { %7155 = vmatmul.mubr.f32.gmra.mrb[18].mxu0 %v10908_v43  ;;  %v9605_v43 = vsub.f32 %v2909_v6, %v2909_v6  ;;  %v9624_v6 = vsel %vm4142_vm15, 1.0, %v10869_v53  ;;  %v10917_v27 = vand.u32 4294901760, %v9538_v31  ;;  %v9634_v4 = vsub.f32 %v4206_v39, %v4206_v39 }
 0x198   : > { %7157 = vmatprep.mubr.f32.mxu0 %v3037_v59  ;;  %7660 = vmatpush3.bf16.msra.mxu0 %v10906_v44  ;;  %10915 = vst [vmem:[#allocation39_spill] sm:$0xff] %v9624_v6  ;;  %v4340_v59 = vand.u32 4294901760, %v4339_v5  ;;  %v4350_v52 = vand.u32 4294901760, %v4349_v18  ;;  %v9648_v39 = vsel %vm4144_vm2, 1.0, %v10869_v53  ;;  %vm4145_vm4 = vcmp.eq.s32.totalorder %v10865_v2, %v4129_v29  ;;  %v10922_v18 = vld [vmem:[#allocation9_spill] sm:$0xff] }
 0x199   : > { %7356 = vmatmul.mubr.f32.vlgmr.msra.gmra.mrb[16].mxu1 %v10913_v51  ;;  %7183 = vmatprep.subr.mxu0 %v10914_v33  ;;  %v3076_v51 = vsub.f32 %v9538_v31, %v10917_v27  ;;  %10919 = vst [vmem:[#allocation24_spill] sm:$0xff] %v9648_v39  ;;  %v4215_v5 = vsel %vm268_vm1, %v9624_v6, 0  ;;  %v10734_v34 = vand.u32 4294901760, %v9605_v43  ;;  %v2921_v27 = vsel %vm268_vm1, %v9639_v0, 0 }
 0x19a   : > { %7358 = vmatprep.mubr.f32.mxu1 %v10916_v36  ;;  %7704 = vmatpush3.bf16.msra.mxu1 %v10881_v40  ;;  %v10923_v40 = vand.u32 4294901760, %v9567_v23  ;;  %v10733_v57 = vand.u32 4294901760, %v9618_v26  ;;  %v3097_v2 = vand.u32 4294901760, %v9565_v11  ;;  %v10735_v29 = vand.u32 4294901760, %v9465_v63 }
 0x19b   : > { %7158 = vmatmul.mubr.f32.gmra.mrb[20].mxu0 %v3047_v55  ;;  %7706 = vmatprep.subr.bf16.mxu1 %v10906_v44  ;;  %v10921_v55 = vand.u32 4294901760, %v9460_v14  ;;  %v3077_v36 = vand.u32 4294901760, %v3076_v51  ;;  %v9671_v14 = vsub.f32 %v4212_v8, %v4212_v8  ;;  %v9679_v51 = vsel %vm4145_vm4, 1.0, %v10869_v53 }
 0x19c   : > { %7160 = vmatprep.mubr.f32.mxu0 %v3057_v20  ;;  %7184 = vmatpush3.msra.mxu0 %v10914_v33  ;;  %v3067_v20 = vand.u32 4294901760, %v3066_v12  ;;  %v4369_v31 = vsub.f32 %v9567_v23, %v10923_v40  ;;  %v4221_v12 = vsel %vm268_vm1, %v9648_v39, 0  ;;  %10924 = vst [vmem:[#allocation32_spill] sm:$0xff] %v9679_v51  ;;  %v9682_v40 = vsub.f32 %v4215_v5, %v4215_v5 }
 0x19d   : > { %7359 = vmatmul.mubr.f32.gmra.mrb[18].mxu1 %v10921_v55  ;;  %7662 = vmatprep.subr.bf16.mxu0 %v10922_v18  ;;  %v3087_v8 = vand.u32 4294901760, %v9555_v32  ;;  %v10925_v55 = vand.u32 4294901760, %v9596_v24  ;;  %v3106_v53 = vsub.f32 %v9605_v43, %v10734_v34  ;;  %v10926_v5 = vand.u32 4294901760, %v9411_v28 }
 0x19e   : > { %7361 = vmatprep.mubr.f32.mxu1 %v4340_v59  ;;  %7708 = vmatpush3.bf16.msra.mxu1 %v10906_v44  ;;  %v4218_v44 = vsel %vm268_vm1, %v9658_v13, 0  ;;  %v9690_v59 = vsub.f32 %v2921_v27, %v2921_v27  ;;  %v3116_v32 = vsub.f32 %v9618_v26, %v10733_v57  ;;  %v10927_v28 = vand.u32 4294901760, %v9634_v4 }
 0x19f   : > { %7161 = vmatmul.mubr.f32.gmra.mrb[22].mxu0 %v3067_v20  ;;  %7387 = vmatprep.subr.mxu1 %v10914_v33  ;;  %v4379_v20 = vsub.f32 %v9596_v24, %v10925_v55  ;;  %v9708_v27 = vsub.f32 %v4218_v44, %v4218_v44  ;;  %v4370_v55 = vand.u32 4294901760, %v4369_v31  ;;  %v10928_v34 = vand.u32 4294901760, %v9280_v30 }
 0x1a0   : > { %7163 = vmatprep.mubr.f32.mxu0 %v3077_v36  ;;  %v9699_v36 = vsub.f32 %v4221_v12, %v4221_v12  ;;  %v4389_v12 = vsub.f32 %v9634_v4, %v10927_v28  ;;  %v3107_v44 = vand.u32 4294901760, %v3106_v53  ;;  %v3126_v31 = vsub.f32 %v9465_v63, %v10735_v29 }
 0x1a1   : > { %7362 = vmatmul.mubr.f32.gmra.mrb[20].mxu1 %v4350_v52  ;;  %v4224_v52 = vsel %vm268_vm1, %v9679_v51, 0  ;;  %v4380_v57 = vand.u32 4294901760, %v4379_v20  ;;  %v4399_v11 = vsub.f32 %v9280_v30, %v10928_v34  ;;  %v10929_v20 = vand.u32 4294901760, %v9488_v16 }
 0x1a2   : > { %7364 = vmatprep.mubr.f32.mxu1 %v10926_v5  ;;  %7388 = vmatpush3.msra.mxu1 %v10914_v33  ;;  %v3117_v5 = vand.u32 4294901760, %v3116_v32  ;;  %v4390_v33 = vand.u32 4294901760, %v4389_v12  ;;  %v10930_v53 = vand.u32 4294901760, %v9671_v14  ;;  %v10931_v28 = vand.u32 4294901760, %v9682_v40 }
 0x1a3   : > { %7164 = vmatmul.mubr.f32.gmra.mrb[24].mxu0 %v3087_v8  ;;  %7710 = vmatprep.subr.bf16.mxu1 %v10922_v18  ;;  %v9719_v8 = vsub.f32 %v4224_v52, %v4224_v52  ;;  %v4400_v29 = vand.u32 4294901760, %v4399_v11  ;;  %v3127_v32 = vand.u32 4294901760, %v3126_v31 }
 0x1a4   : > { %7166 = vmatprep.mubr.f32.mxu0 %v3097_v2  ;;  %v3136_v2 = vsub.f32 %v9488_v16, %v10929_v20  ;;  %v4409_v52 = vsub.f32 %v9671_v14, %v10930_v53  ;;  %v10932_v20 = vand.u32 4294901760, %v9690_v59  ;;  %v10933_v53 = vand.u32 4294901760, %v9699_v36 }
 0x1a5   : > { %7365 = vmatmul.mubr.f32.gmra.mrb[22].mxu1 %v4370_v55  ;;  %v10736_v12 = vand.u32 4294901760, %v9719_v8 }
 0x1a6   : > { %7367 = vmatprep.mubr.f32.mxu1 %v4380_v57  ;;  %v4419_v57 = vsub.f32 %v9682_v40, %v10931_v28  ;;  %v3146_v34 = vsub.f32 %v9690_v59, %v10932_v20  ;;  %v4439_v55 = vsub.f32 %v9699_v36, %v10933_v53  ;;  %v4410_v11 = vand.u32 4294901760, %v4409_v52  ;;  %v10941_v53 = vld [vmem:[#allocation18_spill] sm:$0xff] }
 0x1a7   : > { %7167 = vmatmul.mubr.f32.gmra.mrb[26].mxu0 %v3107_v44  ;;  %v3137_v44 = vand.u32 4294901760, %v3136_v2  ;;  %v4449_v20 = vsub.f32 %v9719_v8, %v10736_v12  ;;  %v10953_v12 = vld [vmem:[#allocation7_spill] sm:$0xff] }
 0x1a8   : > { %7169 = vmatprep.mubr.f32.mxu0 %v3117_v5  ;;  %v10934_v5 = vand.u32 4294901760, %v9708_v27  ;;  %v3147_v31 = vand.u32 4294901760, %v3146_v34  ;;  %v10935_v34 = vld [vmem:[#allocation10_spill] sm:$0xff] }
 0x1a9   : > { %7368 = vmatmul.mubr.f32.gmra.mrb[24].mxu1 %v4390_v33  ;;  %v4420_v33 = vand.u32 4294901760, %v4419_v57  ;;  %v4450_v52 = vand.u32 4294901760, %v4449_v20  ;;  %v10937_v57 = vld [vmem:[#allocation2_spill] sm:$0xff]  ;;  %v10947_v20 = vld [vmem:[#allocation16_spill] sm:$0xff] }
 0x1aa   : > { %7370 = vmatprep.mubr.f32.mxu1 %v4400_v29  ;;  %v4429_v28 = vsub.f32 %v9708_v27, %v10934_v5  ;;  %v4440_v29 = vand.u32 4294901760, %v4439_v55  ;;  %v10936_v55 = vld [vmem:[#allocation12_spill] sm:$0xff] }
 0x1ab   : > { %7170 = vmatmul.mubr.f32.gmra.mrb[28].mxu0 %v3127_v32  ;;  %v10939_v32 = vld [vmem:[#allocation25_spill] sm:$0xff]  ;;  %v10943_v5 = vld [vmem:[#allocation20_spill] sm:$0xff] }
 0x1ac   : > { %7172 = vmatprep.mubr.f32.mxu0 %v3137_v44  ;;  %v4430_v2 = vand.u32 4294901760, %v4429_v28  ;;  %v10940_v44 = vld [vmem:[#allocation14_spill] sm:$0xff] }
 0x1ad   : > { %7371 = vmatmul.mubr.f32.gmra.mrb[26].mxu1 %v4410_v11  ;;  %v10942_v11 = vld [vmem:[#allocation3_spill] sm:$0xff]  ;;  %v10944_v28 = vld [vmem:[#allocation26_spill] sm:$0xff] }
 0x1ae   : > { %7373 = vmatprep.mubr.f32.mxu1 %v4420_v33  ;;  %v10945_v33 = vld [vmem:[#allocation21_spill] sm:$0xff] }
 0x1af   : > { %7173 = vmatmul.mubr.f32.gmra.mrb[30].mxu0 %v3147_v31  ;;  %v10946_v31 = vld [vmem:[#allocation4_spill] sm:$0xff] }
 0x1b0   : > { %7185 = vmatprep.mubr.msk.f32.mxu0 %vm268_vm1, %v9152_v45 }
 0x1b1   : > { %7374 = vmatmul.mubr.f32.gmra.mrb[28].mxu1 %v4430_v2  ;;  %v10949_v2 = vld [vmem:[#allocation33_spill] sm:$0xff] }
 0x1b2   : > { %7376 = vmatprep.mubr.f32.mxu1 %v4440_v29  ;;  %v10948_v29 = vld [vmem:[#allocation22_spill] sm:$0xff] }
 0x1b3   : > { %7186 = vmatmul.mubr.msk.f32.vlgmr.msra.gmra.mrb[16].mxu0 %vm268_vm1, %v9164_v1 }
 0x1b4   : > { %7664 = vmatpush3.bf16.msra.mxu0 %v10922_v18  ;;  %7188 = vmatprep.mubr.msk.f32.mxu0 %vm268_vm1, %v9242_v3 }
 0x1b5   : > { %7377 = vmatmul.mubr.f32.gmra.mrb[30].mxu1 %v4450_v52  ;;  %7666 = vmatprep.subr.bf16.mxu0 %v10935_v34  ;;  %v10950_v52 = vld [vmem:[#allocation27_spill] sm:$0xff] }
 0x1b6   : > { %7389 = vmatprep.mubr.msk.f32.mxu1 %vm268_vm1, %v9157_v50 }
 0x1b7   : > { %7189 = vmatmul.mubr.msk.f32.gmra.mrb[18].mxu0 %vm268_vm1, %v9228_v54 }
 0x1b8   : > { %7191 = vmatprep.mubr.msk.f32.mxu0 %vm268_vm1, %v9343_v48  ;;  %7668 = vmatpush3.bf16.msra.mxu0 %v10935_v34 }
 0x1b9   : > { %7390 = vmatmul.mubr.msk.f32.vlgmr.msra.gmra.mrb[16].mxu1 %vm268_vm1, %v9198_v35  ;;  %7217 = vmatprep.subr.mxu0 %v10936_v55 }
 0x1ba   : > { %7392 = vmatprep.mubr.msk.f32.mxu1 %vm268_vm1, %v9184_v38  ;;  %7712 = vmatpush3.bf16.msra.mxu1 %v10922_v18  ;;  %v10938_v18 = vld [vmem:[#allocation17_spill] sm:$0xff] }
 0x1bb   : > { %7192 = vmatmul.mubr.msk.f32.gmra.mrb[20].mxu0 %vm268_vm1, %v9256_v19  ;;  %7714 = vmatprep.subr.bf16.mxu1 %v10935_v34 }
 0x1bc   : > { %7194 = vmatprep.mubr.msk.f32.mxu0 %vm268_vm1, %v9288_v42  ;;  %7218 = vmatpush3.msra.mxu0 %v10936_v55 }
 0x1bd   : > { %7393 = vmatmul.mubr.msk.f32.gmra.mrb[18].mxu1 %vm268_vm1, %v9272_v61  ;;  %7670 = vmatprep.subr.bf16.mxu0 %v10937_v57 }
 0x1be   : > { %7395 = vmatprep.mubr.msk.f32.mxu1 %vm268_vm1, %v9432_v15  ;;  %7716 = vmatpush3.bf16.msra.mxu1 %v10935_v34  ;;  %v10951_v34 = vld [vmem:[#allocation45_spill] sm:$0xff] }
 0x1bf   : > { %7195 = vmatmul.mubr.msk.f32.gmra.mrb[22].mxu0 %vm268_vm1, %v9451_v62  ;;  %7421 = vmatprep.subr.mxu1 %v10936_v55 }
 0x1c0   : > { %7197 = vmatprep.mubr.msk.f32.mxu0 %vm268_vm1, %v9481_v9 }
 0x1c1   : > { %7396 = vmatmul.mubr.msk.f32.gmra.mrb[20].mxu1 %vm268_vm1, %v9442_v41 }
 0x1c2   : > { %7398 = vmatprep.mubr.msk.f32.mxu1 %vm268_vm1, %v10938_v18  ;;  %7422 = vmatpush3.msra.mxu1 %v10936_v55  ;;  %v10952_v55 = vld [vmem:[#allocation6_spill] sm:$0xff] }
 0x1c3   : > { %7198 = vmatmul.mubr.msk.f32.gmra.mrb[24].mxu0 %vm268_vm1, %v9301_v25  ;;  %7718 = vmatprep.subr.bf16.mxu1 %v10937_v57 }
 0x1c4   : > { %7200 = vmatprep.mubr.msk.f32.mxu0 %vm268_vm1, %v9358_v58 }
 0x1c5   : > { %7399 = vmatmul.mubr.msk.f32.gmra.mrb[22].mxu1 %vm268_vm1, %v9506_v37 }
 0x1c6   : > { %7401 = vmatprep.mubr.msk.f32.mxu1 %vm268_vm1, %v9541_v49 }
 0x1c7   : > { %7201 = vmatmul.mubr.msk.f32.gmra.mrb[26].mxu0 %vm268_vm1, %v9548_v22 }
 0x1c8   : > { %7203 = vmatprep.mubr.msk.f32.mxu0 %vm268_vm1, %v9558_v21 }
 0x1c9   : > { %7402 = vmatmul.mubr.msk.f32.gmra.mrb[24].mxu1 %vm268_vm1, %v9572_v56 }
 0x1ca   : > { %7404 = vmatprep.mubr.msk.f32.mxu1 %vm268_vm1, %v10939_v32  ;;  %v10962_v32 = vand.u32 4294901760, %v10943_v5 }
 0x1cb   : > { %7204 = vmatmul.mubr.msk.f32.gmra.mrb[28].mxu0 %vm268_vm1, %v9392_v7  ;;  %v10961_v7 = vld [vmem:[#allocation19_spill] sm:$0xff] }
 0x1cc   : > { %7206 = vmatprep.mubr.msk.f32.mxu0 %vm268_vm1, %v9419_v47  ;;  %v10960_v47 = vand.u32 4294901760, %v9333_v17 }
 0x1cd   : > { %7405 = vmatmul.mubr.msk.f32.gmra.mrb[26].mxu1 %vm268_vm1, %v9611_v46  ;;  %v10959_v46 = vand.u32 4294901760, %v10941_v53 }
 0x1ce   : > { %7407 = vmatprep.mubr.msk.f32.mxu1 %vm268_vm1, %v9624_v6  ;;  %v10958_v6 = vand.u32 4294901760, %v10940_v44 }
 0x1cf   : > { %7207 = vmatmul.mubr.msk.f32.gmra.mrb[30].mxu0 %vm268_vm1, %v9639_v0  ;;  %v10957_v0 = vld [vmem:[#allocation37_spill] sm:$0xff] }
 0x1d0   : > { %7219 = vmatprep.mubr.f32.mxu0 %v10940_v44  ;;  %v10964_v44 = vand.u32 4294901760, %v10944_v28 }
 0x1d1   : > { %7408 = vmatmul.mubr.msk.f32.gmra.mrb[28].mxu1 %vm268_vm1, %v9658_v13  ;;  %v10956_v13 = vld [vmem:[#allocation40_spill] sm:$0xff] }
 0x1d2   : > { %7410 = vmatprep.mubr.msk.f32.mxu1 %vm268_vm1, %v9648_v39  ;;  %v10955_v39 = vld [vmem:[#allocation23_spill] sm:$0xff] }
 0x1d3   : > { %7220 = vmatmul.mubr.f32.vlgmr.msra.gmra.mrb[16].mxu0 %v10941_v53  ;;  %v10970_v53 = vand.u32 4294901760, %v10950_v52 }
 0x1d4   : > { %7672 = vmatpush3.bf16.msra.mxu0 %v10937_v57  ;;  %7222 = vmatprep.mubr.f32.mxu0 %v9333_v17  ;;  %v10966_v17 = vld [vmem:[#allocation13_spill] sm:$0xff] }
 0x1d5   : > { %7411 = vmatmul.mubr.msk.f32.gmra.mrb[30].mxu1 %vm268_vm1, %v9679_v51  ;;  %7674 = vmatprep.subr.bf16.mxu0 %v10942_v11  ;;  %v10954_v51 = vld [vmem:[#allocation36_spill] sm:$0xff] }
 0x1d6   : > { %7423 = vmatprep.mubr.f32.mxu1 %v10943_v5  ;;  %v10971_v5 = vand.u32 4294901760, %v9496_v60 }
 0x1d7   : > { %7223 = vmatmul.mubr.f32.gmra.mrb[18].mxu0 %v9311_v10 }
 0x1d8   : > { %7225 = vmatprep.mubr.f32.mxu0 %v10944_v28  ;;  %7676 = vmatpush3.bf16.msra.mxu0 %v10942_v11  ;;  %v10972_v28 = vand.u32 4294901760, %v10952_v55 }
 0x1d9   : > { %7424 = vmatmul.mubr.f32.vlgmr.msra.gmra.mrb[16].mxu1 %v10945_v33  ;;  %7251 = vmatprep.subr.mxu0 %v10946_v31 }
 0x1da   : > { %7426 = vmatprep.mubr.f32.mxu1 %v10947_v20  ;;  %7720 = vmatpush3.bf16.msra.mxu1 %v10937_v57 }
 0x1db   : > { %7226 = vmatmul.mubr.f32.gmra.mrb[20].mxu0 %v10948_v29  ;;  %7722 = vmatprep.subr.bf16.mxu1 %v10942_v11 }
 0x1dc   : > { %7228 = vmatprep.mubr.f32.mxu0 %v10949_v2  ;;  %7252 = vmatpush3.msra.mxu0 %v10946_v31 }
 0x1dd   : > { %7427 = vmatmul.mubr.f32.gmra.mrb[18].mxu1 %v10950_v52  ;;  %7678 = vmatprep.subr.bf16.mxu0 %v10951_v34  ;;  %v10983_v52 = vand.u32 4294901760, %v9280_v30 }
 0x1de   : > { %7429 = vmatprep.mubr.f32.mxu1 %v9496_v60  ;;  %7724 = vmatpush3.bf16.msra.mxu1 %v10942_v11  ;;  %v10976_v60 = vand.u32 4294901760, %v10956_v13 }
 0x1df   : > { %7229 = vmatmul.mubr.f32.gmra.mrb[22].mxu0 %v10952_v55  ;;  %7455 = vmatprep.subr.mxu1 %v10946_v31 }
 0x1e0   : > { %7231 = vmatprep.mubr.f32.mxu0 %v10953_v12 }
 0x1e1   : > { %7430 = vmatmul.mubr.f32.gmra.mrb[20].mxu1 %v10954_v51 }
 0x1e2   : > { %7432 = vmatprep.mubr.f32.mxu1 %v10955_v39  ;;  %7456 = vmatpush3.msra.mxu1 %v10946_v31 }
 0x1e3   : > { %7232 = vmatmul.mubr.f32.gmra.mrb[24].mxu0 %v10956_v13  ;;  %7726 = vmatprep.subr.bf16.mxu1 %v10951_v34  ;;  %v10982_v13 = vand.u32 4294901760, %v9634_v4 }
 0x1e4   : > { %7234 = vmatprep.mubr.f32.mxu0 %v10957_v0 }
 0x1e5   : > { %7433 = vmatmul.mubr.f32.gmra.mrb[22].mxu1 %v9567_v23 }
 0x1e6   : > { %7435 = vmatprep.mubr.f32.mxu1 %v9596_v24 }
 0x1e7   : > { %7235 = vmatmul.mubr.f32.gmra.mrb[26].mxu0 %v9605_v43 }
 0x1e8   : > { %7237 = vmatprep.mubr.f32.mxu0 %v9618_v26 }
 0x1e9   : > { %7436 = vmatmul.mubr.f32.gmra.mrb[24].mxu1 %v9634_v4  ;;  %v10992_v4 = vld [vmem:[#allocation25_spill] sm:$0xff] }
 0x1ea   : > { %7438 = vmatprep.mubr.f32.mxu1 %v9280_v30  ;;  %v10989_v30 = vand.u32 4294901760, %v9708_v27 }
 0x1eb   : > { %7238 = vmatmul.mubr.f32.gmra.mrb[28].mxu0 %v9465_v63 }
 0x1ec   : > { %7240 = vmatprep.mubr.f32.mxu0 %v9488_v16 }
 0x1ed   : > { %7439 = vmatmul.mubr.f32.gmra.mrb[26].mxu1 %v9671_v14 }
 0x1ee   : > { %7441 = vmatprep.mubr.f32.mxu1 %v9682_v40 }
 0x1ef   : > { %7241 = vmatmul.mubr.f32.gmra.mrb[30].mxu0 %v9690_v59 }
 0x1f0   : > { %7253 = vmatprep.mubr.f32.mxu0 %v10958_v6  ;;  %v10963_v6 = vand.u32 4294901760, %v9311_v10  ;;  %v10969_v10 = vand.u32 4294901760, %v10949_v2  ;;  %v10978_v2 = vand.u32 4294901760, %v9567_v23  ;;  %v10985_v23 = vand.u32 4294901760, %v9488_v16 }
 0x1f1   : > { %7442 = vmatmul.mubr.f32.gmra.mrb[28].mxu1 %v9708_v27  ;;  %v10991_v16 = vand.u32 4294901760, %v9719_v8  ;;  %v10997_v27 = vld [vmem:[#allocation28_spill] sm:$0xff] }
 0x1f2   : > { %7444 = vmatprep.mubr.f32.mxu1 %v9699_v36 }
 0x1f3   : > { %7254 = vmatmul.mubr.f32.vlgmr.msra.gmra.mrb[16].mxu0 %v10959_v46  ;;  %v10965_v46 = vand.u32 4294901760, %v10945_v33  ;;  %v10973_v33 = vand.u32 4294901760, %v10953_v12  ;;  %v10979_v12 = vand.u32 4294901760, %v9596_v24  ;;  %v10986_v24 = vand.u32 4294901760, %v9671_v14  ;;  %v10993_v14 = vld [vmem:[#allocation29_spill] sm:$0xff] }
 0x1f4   : > { %7680 = vmatpush3.bf16.msra.mxu0 %v10951_v34  ;;  %7256 = vmatprep.mubr.f32.mxu0 %v10960_v47  ;;  %v10967_v47 = vand.u32 4294901760, %v10947_v20  ;;  %v10974_v20 = vand.u32 4294901760, %v10954_v51  ;;  %v10980_v51 = vand.u32 4294901760, %v9605_v43  ;;  %v10987_v43 = vand.u32 4294901760, %v9682_v40  ;;  %v10995_v40 = vld [vmem:[#allocation30_spill] sm:$0xff] }
 0x1f5   : > { %7445 = vmatmul.mubr.f32.gmra.mrb[30].mxu1 %v9719_v8  ;;  %7682 = vmatprep.subr.bf16.mxu0 %v10961_v7  ;;  %v10998_v8 = vld [vmem:[#allocation31_spill] sm:$0xff] }
 0x1f6   : > { %7457 = vmatprep.mubr.f32.mxu1 %v10962_v32  ;;  %v10968_v32 = vand.u32 4294901760, %v10948_v29  ;;  %v10975_v29 = vand.u32 4294901760, %v10955_v39  ;;  %v10981_v39 = vand.u32 4294901760, %v9618_v26  ;;  %v10988_v26 = vand.u32 4294901760, %v9690_v59  ;;  %v10994_v59 = vld [vmem:[#allocation35_spill] sm:$0xff] }
 0x1f7   : > { %7257 = vmatmul.mubr.f32.gmra.mrb[18].mxu0 %v10963_v6 }
 0x1f8   : > { %7259 = vmatprep.mubr.f32.mxu0 %v10964_v44  ;;  %7684 = vmatpush3.bf16.msra.mxu0 %v10961_v7 }
 0x1f9   : > { %7458 = vmatmul.mubr.f32.vlgmr.msra.gmra.mrb[16].mxu1 %v10965_v46  ;;  %7285 = vmatprep.subr.mxu0 %v10966_v17 }
 0x1fa   : > { %7460 = vmatprep.mubr.f32.mxu1 %v10967_v47  ;;  %7728 = vmatpush3.bf16.msra.mxu1 %v10951_v34 }
 0x1fb   : > { %7260 = vmatmul.mubr.f32.gmra.mrb[20].mxu0 %v10968_v32  ;;  %7730 = vmatprep.subr.bf16.mxu1 %v10961_v7 }
 0x1fc   : > { %7262 = vmatprep.mubr.f32.mxu0 %v10969_v10  ;;  %7286 = vmatpush3.msra.mxu0 %v10966_v17 }
 0x1fd   : > { %7461 = vmatmul.mubr.f32.gmra.mrb[18].mxu1 %v10970_v53  ;;  %7686 = vmatprep.subr.bf16.mxu0 %v10937_v57 }
 0x1fe   : > { %7463 = vmatprep.mubr.f32.mxu1 %v10971_v5  ;;  %7732 = vmatpush3.bf16.msra.mxu1 %v10961_v7  ;;  %v10977_v7 = vand.u32 4294901760, %v10957_v0  ;;  %v10984_v0 = vand.u32 4294901760, %v9465_v63  ;;  %v10990_v63 = vand.u32 4294901760, %v9699_v36  ;;  %v10996_v36 = vld [vmem:[#allocation39_spill] sm:$0xff] }
 0x1ff   : > { %7263 = vmatmul.mubr.f32.gmra.mrb[22].mxu0 %v10972_v28  ;;  %7489 = vmatprep.subr.mxu1 %v10966_v17 }
 0x200   : > { %7265 = vmatprep.mubr.f32.mxu0 %v10973_v33 }
 0x201   : > { %7464 = vmatmul.mubr.f32.gmra.mrb[20].mxu1 %v10974_v20 }
 0x202   : > { %7466 = vmatprep.mubr.f32.mxu1 %v10975_v29  ;;  %7490 = vmatpush3.msra.mxu1 %v10966_v17 }
 0x203   : > { %7266 = vmatmul.mubr.f32.gmra.mrb[24].mxu0 %v10976_v60  ;;  %7734 = vmatprep.subr.bf16.mxu1 %v10937_v57 }
 0x204   : > { %7268 = vmatprep.mubr.f32.mxu0 %v10977_v7 }
 0x205   : > { %7467 = vmatmul.mubr.f32.gmra.mrb[22].mxu1 %v10978_v2 }
 0x206   : > { %7469 = vmatprep.mubr.f32.mxu1 %v10979_v12 }
 0x207   : > { %7269 = vmatmul.mubr.f32.gmra.mrb[26].mxu0 %v10980_v51 }
 0x208   : > { %7271 = vmatprep.mubr.f32.mxu0 %v10981_v39 }
 0x209   : > { %7470 = vmatmul.mubr.f32.gmra.mrb[24].mxu1 %v10982_v13 }
 0x20a   : > { %7472 = vmatprep.mubr.f32.mxu1 %v10983_v52 }
 0x20b   : > { %7272 = vmatmul.mubr.f32.gmra.mrb[28].mxu0 %v10984_v0 }
 0x20c   : > { %7274 = vmatprep.mubr.f32.mxu0 %v10985_v23 }
 0x20d   : > { %7473 = vmatmul.mubr.f32.gmra.mrb[26].mxu1 %v10986_v24 }
 0x20e   : > { %7475 = vmatprep.mubr.f32.mxu1 %v10987_v43 }
 0x20f   : > { %7275 = vmatmul.mubr.f32.gmra.mrb[30].mxu0 %v10988_v26 }
 0x210   : > { %7287 = vmatprep.mubr.msk.f32.mxu0 %vm268_vm1, %v9152_v45 }
 0x211   : > { %7476 = vmatmul.mubr.f32.gmra.mrb[28].mxu1 %v10989_v30 }
 0x212   : > { %7478 = vmatprep.mubr.f32.mxu1 %v10990_v63 }
 0x213   : > { %7288 = vmatmul.mubr.msk.f32.vlgmr.msra.gmra.mrb[16].mxu0 %vm268_vm1, %v9164_v1 }
 0x214   : > { %7688 = vmatpush3.bf16.msra.mxu0 %v10937_v57  ;;  %7290 = vmatprep.mubr.msk.f32.mxu0 %vm268_vm1, %v9242_v3 }
 0x215   : > { %7479 = vmatmul.mubr.f32.gmra.mrb[30].mxu1 %v10991_v16  ;;  %7690 = vmatprep.subr.bf16.mxu0 %v10942_v11 }
 0x216   : > { %7491 = vmatprep.mubr.msk.f32.mxu1 %vm268_vm1, %v9157_v50 }
 0x217   : > { %7291 = vmatmul.mubr.msk.f32.gmra.mrb[18].mxu0 %vm268_vm1, %v9228_v54 }
 0x218   : > { %7293 = vmatprep.mubr.msk.f32.mxu0 %vm268_vm1, %v9343_v48  ;;  %7692 = vmatpush3.bf16.msra.mxu0 %v10942_v11 }
 0x219   : > { %7492 = vmatmul.mubr.msk.f32.vlgmr.msra.gmra.mrb[16].mxu1 %vm268_vm1, %v9198_v35  ;;  %7319 = vmatprep.subr.mxu0 %v10946_v31 }
 0x21a   : > { %7494 = vmatprep.mubr.msk.f32.mxu1 %vm268_vm1, %v9184_v38  ;;  %7736 = vmatpush3.bf16.msra.mxu1 %v10937_v57  ;;  %v10999_v57 = vld [vmem:[#allocation24_spill] sm:$0xff] }
 0x21b   : > { %7294 = vmatmul.mubr.msk.f32.gmra.mrb[20].mxu0 %vm268_vm1, %v9256_v19  ;;  %7738 = vmatprep.subr.bf16.mxu1 %v10942_v11 }
 0x21c   : > { %7296 = vmatprep.mubr.msk.f32.mxu0 %vm268_vm1, %v9288_v42  ;;  %7320 = vmatpush3.msra.mxu0 %v10946_v31 }
 0x21d   : > { %7495 = vmatmul.mubr.msk.f32.gmra.mrb[18].mxu1 %vm268_vm1, %v9272_v61 }
 0x21e   : > { %7497 = vmatprep.mubr.msk.f32.mxu1 %vm268_vm1, %v9432_v15  ;;  %7740 = vmatpush3.bf16.msra.mxu1 %v10942_v11  ;;  %v11000_v11 = vld [vmem:[#allocation32_spill] sm:$0xff] }
 0x21f   : > { %7297 = vmatmul.mubr.msk.f32.gmra.mrb[22].mxu0 %vm268_vm1, %v9451_v62  ;;  %7523 = vmatprep.subr.mxu1 %v10946_v31 }
 0x220   : > { %7299 = vmatprep.mubr.msk.f32.mxu0 %vm268_vm1, %v9481_v9 }
 0x221   : > { %7498 = vmatmul.mubr.msk.f32.gmra.mrb[20].mxu1 %vm268_vm1, %v9442_v41 }
 0x222   : > { %7500 = vmatprep.mubr.msk.f32.mxu1 %vm268_vm1, %v10938_v18  ;;  %7524 = vmatpush3.msra.mxu1 %v10946_v31 }
 0x223   : > { %7300 = vmatmul.mubr.msk.f32.gmra.mrb[24].mxu0 %vm268_vm1, %v9301_v25 }
 0x224   : > { %7302 = vmatprep.mubr.msk.f32.mxu0 %vm268_vm1, %v9358_v58 }
 0x225   : > { %7501 = vmatmul.mubr.msk.f32.gmra.mrb[22].mxu1 %vm268_vm1, %v9506_v37 }
 0x226   : > { %7503 = vmatprep.mubr.msk.f32.mxu1 %vm268_vm1, %v9541_v49 }
 0x227   : > { %7303 = vmatmul.mubr.msk.f32.gmra.mrb[26].mxu0 %vm268_vm1, %v9548_v22 }
 0x228   : > { %7305 = vmatprep.mubr.msk.f32.mxu0 %vm268_vm1, %v9558_v21 }
 0x229   : > { %7504 = vmatmul.mubr.msk.f32.gmra.mrb[24].mxu1 %vm268_vm1, %v9572_v56 }
 0x22a   : > { %7506 = vmatprep.mubr.msk.f32.mxu1 %vm268_vm1, %v10992_v4 }
 0x22b   : > { %7306 = vmatmul.mubr.msk.f32.gmra.mrb[28].mxu0 %vm268_vm1, %v10993_v14 }
 0x22c   : > { %7308 = vmatprep.mubr.msk.f32.mxu0 %vm268_vm1, %v10994_v59 }
 0x22d   : > { %7507 = vmatmul.mubr.msk.f32.gmra.mrb[26].mxu1 %vm268_vm1, %v10995_v40 }
 0x22e   : > { %7509 = vmatprep.mubr.msk.f32.mxu1 %vm268_vm1, %v10996_v36 }
 0x22f   : > { %7309 = vmatmul.mubr.msk.f32.gmra.mrb[30].mxu0 %vm268_vm1, %v10997_v27 }
 0x230   : > { %7321 = vmatprep.mubr.msk.f32.mxu0 %vm268_vm1, %v9152_v45 }
 0x231   : > { %7510 = vmatmul.mubr.msk.f32.gmra.mrb[28].mxu1 %vm268_vm1, %v10998_v8 }
 0x232   : > { %7512 = vmatprep.mubr.msk.f32.mxu1 %vm268_vm1, %v10999_v57 }
 0x233   : > { %7322 = vmatmul.mubr.msk.f32.vlgmr.msra.gmra.mrb[16].mxu0 %vm268_vm1, %v9164_v1 }
 0x234   : > { %7324 = vmatprep.mubr.msk.f32.mxu0 %vm268_vm1, %v9242_v3 }
 0x235   : > { %7513 = vmatmul.mubr.msk.f32.gmra.mrb[30].mxu1 %vm268_vm1, %v11000_v11 }
 0x236   : > { %7525 = vmatprep.mubr.msk.f32.mxu1 %vm268_vm1, %v9157_v50 }
 0x237   : > { %7325 = vmatmul.mubr.msk.f32.gmra.mrb[18].mxu0 %vm268_vm1, %v9228_v54 }
 0x238   : > { %7327 = vmatprep.mubr.msk.f32.mxu0 %vm268_vm1, %v9343_v48 }
 0x239   : > { %7526 = vmatmul.mubr.msk.f32.vlgmr.msra.gmra.mrb[16].mxu1 %vm268_vm1, %v9198_v35 }
 0x23a   : > { %7528 = vmatprep.mubr.msk.f32.mxu1 %vm268_vm1, %v9184_v38 }
 0x23b   : > { %7328 = vmatmul.mubr.msk.f32.gmra.mrb[20].mxu0 %vm268_vm1, %v9256_v19 }
 0x23c   : > { %7330 = vmatprep.mubr.msk.f32.mxu0 %vm268_vm1, %v9288_v42 }
 0x23d   : > { %7529 = vmatmul.mubr.msk.f32.gmra.mrb[18].mxu1 %vm268_vm1, %v9272_v61 }
 0x23e   : > { %7531 = vmatprep.mubr.msk.f32.mxu1 %vm268_vm1, %v9432_v15 }
 0x23f   : > { %7331 = vmatmul.mubr.msk.f32.gmra.mrb[22].mxu0 %vm268_vm1, %v9451_v62 }
 0x240   : > { %7333 = vmatprep.mubr.msk.f32.mxu0 %vm268_vm1, %v9481_v9 }
 0x241   : > { %7532 = vmatmul.mubr.msk.f32.gmra.mrb[20].mxu1 %vm268_vm1, %v9442_v41 }
 0x242   : > { %7534 = vmatprep.mubr.msk.f32.mxu1 %vm268_vm1, %v10938_v18 }
 0x243   : > { %7334 = vmatmul.mubr.msk.f32.gmra.mrb[24].mxu0 %vm268_vm1, %v9301_v25 }
 0x244   : > { %7336 = vmatprep.mubr.msk.f32.mxu0 %vm268_vm1, %v9358_v58 }
 0x245   : > { %7535 = vmatmul.mubr.msk.f32.gmra.mrb[22].mxu1 %vm268_vm1, %v9506_v37 }
 0x246   : > { %7537 = vmatprep.mubr.msk.f32.mxu1 %vm268_vm1, %v9541_v49  ;;  %v10059_v19 = vpop.f32.mrb[0].mxu0 }
 0x247   : > { %5579 = vrot.lane.b32.xlu0 %v10059_v19, %s8128_s26  ;;  %v10063_v45 = vpop.f32.mrb[1].mxu0  ;;  %7337 = vmatmul.mubr.msk.f32.gmra.mrb[26].mxu0 %vm268_vm1, %v9548_v22 }
 0x248   : > { %5577 = vrot.lane.b32.xlu1 %v10063_v45, %s8128_s26  ;;  %7339 = vmatprep.mubr.msk.f32.mxu0 %vm268_vm1, %v9558_v21 }
 0x249   : > { %7538 = vmatmul.mubr.msk.f32.gmra.mrb[24].mxu1 %vm268_vm1, %v9572_v56 }
 0x24a   : > { %7540 = vmatprep.mubr.msk.f32.mxu1 %vm268_vm1, %v10992_v4  ;;  %v10075_v50 = vpop.f32.mrb[2].mxu0 }
 0x24b   : > { %v10077_v1 = vpop.f32.mrb[3].mxu0  ;;  %7340 = vmatmul.mubr.msk.f32.gmra.mrb[28].mxu0 %vm268_vm1, %v10993_v14 }
 0x24c   : > { %v7119_v38 = vpop.f32.mrb[0].mxu1  ;;  %7342 = vmatprep.mubr.msk.f32.mxu0 %vm268_vm1, %v10994_v59 }
 0x24d   : > { %5387 = vrot.lane.b32.xlu0 %v7119_v38, %s8129_s27  ;;  %v2669_v35 = vpop.f32.mrb[1].mxu1  ;;  %7541 = vmatmul.mubr.msk.f32.gmra.mrb[26].mxu1 %vm268_vm1, %v10995_v40 }
 0x24e   : > { %5385 = vrot.lane.b32.xlu1 %v2669_v35, %s8129_s27  ;;  %7543 = vmatprep.mubr.msk.f32.mxu1 %vm268_vm1, %v10996_v36  ;;  %v10089_v54 = vpop.f32.mrb[4].mxu0 }
 0x24f   : > { %v10091_v3 = vpop.f32.mrb[5].mxu0  ;;  %7343 = vmatmul.mubr.msk.f32.gmra.mrb[30].mxu0 %vm268_vm1, %v10997_v27 }
 0x250   : > { %v7122_v61 = vpop.f32.mrb[2].mxu1 }
 0x251   : > { %5627 = vrot.lane.b32.xlu0 %v7119_v38, %s8130_s28  ;;  %v2681_v42 = vpop.f32.mrb[3].mxu1  ;;  %7544 = vmatmul.mubr.msk.f32.gmra.mrb[28].mxu1 %vm268_vm1, %v10998_v8 }
 0x252   : > { %5625 = vrot.lane.b32.xlu1 %v2669_v35, %s8130_s28  ;;  %7546 = vmatprep.mubr.msk.f32.mxu1 %vm268_vm1, %v10999_v57  ;;  %v10101_v25 = vpop.f32.mrb[6].mxu0 }
 0x253   : > { %v10103_v48 = vpop.f32.mrb[7].mxu0 }
 0x254   : > { %v7125_v58 = vpop.f32.mrb[4].mxu1 }
 0x255   : > { %5583 = vrot.lane.b32.xlu0 %v10075_v50, %s8128_s26  ;;  %v2693_v41 = vpop.f32.mrb[5].mxu1  ;;  %7547 = vmatmul.mubr.msk.f32.gmra.mrb[30].mxu1 %vm268_vm1, %v11000_v11  ;;  %vm5769_vm1 = vcmask 130048  }
 0x256   : > { %5581 = vrot.lane.b32.xlu1 %v10077_v1, %s8128_s26  ;;  %v10111_v15 = vpop.f32.mrb[8].mxu0 }
 0x257   : > { %v10113_v62 = vpop.f32.mrb[9].mxu0 }
 0x258   : > { %v7128_v9 = vpop.f32.mrb[6].mxu1 }
 0x259   : > { %5391 = vrot.lane.b32.xlu0 %v7122_v61, %s8129_s27  ;;  %v2705_v37 = vpop.f32.mrb[7].mxu1 }
 0x25a   : > { %5389 = vrot.lane.b32.xlu1 %v2681_v42, %s8129_s27  ;;  %v10117_v49 = vpop.f32.mrb[10].mxu0 }
 0x25b   : > { %v10119_v22 = vpop.f32.mrb[11].mxu0 }
 0x25c   : > { %v7131_v56 = vpop.f32.mrb[8].mxu1 }
 0x25d   : > { %5631 = vrot.lane.b32.xlu0 %v7122_v61, %s8130_s28  ;;  %v2717_v21 = vpop.f32.mrb[9].mxu1 }
 0x25e   : > { %5629 = vrot.lane.b32.xlu1 %v2681_v42, %s8130_s28  ;;  %v10123_v18 = vpop.f32.mrb[12].mxu0 }
 0x25f   : > { %v10125_v31 = vpop.f32.mrb[13].mxu0 }
 0x260   : > { %v7134_v34 = vpop.f32.mrb[10].mxu1 }
 0x261   : > { %5587 = vrot.lane.b32.xlu0 %v10089_v54, %s8128_s26  ;;  %v2729_v55 = vpop.f32.mrb[11].mxu1 }
 0x262   : > { %5585 = vrot.lane.b32.xlu1 %v10091_v3, %s8128_s26  ;;  %v10131_v6 = vpop.f32.mrb[14].mxu0 }
 0x263   : > { %v10133_v44 = vpop.f32.mrb[15].mxu0 }
 0x264   : > { %v7137_v46 = vpop.f32.mrb[12].mxu1 }
 0x265   : > { %5395 = vrot.lane.b32.xlu0 %v7125_v58, %s8129_s27  ;;  %v2741_v17 = vpop.f32.mrb[13].mxu1 }
 0x266   : > { %5393 = vrot.lane.b32.xlu1 %v2693_v41, %s8129_s27 }
 0x268   : > { %v7140_v47 = vpop.f32.mrb[14].mxu1 }
 0x269   : > { %5635 = vrot.lane.b32.xlu0 %v7125_v58, %s8130_s28  ;;  %v2753_v32 = vpop.f32.mrb[15].mxu1 }
 0x26a   : > { %5633 = vrot.lane.b32.xlu1 %v2693_v41, %s8130_s28 }
 0x26d   : > { %5591 = vrot.lane.b32.xlu0 %v10101_v25, %s8128_s26 }
 0x26e   : > { %5589 = vrot.lane.b32.xlu1 %v10103_v48, %s8128_s26 }
 0x271   : > { %5399 = vrot.lane.b32.xlu0 %v7128_v9, %s8129_s27 }
 0x272   : > { %5397 = vrot.lane.b32.xlu1 %v2705_v37, %s8129_s27 }
 0x275   : > { %5639 = vrot.lane.b32.xlu0 %v7128_v9, %s8130_s28 }
 0x276   : > { %5637 = vrot.lane.b32.xlu1 %v2705_v37, %s8130_s28 }
 0x279   : > { %5595 = vrot.lane.b32.xlu0 %v10111_v15, %s8128_s26 }
 0x27a   : > { %5593 = vrot.lane.b32.xlu1 %v10113_v62, %s8128_s26 }
 0x27d   : > { %5403 = vrot.lane.b32.xlu0 %v7131_v56, %s8129_s27 }
 0x27e   : > { %5401 = vrot.lane.b32.xlu1 %v2717_v21, %s8129_s27 }
 0x281   : > { %5643 = vrot.lane.b32.xlu0 %v7131_v56, %s8130_s28 }
 0x282   : > { %5641 = vrot.lane.b32.xlu1 %v2717_v21, %s8130_s28 }
 0x285   : > { %5599 = vrot.lane.b32.xlu0 %v10117_v49, %s8128_s26 }
 0x286   : > { %5597 = vrot.lane.b32.xlu1 %v10119_v22, %s8128_s26 }
 0x289   : > { %5407 = vrot.lane.b32.xlu0 %v7134_v34, %s8129_s27 }
 0x28a   : > { %5405 = vrot.lane.b32.xlu1 %v2729_v55, %s8129_s27 }
 0x28d   : > { %5647 = vrot.lane.b32.xlu0 %v7134_v34, %s8130_s28 }
 0x28e   : > { %5645 = vrot.lane.b32.xlu1 %v2729_v55, %s8130_s28 }
 0x291   : > { %5603 = vrot.lane.b32.xlu0 %v10123_v18, %s8128_s26 }
 0x292   : > { %5601 = vrot.lane.b32.xlu1 %v10125_v31, %s8128_s26 }
 0x295   : > { %5411 = vrot.lane.b32.xlu0 %v7137_v46, %s8129_s27 }
 0x296   : > { %5409 = vrot.lane.b32.xlu1 %v2741_v17, %s8129_s27 }
 0x299   : > { %5651 = vrot.lane.b32.xlu0 %v7137_v46, %s8130_s28 }
 0x29a   : > { %5649 = vrot.lane.b32.xlu1 %v2741_v17, %s8130_s28 }
 0x29d   : > { %5607 = vrot.lane.b32.xlu0 %v10131_v6, %s8128_s26 }
 0x29e   : > { %5605 = vrot.lane.b32.xlu1 %v10133_v44, %s8128_s26 }
 0x2a1   : > { %5415 = vrot.lane.b32.xlu0 %v7140_v47, %s8129_s27 }
 0x2a2   : > { %5413 = vrot.lane.b32.xlu1 %v2753_v32, %s8129_s27 }
 0x2a5   : > { %5655 = vrot.lane.b32.xlu0 %v7140_v47, %s8130_s28 }
 0x2a6   : > { %5653 = vrot.lane.b32.xlu1 %v2753_v32, %s8130_s28 }
 0x2b9   : > { %v10179_v10 = vpop.permute.xlu0 %5579 }
 0x2ba   : > { %v10181_v53 = vpop.permute.xlu1 %5577 }
 0x2bf   : > { %v10183_v5 = vpop.permute.xlu0 %5387 }
 0x2c0   : > { %v10185_v28 = vpop.permute.xlu1 %5385 }
 0x2c3   : > { %v10187_v33 = vpop.permute.xlu0 %5627 }
 0x2c4   : > { %v10189_v20 = vpop.permute.xlu1 %5625 }
 0x2c7   : > { %v10191_v29 = vpop.permute.xlu0 %5583 }
 0x2c8   : > { %v10193_v60 = vpop.permute.xlu1 %5581 }
 0x2cb   : > { %v10195_v7 = vpop.permute.xlu0 %5391 }
 0x2cc   : > { %v10197_v2 = vpop.permute.xlu1 %5389 }
 0x2cf   : > { %v10199_v12 = vpop.permute.xlu0 %5631 }
 0x2d0   : > { %v10201_v51 = vpop.permute.xlu1 %5629 }
 0x2d3   : > { %v10203_v39 = vpop.permute.xlu0 %5587 }
 0x2d4   : > { %v10205_v13 = vpop.permute.xlu1 %5585 }
 0x2d7   : > { %v5396_v52 = vpop.permute.xlu0 %5395 }
 0x2d8   : > { %v10209_v0 = vsel %vm5769_vm1, %v10089_v54, %v5396_v52  ;;  %v5394_v23 = vpop.permute.xlu1 %5393 }
 0x2d9   : > { %v10213_v24 = vsel %vm5769_vm1, %v10091_v3, %v5394_v23 }
 0x2db   : > { %v10215_v43 = vpop.permute.xlu0 %5635 }
 0x2dc   : > { %v10217_v26 = vpop.permute.xlu1 %5633 }
 0x2df   : > { %v10219_v30 = vpop.permute.xlu0 %5591 }
 0x2e0   : > { %v10221_v63 = vpop.permute.xlu1 %5589 }
 0x2e3   : > { %v5400_v16 = vpop.permute.xlu0 %5399 }
 0x2e4   : > { %v10225_v4 = vsel %vm5769_vm1, %v10101_v25, %v5400_v16  ;;  %v5398_v14 = vpop.permute.xlu1 %5397 }
 0x2e5   : > { %v10229_v59 = vsel %vm5769_vm1, %v10103_v48, %v5398_v14 }
 0x2e7   : > { %v10231_v40 = vpop.permute.xlu0 %5639 }
 0x2e8   : > { %v10233_v36 = vpop.permute.xlu1 %5637 }
 0x2eb   : > { %v10235_v27 = vpop.permute.xlu0 %5595 }
 0x2ec   : > { %v10237_v8 = vpop.permute.xlu1 %5593 }
 0x2ef   : > { %v5404_v57 = vpop.permute.xlu0 %5403 }
 0x2f0   : > { %v10241_v11 = vsel %vm5769_vm1, %v10111_v15, %v5404_v57  ;;  %v5402_v38 = vpop.permute.xlu1 %5401 }
 0x2f1   : > { %v10245_v35 = vsel %vm5769_vm1, %v10113_v62, %v5402_v38 }
 0x2f3   : > { %v10247_v54 = vpop.permute.xlu0 %5643 }
 0x2f4   : > { %v10249_v3 = vpop.permute.xlu1 %5641 }
 0x2f7   : > { %v10251_v61 = vpop.permute.xlu0 %5599 }
 0x2f8   : > { %v10253_v42 = vpop.permute.xlu1 %5597 }
 0x2f9   : > { %11001 = vst [vmem:[#allocation11_spill] sm:$0xff] %v10253_v42 }
 0x2fb   : > { %v5408_v25 = vpop.permute.xlu0 %5407 }
 0x2fc   : > { %v10257_v48 = vsel %vm5769_vm1, %v10117_v49, %v5408_v25  ;;  %v5406_v58 = vpop.permute.xlu1 %5405 }
 0x2fd   : > { %v10261_v41 = vsel %vm5769_vm1, %v10119_v22, %v5406_v58 }
 0x2ff   : > { %v10263_v15 = vpop.permute.xlu0 %5647 }
 0x300   : > { %v10265_v62 = vpop.permute.xlu1 %5645 }
 0x301   : > { %11002 = vst [vmem:[#allocation34_spill] sm:$0xff] %v10265_v62 }
 0x303   : > { %v10267_v9 = vpop.permute.xlu0 %5603 }
 0x304   : > { %11003 = vst [vmem:[#allocation41_spill] sm:$0xff] %v10267_v9  ;;  %v10269_v37 = vpop.permute.xlu1 %5601 }
 0x305   : > { %11004 = vst [vmem:[#allocation43_spill] sm:$0xff] %v10269_v37 }
 0x306   : > { %v7323_v56 = vpop.f32.mrb[16].mxu0 }
 0x307   : > { %v5412_v21 = vpop.permute.xlu0 %5411  ;;  %5451 = vrot.lane.b32.xlu0 %v7323_v56, %s8131_s29  ;;  %v3972_v49 = vpop.f32.mrb[17].mxu0 }
 0x308   : > { %v10274_v34 = vsel %vm5769_vm1, %v10123_v18, %v5412_v21  ;;  %v5410_v22 = vpop.permute.xlu1 %5409  ;;  %5449 = vrot.lane.b32.xlu1 %v3972_v49, %s8131_s29 }
 0x309   : > { %11005 = vst [vmem:[#allocation42_spill] sm:$0xff] %v10274_v34  ;;  %v10279_v55 = vsel %vm5769_vm1, %v10125_v31, %v5410_v22 }
 0x30a   : > { %11006 = vst [vmem:[#allocation38_spill] sm:$0xff] %v10279_v55  ;;  %v7326_v46 = vpop.f32.mrb[18].mxu0 }
 0x30b   : > { %v10281_v17 = vpop.permute.xlu0 %5651  ;;  %5675 = vrot.lane.b32.xlu0 %v7323_v56, %s8132_s30  ;;  %v3984_v47 = vpop.f32.mrb[19].mxu0 }
 0x30c   : > { %11007 = vst [vmem:[#allocation44_spill] sm:$0xff] %v10281_v17  ;;  %v7527_v32 = vpop.f32.mrb[16].mxu1  ;;  %v10284_v52 = vpop.permute.xlu1 %5649  ;;  %5673 = vrot.lane.b32.xlu1 %v3972_v49, %s8132_s30 }
 0x30d   : > { %11008 = vst [vmem:[#allocation5_spill] sm:$0xff] %v10284_v52  ;;  %v5275_v18 = vpop.f32.mrb[17].mxu1 }
 0x30e   : > { %v7329_v23 = vpop.f32.mrb[20].mxu0 }
 0x30f   : > { %v10287_v16 = vpop.permute.xlu0 %5607  ;;  %v3996_v14 = vpop.f32.mrb[21].mxu0  ;;  %5515 = vrot.lane.b32.xlu0 %v7527_v32, %s8128_s26 }
 0x310   : > { %11009 = vst [vmem:[#allocation8_spill] sm:$0xff] %v10287_v16  ;;  %v7530_v31 = vpop.f32.mrb[18].mxu1  ;;  %v10290_v57 = vpop.permute.xlu1 %5605  ;;  %5513 = vrot.lane.b32.xlu1 %v5275_v18, %s8128_s26 }
 0x311   : > { %11010 = vst [vmem:[#allocation15_spill] sm:$0xff] %v10290_v57  ;;  %v5287_v38 = vpop.f32.mrb[19].mxu1 }
 0x312   : > { %v7332_v25 = vpop.f32.mrb[22].mxu0 }
 0x313   : > { %v5416_v58 = vpop.permute.xlu0 %5415  ;;  %v4008_v56 = vpop.f32.mrb[23].mxu0  ;;  %5723 = vrot.lane.b32.xlu0 %v7527_v32, %s8129_s27 }
 0x314   : > { %v10296_v21 = vsel %vm5769_vm1, %v10131_v6, %v5416_v58  ;;  %v7533_v49 = vpop.f32.mrb[20].mxu1  ;;  %v5414_v22 = vpop.permute.xlu1 %5413  ;;  %5721 = vrot.lane.b32.xlu1 %v5275_v18, %s8129_s27 }
 0x315   : > { %11011 = vst [vmem:[#allocation9_spill] sm:$0xff] %v10296_v21  ;;  %v10301_v16 = vsel %vm5769_vm1, %v10133_v44, %v5414_v22  ;;  %v5299_v57 = vpop.f32.mrb[21].mxu1 }
 0x316   : > { %11012 = vst [vmem:[#allocation10_spill] sm:$0xff] %v10301_v16  ;;  %v7335_v52 = vpop.f32.mrb[24].mxu0 }
 0x317   : > { %v4020_v37 = vpop.f32.mrb[25].mxu0  ;;  %5455 = vrot.lane.b32.xlu0 %v7326_v46, %s8131_s29 }
 0x318   : > { %v7536_v17 = vpop.f32.mrb[22].mxu1  ;;  %5453 = vrot.lane.b32.xlu1 %v3984_v47, %s8131_s29 }
 0x319   : > { %v5311_v32 = vpop.f32.mrb[23].mxu1 }
 0x31a   : > { %v7338_v9 = vpop.f32.mrb[26].mxu0 }
 0x31b   : > { %v4032_v6 = vpop.f32.mrb[27].mxu0  ;;  %5679 = vrot.lane.b32.xlu0 %v7326_v46, %s8132_s30 }
 0x31c   : > { %v7539_v58 = vpop.f32.mrb[24].mxu1  ;;  %5677 = vrot.lane.b32.xlu1 %v3984_v47, %s8132_s30 }
 0x31d   : > { %v5323_v18 = vpop.f32.mrb[25].mxu1 }
 0x31e   : > { %v7341_v21 = vpop.f32.mrb[28].mxu0 }
 0x31f   : > { %v4044_v44 = vpop.f32.mrb[29].mxu0  ;;  %5519 = vrot.lane.b32.xlu0 %v7530_v31, %s8128_s26 }
 0x320   : > { %v7542_v22 = vpop.f32.mrb[26].mxu1  ;;  %5517 = vrot.lane.b32.xlu1 %v5287_v38, %s8128_s26 }
 0x321   : > { %v5335_v16 = vpop.f32.mrb[27].mxu1 }
 0x322   : > { %v7344_v55 = vpop.f32.mrb[30].mxu0 }
 0x323   : > { %v4056_v34 = vpop.f32.mrb[31].mxu0  ;;  %5727 = vrot.lane.b32.xlu0 %v7530_v31, %s8129_s27 }
 0x324   : > { %v7545_v62 = vpop.f32.mrb[28].mxu1  ;;  %5725 = vrot.lane.b32.xlu1 %v5287_v38, %s8129_s27 }
 0x325   : > { %v5347_v46 = vpop.f32.mrb[29].mxu1 }
 0x327   : > { %5459 = vrot.lane.b32.xlu0 %v7329_v23, %s8131_s29 }
 0x328   : > { %v10312_v47 = vpop.f32.mrb[30].mxu1  ;;  %5457 = vrot.lane.b32.xlu1 %v3996_v14, %s8131_s29 }
 0x329   : > { %v10315_v42 = vpop.f32.mrb[31].mxu1 }
 0x32b   : > { %5683 = vrot.lane.b32.xlu0 %v7329_v23, %s8132_s30 }
 0x32c   : > { %5681 = vrot.lane.b32.xlu1 %v3996_v14, %s8132_s30 }
 0x32f   : > { %5523 = vrot.lane.b32.xlu0 %v7533_v49, %s8128_s26 }
 0x330   : > { %5521 = vrot.lane.b32.xlu1 %v5299_v57, %s8128_s26 }
 0x333   : > { %5731 = vrot.lane.b32.xlu0 %v7533_v49, %s8129_s27 }
 0x334   : > { %5729 = vrot.lane.b32.xlu1 %v5299_v57, %s8129_s27 }
 0x337   : > { %5463 = vrot.lane.b32.xlu0 %v7332_v25, %s8131_s29 }
 0x338   : > { %5461 = vrot.lane.b32.xlu1 %v4008_v56, %s8131_s29 }
 0x33b   : > { %5687 = vrot.lane.b32.xlu0 %v7332_v25, %s8132_s30 }
 0x33c   : > { %5685 = vrot.lane.b32.xlu1 %v4008_v56, %s8132_s30 }
 0x33f   : > { %5527 = vrot.lane.b32.xlu0 %v7536_v17, %s8128_s26 }
 0x340   : > { %5525 = vrot.lane.b32.xlu1 %v5311_v32, %s8128_s26 }
 0x343   : > { %5735 = vrot.lane.b32.xlu0 %v7536_v17, %s8129_s27 }
 0x344   : > { %5733 = vrot.lane.b32.xlu1 %v5311_v32, %s8129_s27 }
 0x347   : > { %5467 = vrot.lane.b32.xlu0 %v7335_v52, %s8131_s29 }
 0x348   : > { %5465 = vrot.lane.b32.xlu1 %v4020_v37, %s8131_s29 }
 0x34b   : > { %5691 = vrot.lane.b32.xlu0 %v7335_v52, %s8132_s30 }
 0x34c   : > { %5689 = vrot.lane.b32.xlu1 %v4020_v37, %s8132_s30  ;;  %v10357_v37 = vpop.permute.xlu1 %5653 }
 0x34f   : > { %5531 = vrot.lane.b32.xlu0 %v7539_v58, %s8128_s26 }
 0x350   : > { %5529 = vrot.lane.b32.xlu1 %v5323_v18, %s8128_s26 }
 0x353   : > { %5739 = vrot.lane.b32.xlu0 %v7539_v58, %s8129_s27 }
 0x354   : > { %5737 = vrot.lane.b32.xlu1 %v5323_v18, %s8129_s27 }
 0x357   : > { %5471 = vrot.lane.b32.xlu0 %v7338_v9, %s8131_s29 }
 0x358   : > { %5469 = vrot.lane.b32.xlu1 %v4032_v6, %s8131_s29 }
 0x35b   : > { %5695 = vrot.lane.b32.xlu0 %v7338_v9, %s8132_s30  ;;  %v10355_v9 = vpop.permute.xlu0 %5655 }
 0x35c   : > { %5693 = vrot.lane.b32.xlu1 %v4032_v6, %s8132_s30  ;;  %v5772_v6 = vsel %vm5769_vm1, %v10077_v1, %v10197_v2 }
 0x35f   : > { %5535 = vrot.lane.b32.xlu0 %v7542_v22, %s8128_s26 }
 0x360   : > { %5533 = vrot.lane.b32.xlu1 %v5335_v16, %s8128_s26 }
 0x363   : > { %5743 = vrot.lane.b32.xlu0 %v7542_v22, %s8129_s27 }
 0x364   : > { %5741 = vrot.lane.b32.xlu1 %v5335_v16, %s8129_s27 }
 0x367   : > { %5475 = vrot.lane.b32.xlu0 %v7341_v21, %s8131_s29 }
 0x368   : > { %5473 = vrot.lane.b32.xlu1 %v4044_v44, %s8131_s29 }
 0x36b   : > { %5699 = vrot.lane.b32.xlu0 %v7341_v21, %s8132_s30 }
 0x36c   : > { %5697 = vrot.lane.b32.xlu1 %v4044_v44, %s8132_s30 }
 0x36f   : > { %5539 = vrot.lane.b32.xlu0 %v7545_v62, %s8128_s26 }
 0x370   : > { %5537 = vrot.lane.b32.xlu1 %v5347_v46, %s8128_s26 }
 0x373   : > { %5747 = vrot.lane.b32.xlu0 %v7545_v62, %s8129_s27  ;;  %v5771_v62 = vsel %vm5769_vm1, %v10059_v19, %v10183_v5 }
 0x374   : > { %5745 = vrot.lane.b32.xlu1 %v5347_v46, %s8129_s27 }
 0x377   : > { %5479 = vrot.lane.b32.xlu0 %v7344_v55, %s8131_s29 }
 0x378   : > { %5477 = vrot.lane.b32.xlu1 %v4056_v34, %s8131_s29 }
 0x379   : > { %v5452_v17 = vpop.permute.xlu0 %5451 }
 0x37a   : > { %v5450_v52 = vpop.permute.xlu1 %5449 }
 0x37b   : > { %5703 = vrot.lane.b32.xlu0 %v7344_v55, %s8132_s30  ;;  %v5788_v55 = vsel %vm5786_vm5, %v5771_v62, %v5452_v17 }
 0x37c   : > { %5701 = vrot.lane.b32.xlu1 %v4056_v34, %s8132_s30  ;;  %v5770_v34 = vsel %vm5769_vm1, %v10063_v45, %v10185_v28 }
 0x37d   : > { %v5676_v23 = vpop.permute.xlu0 %5675  ;;  %v5787_v19 = vsel %vm5786_vm5, %v5770_v34, %v5450_v52 }
 0x37e   : > { %v5674_v16 = vpop.permute.xlu1 %5673 }
 0x37f   : > { %5543 = vrot.lane.b32.xlu0 %v10312_v47, %s8128_s26 }
 0x380   : > { %5541 = vrot.lane.b32.xlu1 %v10315_v42, %s8128_s26 }
 0x381   : > { %v5516_v14 = vpop.permute.xlu0 %5515 }
 0x382   : > { %v5805_v5 = vsel %vm5803_vm6, %v5788_v55, %v5516_v14  ;;  %v5514_v31 = vpop.permute.xlu1 %5513 }
 0x383   : > { %v5822_v45 = vsel %vm5820_vm7, %v5805_v5, %v10179_v10  ;;  %v5804_v28 = vsel %vm5803_vm6, %v5787_v19, %v5514_v31  ;;  %5751 = vrot.lane.b32.xlu0 %v10312_v47, %s8129_s27 }
 0x384   : > { %v5839_v57 = vsel %vm5837_vm8, %v5822_v45, %v10187_v33  ;;  %v5821_v38 = vsel %vm5820_vm7, %v5804_v28, %v10181_v53  ;;  %5749 = vrot.lane.b32.xlu1 %v10315_v42, %s8129_s27 }
 0x385   : > { %5872 = vst [vmem:[%s10378_s6 + $0x10] sm:$0xff] %v5839_v57  ;;  %v5838_v25 = vsel %vm5837_vm8, %v5821_v38, %v10189_v20  ;;  %v5724_v56 = vpop.permute.xlu0 %5723  ;;  %v5773_v20 = vsel %vm5769_vm1, %v10075_v50, %v10195_v7 }
 0x386   : > { %5870 = vst [vmem:[%s10378_s6] sm:$0xff] %v5838_v25  ;;  %v5855_v10 = vsel %vm5786_vm5, %v5676_v23, %v5724_v56  ;;  %v5722_v21 = vpop.permute.xlu1 %5721 }
 0x387   : > { %5873 = vst.msk [vmem:[%s10378_s6 + $0x18] sm:$0xff] %vm5820_vm7, %v5855_v10  ;;  %v5854_v49 = vsel %vm5786_vm5, %v5674_v16, %v5722_v21 }
 0x388   : > { %5871 = vst.msk [vmem:[%s10378_s6 + $0x8] sm:$0xff] %vm5820_vm7, %v5854_v49 }
 0x389   : > { %v5456_v53 = vpop.permute.xlu0 %5455 }
 0x38a   : > { %v5454_v33 = vpop.permute.xlu1 %5453  ;;  %v5790_v58 = vsel %vm5786_vm5, %v5773_v20, %v5456_v53 }
 0x38b   : > { %v5789_v44 = vsel %vm5786_vm5, %v5772_v6, %v5454_v33 }
 0x38d   : > { %v5680_v32 = vpop.permute.xlu0 %5679 }
 0x38e   : > { %v5678_v42 = vpop.permute.xlu1 %5677 }
 0x391   : > { %v5520_v18 = vpop.permute.xlu0 %5519 }
 0x392   : > { %v5807_v22 = vsel %vm5803_vm6, %v5790_v58, %v5520_v18  ;;  %v5518_v46 = vpop.permute.xlu1 %5517 }
 0x393   : > { %v5824_v47 = vsel %vm5820_vm7, %v5807_v22, %v10191_v29  ;;  %v5806_v17 = vsel %vm5803_vm6, %v5789_v44, %v5518_v46 }
 0x394   : > { %v5841_v50 = vsel %vm5837_vm8, %v5824_v47, %v10199_v12  ;;  %v5823_v1 = vsel %vm5820_vm7, %v5806_v17, %v10193_v60 }
 0x395   : > { %5876 = vst [vmem:[%s10378_s6 + $0x30] sm:$0xff] %v5841_v50  ;;  %v5840_v7 = vsel %vm5837_vm8, %v5823_v1, %v10201_v51  ;;  %v5728_v2 = vpop.permute.xlu0 %5727 }
 0x396   : > { %5874 = vst [vmem:[%s10378_s6 + $0x20] sm:$0xff] %v5840_v7  ;;  %v5857_v52 = vsel %vm5786_vm5, %v5680_v32, %v5728_v2  ;;  %v5726_v23 = vpop.permute.xlu1 %5725 }
 0x397   : > { %5877 = vst.msk [vmem:[%s10378_s6 + $0x38] sm:$0xff] %vm5820_vm7, %v5857_v52  ;;  %v5856_v29 = vsel %vm5786_vm5, %v5678_v42, %v5726_v23 }
 0x398   : > { %5875 = vst.msk [vmem:[%s10378_s6 + $0x28] sm:$0xff] %vm5820_vm7, %v5856_v29 }
 0x399   : > { %v5460_v12 = vpop.permute.xlu0 %5459 }
 0x39a   : > { %v5458_v16 = vpop.permute.xlu1 %5457  ;;  %v5792_v51 = vsel %vm5786_vm5, %v10209_v0, %v5460_v12 }
 0x39b   : > { %v5791_v55 = vsel %vm5786_vm5, %v10213_v24, %v5458_v16 }
 0x39d   : > { %v5684_v60 = vpop.permute.xlu0 %5683 }
 0x39e   : > { %v5682_v62 = vpop.permute.xlu1 %5681 }
 0x3a1   : > { %v5524_v34 = vpop.permute.xlu0 %5523 }
 0x3a2   : > { %v5809_v14 = vsel %vm5803_vm6, %v5792_v51, %v5524_v34  ;;  %v5522_v19 = vpop.permute.xlu1 %5521 }
 0x3a3   : > { %v5826_v5 = vsel %vm5820_vm7, %v5809_v14, %v10203_v39  ;;  %v5808_v31 = vsel %vm5803_vm6, %v5791_v55, %v5522_v19  ;;  %v11013_v19 = vld [vmem:[#allocation11_spill] sm:$0xff] }
 0x3a4   : > { %v5843_v45 = vsel %vm5837_vm8, %v5826_v5, %v10215_v43  ;;  %v5825_v28 = vsel %vm5820_vm7, %v5808_v31, %v10205_v13 }
 0x3a5   : > { %5880 = vst [vmem:[%s10378_s6 + $0x50] sm:$0xff] %v5843_v45  ;;  %v5842_v0 = vsel %vm5837_vm8, %v5825_v28, %v10217_v26  ;;  %v5732_v57 = vpop.permute.xlu0 %5731 }
 0x3a6   : > { %5878 = vst [vmem:[%s10378_s6 + $0x40] sm:$0xff] %v5842_v0  ;;  %v5859_v24 = vsel %vm5786_vm5, %v5684_v60, %v5732_v57  ;;  %v5730_v38 = vpop.permute.xlu1 %5729 }
 0x3a7   : > { %5881 = vst.msk [vmem:[%s10378_s6 + $0x58] sm:$0xff] %vm5820_vm7, %v5859_v24  ;;  %v5858_v39 = vsel %vm5786_vm5, %v5682_v62, %v5730_v38  ;;  %v11015_v38 = vld [vmem:[#allocation42_spill] sm:$0xff] }
 0x3a8   : > { %5879 = vst.msk [vmem:[%s10378_s6 + $0x48] sm:$0xff] %vm5820_vm7, %v5858_v39 }
 0x3a9   : > { %v5464_v43 = vpop.permute.xlu0 %5463 }
 0x3aa   : > { %v5462_v25 = vpop.permute.xlu1 %5461  ;;  %v5794_v26 = vsel %vm5786_vm5, %v10225_v4, %v5464_v43 }
 0x3ab   : > { %v5793_v21 = vsel %vm5786_vm5, %v10229_v59, %v5462_v25  ;;  %v11016_v25 = vld [vmem:[#allocation38_spill] sm:$0xff] }
 0x3ad   : > { %v5688_v13 = vpop.permute.xlu0 %5687 }
 0x3ae   : > { %v5686_v56 = vpop.permute.xlu1 %5685 }
 0x3b1   : > { %v5528_v10 = vpop.permute.xlu0 %5527 }
 0x3b2   : > { %v5811_v49 = vsel %vm5803_vm6, %v5794_v26, %v5528_v10  ;;  %v5526_v53 = vpop.permute.xlu1 %5525  ;;  %v11017_v10 = vld [vmem:[#allocation41_spill] sm:$0xff] }
 0x3b3   : > { %v5828_v33 = vsel %vm5820_vm7, %v5811_v49, %v10219_v30  ;;  %v5810_v32 = vsel %vm5803_vm6, %v5793_v21, %v5526_v53  ;;  %v11018_v53 = vld [vmem:[#allocation44_spill] sm:$0xff] }
 0x3b4   : > { %v5845_v42 = vsel %vm5837_vm8, %v5828_v33, %v10231_v40  ;;  %v5827_v20 = vsel %vm5820_vm7, %v5810_v32, %v10221_v63  ;;  %v11019_v32 = vld [vmem:[#allocation43_spill] sm:$0xff] }
 0x3b5   : > { %5884 = vst [vmem:[%s10378_s6 + $0x70] sm:$0xff] %v5845_v42  ;;  %v5844_v4 = vsel %vm5837_vm8, %v5827_v20, %v10233_v36  ;;  %v5736_v6 = vpop.permute.xlu0 %5735  ;;  %v11020_v20 = vld [vmem:[#allocation5_spill] sm:$0xff] }
 0x3b6   : > { %5882 = vst [vmem:[%s10378_s6 + $0x60] sm:$0xff] %v5844_v4  ;;  %v5861_v59 = vsel %vm5786_vm5, %v5688_v13, %v5736_v6  ;;  %v5734_v58 = vpop.permute.xlu1 %5733 }
 0x3b7   : > { %5885 = vst.msk [vmem:[%s10378_s6 + $0x78] sm:$0xff] %vm5820_vm7, %v5861_v59  ;;  %v5860_v30 = vsel %vm5786_vm5, %v5686_v56, %v5734_v58 }
 0x3b8   : > { %5883 = vst.msk [vmem:[%s10378_s6 + $0x68] sm:$0xff] %vm5820_vm7, %v5860_v30 }
 0x3b9   : > { %v5468_v40 = vpop.permute.xlu0 %5467 }
 0x3ba   : > { %v5466_v18 = vpop.permute.xlu1 %5465  ;;  %v5796_v36 = vsel %vm5786_vm5, %v10241_v11, %v5468_v40 }
 0x3bb   : > { %v5795_v46 = vsel %vm5786_vm5, %v10245_v35, %v5466_v18 }
 0x3bd   : > { %v5692_v63 = vpop.permute.xlu0 %5691 }
 0x3be   : > { %v5690_v44 = vpop.permute.xlu1 %5689 }
 0x3c1   : > { %v5532_v22 = vpop.permute.xlu0 %5531 }
 0x3c2   : > { %v5813_v47 = vsel %vm5803_vm6, %v5796_v36, %v5532_v22  ;;  %v5530_v17 = vpop.permute.xlu1 %5529  ;;  %v11021_v36 = vld [vmem:[#allocation9_spill] sm:$0xff] }
 0x3c3   : > { %v5830_v50 = vsel %vm5820_vm7, %v5813_v47, %v10235_v27  ;;  %v5812_v1 = vsel %vm5803_vm6, %v5795_v46, %v5530_v17  ;;  %v11022_v47 = vld [vmem:[#allocation10_spill] sm:$0xff] }
 0x3c4   : > { %v5847_v7 = vsel %vm5837_vm8, %v5830_v50, %v10247_v54  ;;  %v5829_v2 = vsel %vm5820_vm7, %v5812_v1, %v10237_v8 }
 0x3c5   : > { %5888 = vst [vmem:[%s10378_s6 + $0x90] sm:$0xff] %v5847_v7  ;;  %v5846_v11 = vsel %vm5837_vm8, %v5829_v2, %v10249_v3  ;;  %v5740_v52 = vpop.permute.xlu0 %5739  ;;  %v11023_v7 = vld [vmem:[#allocation8_spill] sm:$0xff] }
 0x3c6   : > { %5886 = vst [vmem:[%s10378_s6 + $0x80] sm:$0xff] %v5846_v11  ;;  %v5863_v35 = vsel %vm5786_vm5, %v5692_v63, %v5740_v52  ;;  %v5738_v23 = vpop.permute.xlu1 %5737 }
 0x3c7   : > { %5889 = vst.msk [vmem:[%s10378_s6 + $0x98] sm:$0xff] %vm5820_vm7, %v5863_v35  ;;  %v5862_v27 = vsel %vm5786_vm5, %v5690_v44, %v5738_v23  ;;  %v11024_v35 = vld [vmem:[#allocation15_spill] sm:$0xff] }
 0x3c8   : > { %5887 = vst.msk [vmem:[%s10378_s6 + $0x88] sm:$0xff] %vm5820_vm7, %v5862_v27 }
 0x3c9   : > { %v5472_v54 = vpop.permute.xlu0 %5471 }
 0x3ca   : > { %v5470_v29 = vpop.permute.xlu1 %5469  ;;  %v5798_v3 = vsel %vm5786_vm5, %v10257_v48, %v5472_v54  ;;  %v11014_v48 = vld [vmem:[#allocation34_spill] sm:$0xff] }
 0x3cb   : > { %v5797_v60 = vsel %vm5786_vm5, %v10261_v41, %v5470_v29 }
 0x3cd   : > { %v5696_v8 = vpop.permute.xlu0 %5695 }
 0x3ce   : > { %v5694_v12 = vpop.permute.xlu1 %5693 }
 0x3d1   : > { %v5536_v16 = vpop.permute.xlu0 %5535 }
 0x3d2   : > { %v5815_v62 = vsel %vm5803_vm6, %v5798_v3, %v5536_v16  ;;  %v5534_v51 = vpop.permute.xlu1 %5533 }
 0x3d3   : > { %v5832_v34 = vsel %vm5820_vm7, %v5815_v62, %v10251_v61  ;;  %v5814_v55 = vsel %vm5803_vm6, %v5797_v60, %v5534_v51 }
 0x3d4   : > { %v5849_v14 = vsel %vm5837_vm8, %v5832_v34, %v10263_v15  ;;  %v5831_v5 = vsel %vm5820_vm7, %v5814_v55, %v11013_v19 }
 0x3d5   : > { %5892 = vst [vmem:[%s10378_s6 + $0xb0] sm:$0xff] %v5849_v14  ;;  %v5848_v31 = vsel %vm5837_vm8, %v5831_v5, %v11014_v48  ;;  %v5744_v45 = vpop.permute.xlu0 %5743 }
 0x3d6   : > { %5890 = vst [vmem:[%s10378_s6 + $0xa0] sm:$0xff] %v5848_v31  ;;  %v5865_v41 = vsel %vm5786_vm5, %v5696_v8, %v5744_v45  ;;  %v5742_v28 = vpop.permute.xlu1 %5741 }
 0x3d7   : > { %5893 = vst.msk [vmem:[%s10378_s6 + $0xb8] sm:$0xff] %vm5820_vm7, %v5865_v41  ;;  %v5864_v61 = vsel %vm5786_vm5, %v5694_v12, %v5742_v28 }
 0x3d8   : > { %5891 = vst.msk [vmem:[%s10378_s6 + $0xa8] sm:$0xff] %vm5820_vm7, %v5864_v61 }
 0x3d9   : > { %v5476_v15 = vpop.permute.xlu0 %5475 }
 0x3da   : > { %v5474_v0 = vpop.permute.xlu1 %5473  ;;  %v5800_v39 = vsel %vm5786_vm5, %v11015_v38, %v5476_v15 }
 0x3db   : > { %v5799_v13 = vsel %vm5786_vm5, %v11016_v25, %v5474_v0 }
 0x3dd   : > { %v5700_v57 = vpop.permute.xlu0 %5699 }
 0x3de   : > { %v5698_v24 = vpop.permute.xlu1 %5697 }
 0x3e1   : > { %v5540_v43 = vpop.permute.xlu0 %5539 }
 0x3e2   : > { %v5817_v56 = vsel %vm5803_vm6, %v5800_v39, %v5540_v43  ;;  %v5538_v26 = vpop.permute.xlu1 %5537 }
 0x3e3   : > { %v5834_v21 = vsel %vm5820_vm7, %v5817_v56, %v11017_v10  ;;  %v5816_v49 = vsel %vm5803_vm6, %v5799_v13, %v5538_v26 }
 0x3e4   : > { %v5851_v33 = vsel %vm5837_vm8, %v5834_v21, %v11018_v53  ;;  %v5833_v42 = vsel %vm5820_vm7, %v5816_v49, %v11019_v32 }
 0x3e5   : > { %5896 = vst [vmem:[%s10378_s6 + $0xd0] sm:$0xff] %v5851_v33  ;;  %v5850_v4 = vsel %vm5837_vm8, %v5833_v42, %v11020_v20  ;;  %v5748_v6 = vpop.permute.xlu0 %5747 }
 0x3e6   : > { %5894 = vst [vmem:[%s10378_s6 + $0xc0] sm:$0xff] %v5850_v4  ;;  %v5867_v59 = vsel %vm5786_vm5, %v5700_v57, %v5748_v6  ;;  %v5746_v58 = vpop.permute.xlu1 %5745 }
 0x3e7   : > { %5897 = vst.msk [vmem:[%s10378_s6 + $0xd8] sm:$0xff] %vm5820_vm7, %v5867_v59  ;;  %v5866_v30 = vsel %vm5786_vm5, %v5698_v24, %v5746_v58 }
 0x3e8   : > { %5895 = vst.msk [vmem:[%s10378_s6 + $0xc8] sm:$0xff] %vm5820_vm7, %v5866_v30 }
 0x3e9   : > { %v5480_v40 = vpop.permute.xlu0 %5479 }
 0x3ea   : > { %v5478_v18 = vpop.permute.xlu1 %5477  ;;  %v5802_v22 = vsel %vm5786_vm5, %v11021_v36, %v5480_v40 }
 0x3eb   : > { %v5801_v17 = vsel %vm5786_vm5, %v11022_v47, %v5478_v18 }
 0x3ed   : > { %v5704_v63 = vpop.permute.xlu0 %5703 }
 0x3ee   : > { %v5702_v44 = vpop.permute.xlu1 %5701 }
 0x3f1   : > { %v5544_v46 = vpop.permute.xlu0 %5543 }
 0x3f2   : > { %v5819_v50 = vsel %vm5803_vm6, %v5802_v22, %v5544_v46  ;;  %v5542_v1 = vpop.permute.xlu1 %5541 }
 0x3f3   : > { %v5836_v2 = vsel %vm5820_vm7, %v5819_v50, %v11023_v7  ;;  %v5818_v11 = vsel %vm5803_vm6, %v5801_v17, %v5542_v1 }
 0x3f4   : > { %v5853_v52 = vsel %vm5837_vm8, %v5836_v2, %v10355_v9  ;;  %v5835_v23 = vsel %vm5820_vm7, %v5818_v11, %v11024_v35 }
 0x3f5   : > { %5900 = vst [vmem:[%s10378_s6 + $0xf0] sm:$0xff] %v5853_v52  ;;  %v5852_v27 = vsel %vm5837_vm8, %v5835_v23, %v10357_v37  ;;  %v5752_v54 = vpop.permute.xlu0 %5751 }
 0x3f6   : > { %5898 = vst [vmem:[%s10378_s6 + $0xe0] sm:$0xff] %v5852_v27  ;;  %v5869_v29 = vsel %vm5786_vm5, %v5704_v63, %v5752_v54  ;;  %v5750_v8 = vpop.permute.xlu1 %5749 }
 0x3f7   : > { %5901 = vst.msk [vmem:[%s10378_s6 + $0xf8] sm:$0xff] %vm5820_vm7, %v5869_v29  ;;  %v5868_v12 = vsel %vm5786_vm5, %v5702_v44, %v5750_v8 }
 0x3f8   : > { %5899 = vst.msk [vmem:[%s10378_s6 + $0xe8] sm:$0xff] %vm5820_vm7, %v5868_v12 }
 0x3f9 PF: > { %s12_s9 = sadd.s32 1, %s8121_s9  }
 0x3fa   : > { %p9_p4 = scmp.ge.s32.totalorder %s12_s9, 4  }
 0x3fc   :  { %11 = sbr.rel (!%p9_p4) target bundleno = 1 (0x1), region = 58 }

</bundles_post_ra>
